<compile_context>
chip_gen: v7x
topology: tpu7x:2x2x1
jax: 0.10.0
libtpu: 0.0.40
codegen_flags: <defaults>
</compile_context>

<pallas_src>
import jax
import jax.numpy as jnp
from jax import lax
from jax.experimental import pallas as pl
from jax.experimental.pallas import tpu as pltpu


_VMEM_BUDGET = 48 * 1024 * 1024   # conservative: fits v7x's 64 MiB/TC physical VMEM


def _round_up(x, m):
    return -(-x // m) * m


def _vmem_bytes(TH, W, D, cin, cout):
    """Rough per-step VMEM need: (8,128)-padded, double-buffered blocks + scratch."""
    def tile(lead, sub, lane, itemsize, sub_tile=8):
        return lead * _round_up(sub, sub_tile) * _round_up(lane, 128) * itemsize

    per_step = (
        tile(TH, W, D, 4)            # cost strip
        + tile(TH, W, 1, 4)          # disp strip (lane-padded 1 -> 128)
        + tile(TH, W, 3, 4)          # error-map strip
        + tile(2, W, D, 4)           # halo cost rows
        + tile(2, W, 1, 4)           # halo disp rows
        + tile(2, W, 3, 4)           # halo err rows
        + tile(9, cin, cout, 2, 16)  # fused bf16 weights
        + tile(1, 1, cout, 4)        # folded BN shift
        + tile(TH, W, cout, 4)       # output strip
    )
    scratch = tile(TH + 2, W + 2, cin, 4)
    return 2 * per_step + scratch    # double-buffered blocks + resident scratch


def _pick_row_tile(H, W, D, cin, cout, budget=_VMEM_BUDGET):
    """Largest H strip (preferring multiples of 8) whose blocks fit the VMEM budget."""
    divisors = [t for t in range(H, 0, -1) if H % t == 0]
    preferred = [t for t in divisors if t == H or t % 8 == 0]
    for t in preferred + divisors:
        if _vmem_bytes(t, W, D, cin, cout) <= budget:
            return t
    return divisors[-1]


def _make_source(cost, disp, err):
    """softmax over D -> uncertainty p*d*(d-disp)^2 -> conv source [err | u]."""
    m = jnp.max(cost, axis=-1, keepdims=True)
    e = jnp.exp(cost - m)
    # approx reciprocal on the EUP: ~2^-12 relative error, well inside the test
    # tolerance (documented deviation from the bit-exact PyTorch forward).
    p = e * pl.reciprocal(jnp.sum(e, axis=-1, keepdims=True), approx=True)
    d = lax.broadcasted_iota(jnp.int32, cost.shape, 2).astype(jnp.float32)
    dd = d - disp
    u = p * d * dd * dd
    return jnp.concatenate([err, u], axis=-1)        # (rows, W, 3 + D) f32


def _guidance_kernel(cost_ref, disp_ref, err_ref, hcost_ref, hdisp_ref, herr_ref,
                     w_ref, shift_ref, out_ref, src_ref):
    TH, W, D = cost_ref.shape
    cin = w_ref.shape[1]                             # 3 + D
    cout = w_ref.shape[2]                            # 2 * hidden

    s = pl.program_id(1)
    last = pl.num_programs(1) - 1

    # SAME-conv zero padding: left/right border columns of the halo scratch. Re-done
    # every step so the kernel stays correct when the two "parallel" grid axes are
    # split across TensorCores (a one-time program_id==0 init would not run there).
    zcol = jnp.zeros((TH + 2, 1, cin), jnp.float32)
    src_ref[:, 0:1, :] = zcol
    src_ref[:, W + 1:W + 2, :] = zcol

    # Interior rows: conv source for this strip's TH rows.
    src_ref[1:TH + 1, 1:W + 1, :] = _make_source(cost_ref[...], disp_ref[...],
                                                 err_ref[...])

    # Halo rows (the image rows directly above / below the strip), recomputed from
    # their own tiny 2-row cost/disp/err operands.
    h_src = _make_source(hcost_ref[...], hdisp_ref[...], herr_ref[...])  # (2, W, cin)
    src_ref[0:1, 1:W + 1, :] = h_src[0:1]
    src_ref[TH + 1:TH + 2, 1:W + 1, :] = h_src[1:2]

    # Halo rows that fall outside the image are SAME-conv zero padding.
    zrow = jnp.zeros((1, W + 2, cin), jnp.float32)

    @pl.when(s == 0)
    def _():
        src_ref[0:1, :, :] = zrow

    @pl.when(s == last)
    def _():
        src_ref[TH + 1:TH + 2, :, :] = zrow

    # Both 3x3 SAME convs (+ BN scale + channel concat) as 9 shifted
    # (TH*W, cin) x (cin, cout) bf16 MXU matmuls into one f32 accumulator that is
    # seeded with the folded BN shift, so the epilogue is just a ReLU.
    # TODO(synk): scratch stays f32 with a per-tap bf16 cast -- a bf16 scratch needs
    # unaligned packed-sublane stores (column offset 1), a lowering path this kernel
    # has not proven; the cast is VPU filler under the MXU slack.
    acc = jnp.broadcast_to(shift_ref[...], (TH * W, cout))
    for t in range(9):                               # static unrolled taps
        dy, dx = divmod(t, 3)
        # For W a multiple of 8 the (TH, W) -> TH*W sublane collapse is
        # layout-preserving (no relayout); the dx shift happens at the slice load.
        patch = src_ref[dy:dy + TH, dx:dx + W, :].reshape(TH * W, cin)
        acc = acc + jnp.dot(patch.astype(jnp.bfloat16), w_ref[t],
                            preferred_element_type=jnp.float32)

    feat = jnp.maximum(acc, 0.0)
    # TODO(synk): a lane-dense (TH, W*cout) output store (cout=64 < 128 lanes) needs
    # a sublane->lane merge relayout of the whole output tile; revisit once that
    # reshape is verified to lower cleanly, guided by a bundle dump.
    out_ref[...] = feat.reshape(TH, W, cout).astype(out_ref.dtype)


def _halo_rows(x, TH, nH):
    """Rows directly above / below each TH-row strip, zero past the image edge.

    x: (B, H, W, C) -> (B, nH, 2, W, C); [:, s, 0] = row s*TH - 1, [:, s, 1] = row
    (s+1)*TH (zero-filled out of range; the kernel re-zeroes those rows anyway).
    """
    H = x.shape[1]
    xp = jnp.pad(x, ((0, 0), (1, 1), (0, 0), (0, 0)))
    above = xp[:, 0:(nH - 1) * TH + 1:TH]
    below = xp[:, TH + 1:H + 2:TH]
    return jnp.stack([above, below], axis=2)


def disp_warp(img, disp):
    """Warp the right image towards the left view by disparity (bilinear along W).

    img: (B, H, W, C), disp: (B, H, W, 1). Returns (warped, valid_mask).
    # TODO(synk): disp_warp is an external repo helper (not part of the nn.Module);
    # this standard bilinear disparity warp is plain JAX, outside the Pallas kernel.
    """
    B, H, W, C = img.shape
    x = jnp.arange(W, dtype=disp.dtype).reshape(1, 1, W, 1)
    src_x = x - disp
    x0 = jnp.floor(src_x)
    frac = src_x - x0
    x0i = x0.astype(jnp.int32)
    x1i = x0i + 1
    valid = (src_x >= 0) & (src_x <= W - 1)
    x0c = jnp.clip(x0i, 0, W - 1)
    x1c = jnp.clip(x1i, 0, W - 1)
    g0 = jnp.take_along_axis(img, jnp.broadcast_to(x0c, (B, H, W, C)), axis=2)
    g1 = jnp.take_along_axis(img, jnp.broadcast_to(x1c, (B, H, W, C)), axis=2)
    warped = g0 * (1.0 - frac) + g1 * frac
    return warped, valid.astype(img.dtype)


def basic_guidance_forward(old_cost_volume, cur_disp, left_image, right_image,
                           w_err, w_unc, bn_err, bn_unc, *, eps=1e-5,
                           row_tile=None):
    """NHWC forward of BasicGuidanceNet.

    old_cost_volume: (B, H, W, D); cur_disp: (B, H, W, 1); images: (B, Hi, Wi, 3)
    w_err: (hidden, 3, 3, 3) OIHW; w_unc: (hidden, D, 3, 3) OIHW
    bn_*: (gamma, beta, running_mean, running_var), each (hidden,)  [eval-mode BN]
    Returns (B, H, W, 2*hidden) = concat([error_feature, uncertainty_feature], -1).
    """
    B, H, W, D = old_cost_volume.shape
    hidden = w_err.shape[0]
    cin, cout = 3 + D, 2 * hidden

    # F.interpolate branch (bilinear, align_corners=False ~ half-pixel centers).
    if left_image.shape[1] != H or left_image.shape[2] != W:
        tgt = (B, H, W, left_image.shape[-1])
        left_image = jax.image.resize(left_image, tgt, method="bilinear")
        right_image = jax.image.resize(right_image, tgt, method="bilinear")

    warped_left, _valid = disp_warp(right_image, cur_disp)
    error_map = warped_left - left_image                        # (B, H, W, 3)

    # Row-strip tiling: TH rows per grid step, sized against the VMEM budget.
    TH = _pick_row_tile(H, W, D, cin, cout) if row_tile is None else row_tile
    if H % TH != 0:
        raise ValueError(f"row_tile={TH} must divide H={H}")
    nH = H // TH

    cost_s = old_cost_volume.reshape(B, nH, TH, W, D)
    disp_s = cur_disp.reshape(B, nH, TH, W, 1)
    err_s = error_map.reshape(B, nH, TH, W, 3)
    halo_cost = _halo_rows(old_cost_volume, TH, nH)             # (B, nH, 2, W, D)
    halo_disp = _halo_rows(cur_disp, TH, nH)                    # (B, nH, 2, W, 1)
    halo_err = _halo_rows(error_map, TH, nH)                    # (B, nH, 2, W, 3)

    # Fold eval-mode BatchNorm into the conv: y = conv(x) * s + b, with the scale s
    # folded into the output columns of the fused bf16 per-tap weight and the shift
    # b seeding the accumulator inside the kernel.
    def fold(bn):
        gamma, beta, mean, var = bn
        scale = gamma / jnp.sqrt(var + eps)
        return scale, beta - mean * scale

    s_err, b_err = fold(bn_err)
    s_unc, b_unc = fold(bn_unc)

    w_err9 = jnp.transpose(w_err, (2, 3, 1, 0)).reshape(9, 3, hidden) * s_err
    w_unc9 = jnp.transpose(w_unc, (2, 3, 1, 0)).reshape(9, D, hidden) * s_unc
    w_fused = jnp.zeros((9, cin, cout), jnp.float32)
    w_fused = w_fused.at[:, :3, :hidden].set(w_err9)
    w_fused = w_fused.at[:, 3:, hidden:].set(w_unc9)
    w_fused = w_fused.astype(jnp.bfloat16)
    shift = jnp.concatenate([b_err, b_unc]).reshape(1, cout).astype(jnp.float32)

    vmem_limit = int(min(_VMEM_BUDGET,
                         max(32 * 1024 * 1024,
                             2 * _vmem_bytes(TH, W, D, cin, cout))))

    return pl.pallas_call(
        _guidance_kernel,
        out_shape=jax.ShapeDtypeStruct((B, H, W, cout), jnp.float32),
        grid_spec=pltpu.PrefetchScalarGridSpec(
            num_scalar_prefetch=0,
            grid=(B, nH),
            in_specs=[
                pl.BlockSpec((None, None, TH, W, D), lambda b, s: (b, s, 0, 0, 0)),
                pl.BlockSpec((None, None, TH, W, 1), lambda b, s: (b, s, 0, 0, 0)),
                pl.BlockSpec((None, None, TH, W, 3), lambda b, s: (b, s, 0, 0, 0)),
                pl.BlockSpec((None, None, 2, W, D), lambda b, s: (b, s, 0, 0, 0)),
                pl.BlockSpec((None, None, 2, W, 1), lambda b, s: (b, s, 0, 0, 0)),
                pl.BlockSpec((None, None, 2, W, 3), lambda b, s: (b, s, 0, 0, 0)),
                pl.BlockSpec((9, cin, cout), lambda b, s: (0, 0, 0)),
                pl.BlockSpec((1, cout), lambda b, s: (0, 0)),
            ],
            out_specs=pl.BlockSpec((None, TH, W, cout), lambda b, s: (b, s, 0, 0)),
            scratch_shapes=[pltpu.VMEM((TH + 2, W + 2, cin), jnp.float32)],
        ),
        compiler_params=pltpu.CompilerParams(
            dimension_semantics=("parallel", "parallel"),
            vmem_limit_bytes=vmem_limit),
    )(cost_s, disp_s, err_s, halo_cost, halo_disp, halo_err, w_fused, shift)


def basic_guidance_reference(old_cost_volume, cur_disp, left_image, right_image,
                             w_err, w_unc, bn_err, bn_unc, *, eps=1e-5):
    """Pure-JAX (f32) reference matching the PyTorch forward, NHWC layout."""
    B, H, W, D = old_cost_volume.shape
    prob = jax.nn.softmax(old_cost_volume, axis=-1)
    d = jnp.arange(D, dtype=cur_disp.dtype).reshape(1, 1, 1, D)
    if left_image.shape[1] != H or left_image.shape[2] != W:
        tgt = (B, H, W, left_image.shape[-1])
        left_image = jax.image.resize(left_image, tgt, method="bilinear")
        right_image = jax.image.resize(right_image, tgt, method="bilinear")
    warped_left, _ = disp_warp(right_image, cur_disp)
    error_map = warped_left - left_image
    u = prob * d * (d - cur_disp) ** 2

    def enc(x, w_oihw, bn):
        gamma, beta, mean, var = bn
        w_hwio = jnp.transpose(w_oihw, (2, 3, 1, 0))
        y = lax.conv_general_dilated(x, w_hwio, (1, 1), "SAME",
                                     dimension_numbers=("NHWC", "HWIO", "NHWC"))
        y = (y - mean) * (gamma / jnp.sqrt(var + eps)) + beta
        return jnp.maximum(y, 0.0)

    return jnp.concatenate([enc(error_map, w_err, bn_err),
                            enc(u, w_unc, bn_unc)], axis=-1)


if __name__ == "__main__":
    B, D, H, W, hidden = 2, 32, 16, 16, 32

    key = jax.random.PRNGKey(0)
    ks = jax.random.split(key, 8)

    cost = jax.random.normal(ks[0], (B, H, W, D), dtype=jnp.float32)
    cur_disp = jax.random.uniform(ks[1], (B, H, W, 1), dtype=jnp.float32,
                                  minval=0.0, maxval=float(D - 1))
    left = jax.random.normal(ks[2], (B, H, W, 3), dtype=jnp.float32)
    right = jax.random.normal(ks[3], (B, H, W, 3), dtype=jnp.float32)

    w_err = jax.random.normal(ks[4], (hidden, 3, 3, 3), jnp.float32) * (2.0 / (3 * 9)) ** 0.5
    w_unc = jax.random.normal(ks[5], (hidden, D, 3, 3), jnp.float32) * (2.0 / (D * 9)) ** 0.5

    def make_bn(k):
        k1, k2, k3, k4 = jax.random.split(k, 4)
        gamma = 1.0 + 0.1 * jax.random.normal(k1, (hidden,), jnp.float32)
        beta = 0.1 * jax.random.normal(k2, (hidden,), jnp.float32)
        mean = 0.1 * jax.random.normal(k3, (hidden,), jnp.float32)
        var = jax.random.uniform(k4, (hidden,), jnp.float32, minval=0.5, maxval=1.5)
        return gamma, beta, mean, var

    bn_err = make_bn(ks[6])
    bn_unc = make_bn(ks[7])

    ref = basic_guidance_reference(cost, cur_disp, left, right,
                                   w_err, w_unc, bn_err, bn_unc)
    ref = jax.block_until_ready(ref)
    ref_scale = float(jnp.max(jnp.abs(ref))) + 1e-6

    # Default: VMEM-budget-sized strips (full height at this demo size, grid=(B, 1)).
    out_full = basic_guidance_forward(cost, cur_disp, left, right,
                                      w_err, w_unc, bn_err, bn_unc)
    out_full = jax.block_until_ready(out_full)

    # Forced 8-row strips: exercises the halo'd row-strip tiling path (grid=(B, 2)).
    out_strip = basic_guidance_forward(cost, cur_disp, left, right,
                                       w_err, w_unc, bn_err, bn_unc, row_tile=8)
    out_strip = jax.block_until_ready(out_strip)

    for out in (out_full, out_strip):
        assert out.shape == (B, H, W, 2 * hidden), out.shape
        assert bool(jnp.all(jnp.isfinite(out)))
        # bf16 MXU matmuls (f32 accumulation, BN scale folded into bf16 weights) and
        # an approx softmax reciprocal: compare with a relative-to-max tolerance
        # against the f32 reference.
        rel_err = float(jnp.max(jnp.abs(out - ref)) / ref_scale)
        assert rel_err < 5e-2, f"relative error too large: {rel_err}"

    print("KERNEL_OK")
</pallas_src>

<mosaic_0001>
module attributes {stable_mosaic.version = 11 : i64} {
  func.func @_guidance_kernel(%arg0: i32, %arg1: i32, %arg2: memref<1x1x16x16x32xf32, #tpu.memory_space<vmem>>, %arg3: memref<1x1x16x16x1xf32, #tpu.memory_space<vmem>>, %arg4: memref<1x1x16x16x3xf32, #tpu.memory_space<vmem>>, %arg5: memref<1x1x2x16x32xf32, #tpu.memory_space<vmem>>, %arg6: memref<1x1x2x16x1xf32, #tpu.memory_space<vmem>>, %arg7: memref<1x1x2x16x3xf32, #tpu.memory_space<vmem>>, %arg8: memref<9x35x64xbf16, #tpu.memory_space<vmem>>, %arg9: memref<1x64xf32, #tpu.memory_space<vmem>>, %arg10: memref<1x16x16x64xf32, #tpu.memory_space<vmem>>, %arg11: memref<18x18x35xf32, #tpu.memory_space<vmem>>) attributes {dimension_semantics = [#tpu.dimension_semantics<parallel>, #tpu.dimension_semantics<parallel>], iteration_bounds = array<i64: 2, 1>, scalar_prefetch = 0 : i64, scratch_operands = 1 : i64, tpu.core_type = #tpu.core_type<tc>, window_params = [{transform_indices = @transform_0, window_bounds = array<i64: 1, 1, 16, 16, 32>}, {transform_indices = @transform_1, window_bounds = array<i64: 1, 1, 16, 16, 1>}, {transform_indices = @transform_2, window_bounds = array<i64: 1, 1, 16, 16, 3>}, {transform_indices = @transform_3, window_bounds = array<i64: 1, 1, 2, 16, 32>}, {transform_indices = @transform_4, window_bounds = array<i64: 1, 1, 2, 16, 1>}, {transform_indices = @transform_5, window_bounds = array<i64: 1, 1, 2, 16, 3>}, {pipeline_mode = #tpu.pipeline_mode<synchronous>, transform_indices = @transform_6, window_bounds = array<i64: 9, 35, 64>}, {pipeline_mode = #tpu.pipeline_mode<synchronous>, transform_indices = @transform_7, window_bounds = array<i64: 1, 64>}, {transform_indices = @transform_8, window_bounds = array<i64: 1, 16, 16, 64>}]} {
    %cst = arith.constant 0.000000e+00 : f32
    %0 = vector.broadcast %cst : f32 to vector<18x1x35xf32>
    %c0 = arith.constant 0 : index
    %c0_0 = arith.constant 0 : index
    %c0_1 = arith.constant 0 : index
    %1 = vector.load %arg11[%c0, %c0_0, %c0_1] : memref<18x18x35xf32, #tpu.memory_space<vmem>>, vector<18x1x35xf32>
    tpu.vector_store %arg11[%c0, %c0_0, %c0_1], %0 {strides = array<i32>} : memref<18x18x35xf32, #tpu.memory_space<vmem>>, vector<18x1x35xf32>,
    %c0_2 = arith.constant 0 : index
    %c17 = arith.constant 17 : index
    %c0_3 = arith.constant 0 : index
    %2 = vector.load %arg11[%c0_2, %c17, %c0_3] : memref<18x18x35xf32, #tpu.memory_space<vmem>>, vector<18x1x35xf32>
    tpu.vector_store %arg11[%c0_2, %c17, %c0_3], %0 {strides = array<i32>} : memref<18x18x35xf32, #tpu.memory_space<vmem>>, vector<18x1x35xf32>,
    %c0_4 = arith.constant 0 : index
    %c0_5 = arith.constant 0 : index
    %c0_6 = arith.constant 0 : index
    %c0_7 = arith.constant 0 : index
    %c0_8 = arith.constant 0 : index
    %3 = vector.load %arg2[%c0_4, %c0_5, %c0_6, %c0_7, %c0_8] : memref<1x1x16x16x32xf32, #tpu.memory_space<vmem>>, vector<1x1x16x16x32xf32>
    %4 = vector.shape_cast %3 : vector<1x1x16x16x32xf32> to vector<16x16x32xf32>
    %c0_9 = arith.constant 0 : index
    %c0_10 = arith.constant 0 : index
    %c0_11 = arith.constant 0 : index
    %c0_12 = arith.constant 0 : index
    %c0_13 = arith.constant 0 : index
    %5 = vector.load %arg3[%c0_9, %c0_10, %c0_11, %c0_12, %c0_13] : memref<1x1x16x16x1xf32, #tpu.memory_space<vmem>>, vector<1x1x16x16x1xf32>
    %6 = vector.shape_cast %5 : vector<1x1x16x16x1xf32> to vector<16x16x1xf32>
    %c0_14 = arith.constant 0 : index
    %c0_15 = arith.constant 0 : index
    %c0_16 = arith.constant 0 : index
    %c0_17 = arith.constant 0 : index
    %c0_18 = arith.constant 0 : index
    %7 = vector.load %arg4[%c0_14, %c0_15, %c0_16, %c0_17, %c0_18] : memref<1x1x16x16x3xf32, #tpu.memory_space<vmem>>, vector<1x1x16x16x3xf32>
    %8 = vector.shape_cast %7 : vector<1x1x16x16x3xf32> to vector<16x16x3xf32>
    %cst_19 = arith.constant dense<0xFF800000> : vector<16x16xf32>
    %9 = vector.multi_reduction <maximumf>, %4, %cst_19 [2] : vector<16x16x32xf32> to vector<16x16xf32>
    %10 = vector.shape_cast %9 : vector<16x16xf32> to vector<16x16x1xf32>
    %11 = vector.broadcast %10 : vector<16x16x1xf32> to vector<16x16x32xf32>
    %12 = arith.subf %4, %11 : vector<16x16x32xf32>
    %13 = math.exp %12 : vector<16x16x32xf32>
    %cst_20 = arith.constant dense<0.000000e+00> : vector<16x16xf32>
    %14 = vector.multi_reduction <add>, %13, %cst_20 [2] : vector<16x16x32xf32> to vector<16x16xf32>
    %15 = vector.shape_cast %14 : vector<16x16xf32> to vector<16x16x1xf32>
    %16 = tpu.reciprocal %15 {approx = true} : vector<16x16x1xf32> -> vector<16x16x1xf32>
    %17 = vector.broadcast %16 : vector<16x16x1xf32> to vector<16x16x32xf32>
    %18 = arith.mulf %13, %17 : vector<16x16x32xf32>
    %19 = tpu.iota {dimensions = array<i32: 2>} : vector<16x16x32xi32>
    %20 = arith.sitofp %19 : vector<16x16x32xi32> to vector<16x16x32xf32>
    %21 = vector.broadcast %6 : vector<16x16x1xf32> to vector<16x16x32xf32>
    %22 = arith.subf %20, %21 : vector<16x16x32xf32>
    %23 = arith.mulf %18, %20 : vector<16x16x32xf32>
    %24 = arith.mulf %23, %22 : vector<16x16x32xf32>
    %25 = arith.mulf %24, %22 : vector<16x16x32xf32>
    %26 = tpu.concatenate %8, %25 in 2 : vector<16x16x3xf32>, vector<16x16x32xf32> -> vector<16x16x35xf32>
    %c1 = arith.constant 1 : index
    %c1_21 = arith.constant 1 : index
    %c0_22 = arith.constant 0 : index
    %27 = vector.load %arg11[%c1, %c1_21, %c0_22] : memref<18x18x35xf32, #tpu.memory_space<vmem>>, vector<16x16x35xf32>
    tpu.vector_store %arg11[%c1, %c1_21, %c0_22], %26 {strides = array<i32>} : memref<18x18x35xf32, #tpu.memory_space<vmem>>, vector<16x16x35xf32>,
    %c0_23 = arith.constant 0 : index
    %c0_24 = arith.constant 0 : index
    %c0_25 = arith.constant 0 : index
    %c0_26 = arith.constant 0 : index
    %c0_27 = arith.constant 0 : index
    %28 = vector.load %arg5[%c0_23, %c0_24, %c0_25, %c0_26, %c0_27] : memref<1x1x2x16x32xf32, #tpu.memory_space<vmem>>, vector<1x1x2x16x32xf32>
    %29 = vector.shape_cast %28 : vector<1x1x2x16x32xf32> to vector<2x16x32xf32>
    %c0_28 = arith.constant 0 : index
    %c0_29 = arith.constant 0 : index
    %c0_30 = arith.constant 0 : index
    %c0_31 = arith.constant 0 : index
    %c0_32 = arith.constant 0 : index
    %30 = vector.load %arg6[%c0_28, %c0_29, %c0_30, %c0_31, %c0_32] : memref<1x1x2x16x1xf32, #tpu.memory_space<vmem>>, vector<1x1x2x16x1xf32>
    %31 = vector.shape_cast %30 : vector<1x1x2x16x1xf32> to vector<2x16x1xf32>
    %c0_33 = arith.constant 0 : index
    %c0_34 = arith.constant 0 : index
    %c0_35 = arith.constant 0 : index
    %c0_36 = arith.constant 0 : index
    %c0_37 = arith.constant 0 : index
    %32 = vector.load %arg7[%c0_33, %c0_34, %c0_35, %c0_36, %c0_37] : memref<1x1x2x16x3xf32, #tpu.memory_space<vmem>>, vector<1x1x2x16x3xf32>
    %33 = vector.shape_cast %32 : vector<1x1x2x16x3xf32> to vector<2x16x3xf32>
    %cst_38 = arith.constant dense<0xFF800000> : vector<2x16xf32>
    %34 = vector.multi_reduction <maximumf>, %29, %cst_38 [2] : vector<2x16x32xf32> to vector<2x16xf32>
    %35 = vector.shape_cast %34 : vector<2x16xf32> to vector<2x16x1xf32>
    %36 = vector.broadcast %35 : vector<2x16x1xf32> to vector<2x16x32xf32>
    %37 = arith.subf %29, %36 : vector<2x16x32xf32>
    %38 = math.exp %37 : vector<2x16x32xf32>
    %cst_39 = arith.constant dense<0.000000e+00> : vector<2x16xf32>
    %39 = vector.multi_reduction <add>, %38, %cst_39 [2] : vector<2x16x32xf32> to vector<2x16xf32>
    %40 = vector.shape_cast %39 : vector<2x16xf32> to vector<2x16x1xf32>
    %41 = tpu.reciprocal %40 {approx = true} : vector<2x16x1xf32> -> vector<2x16x1xf32>
    %42 = vector.broadcast %41 : vector<2x16x1xf32> to vector<2x16x32xf32>
    %43 = arith.mulf %38, %42 : vector<2x16x32xf32>
    %44 = tpu.iota {dimensions = array<i32: 2>} : vector<2x16x32xi32>
    %45 = arith.sitofp %44 : vector<2x16x32xi32> to vector<2x16x32xf32>
    %46 = vector.broadcast %31 : vector<2x16x1xf32> to vector<2x16x32xf32>
    %47 = arith.subf %45, %46 : vector<2x16x32xf32>
    %48 = arith.mulf %43, %45 : vector<2x16x32xf32>
    %49 = arith.mulf %48, %47 : vector<2x16x32xf32>
    %50 = arith.mulf %49, %47 : vector<2x16x32xf32>
    %51 = tpu.concatenate %33, %50 in 2 : vector<2x16x3xf32>, vector<2x16x32xf32> -> vector<2x16x35xf32>
    %52 = vector.extract_strided_slice %51 {offsets = [0, 0, 0], sizes = [1, 16, 35], strides = [1, 1, 1]} : vector<2x16x35xf32> to vector<1x16x35xf32>
    %c0_40 = arith.constant 0 : index
    %c1_41 = arith.constant 1 : index
    %c0_42 = arith.constant 0 : index
    %53 = vector.load %arg11[%c0_40, %c1_41, %c0_42] : memref<18x18x35xf32, #tpu.memory_space<vmem>>, vector<1x16x35xf32>
    tpu.vector_store %arg11[%c0_40, %c1_41, %c0_42], %52 {strides = array<i32>} : memref<18x18x35xf32, #tpu.memory_space<vmem>>, vector<1x16x35xf32>,
    %54 = vector.extract_strided_slice %51 {offsets = [1, 0, 0], sizes = [1, 16, 35], strides = [1, 1, 1]} : vector<2x16x35xf32> to vector<1x16x35xf32>
    %c17_43 = arith.constant 17 : index
    %c1_44 = arith.constant 1 : index
    %c0_45 = arith.constant 0 : index
    %55 = vector.load %arg11[%c17_43, %c1_44, %c0_45] : memref<18x18x35xf32, #tpu.memory_space<vmem>>, vector<1x16x35xf32>
    tpu.vector_store %arg11[%c17_43, %c1_44, %c0_45], %54 {strides = array<i32>} : memref<18x18x35xf32, #tpu.memory_space<vmem>>, vector<1x16x35xf32>,
    %cst_46 = arith.constant 0.000000e+00 : f32
    %56 = vector.broadcast %cst_46 : f32 to vector<1x18x35xf32>
    %c0_i32 = arith.constant 0 : i32
    %57 = arith.cmpi eq, %arg1, %c0_i32 : i32
    %58 = arith.extui %57 : i1 to i32
    %c0_i32_47 = arith.constant 0 : i32
    %59 = arith.cmpi ne, %58, %c0_i32_47 : i32
    scf.if %59 {
      %c0_113 = arith.constant 0 : index
      %c0_114 = arith.constant 0 : index
      %c0_115 = arith.constant 0 : index
      %135 = vector.load %arg11[%c0_113, %c0_114, %c0_115] : memref<18x18x35xf32, #tpu.memory_space<vmem>>, vector<1x18x35xf32>
      tpu.vector_store %arg11[%c0_113, %c0_114, %c0_115], %56 {strides = array<i32>} : memref<18x18x35xf32, #tpu.memory_space<vmem>>, vector<1x18x35xf32>,
    } else {
    }
    %c0_i32_48 = arith.constant 0 : i32
    %60 = arith.cmpi eq, %arg1, %c0_i32_48 : i32
    %61 = arith.extui %60 : i1 to i32
    %c0_i32_49 = arith.constant 0 : i32
    %62 = arith.cmpi ne, %61, %c0_i32_49 : i32
    scf.if %62 {
      %c17_113 = arith.constant 17 : index
      %c0_114 = arith.constant 0 : index
      %c0_115 = arith.constant 0 : index
      %135 = vector.load %arg11[%c17_113, %c0_114, %c0_115] : memref<18x18x35xf32, #tpu.memory_space<vmem>>, vector<1x18x35xf32>
      tpu.vector_store %arg11[%c17_113, %c0_114, %c0_115], %56 {strides = array<i32>} : memref<18x18x35xf32, #tpu.memory_space<vmem>>, vector<1x18x35xf32>,
    } else {
    }
    %c0_50 = arith.constant 0 : index
    %c0_51 = arith.constant 0 : index
    %63 = vector.load %arg9[%c0_50, %c0_51] : memref<1x64xf32, #tpu.memory_space<vmem>>, vector<1x64xf32>
    %64 = vector.shape_cast %63 : vector<1x64xf32> to vector<1x64xf32>
    %65 = vector.broadcast %64 : vector<1x64xf32> to vector<256x64xf32>
    %c0_52 = arith.constant 0 : index
    %c0_53 = arith.constant 0 : index
    %c0_54 = arith.constant 0 : index
    %66 = vector.load %arg11[%c0_52, %c0_53, %c0_54] : memref<18x18x35xf32, #tpu.memory_space<vmem>>, vector<16x16x35xf32>
    %67 = vector.shape_cast %66 : vector<16x16x35xf32> to vector<256x35xf32>
    %68 = arith.truncf %67 : vector<256x35xf32> to vector<256x35xbf16>
    %c0_55 = arith.constant 0 : index
    %c0_56 = arith.constant 0 : index
    %c0_57 = arith.constant 0 : index
    %69 = vector.load %arg8[%c0_55, %c0_56, %c0_57] : memref<9x35x64xbf16, #tpu.memory_space<vmem>>, vector<1x35x64xbf16>
    %70 = vector.shape_cast %69 : vector<1x35x64xbf16> to vector<35x64xbf16>
    %cst_58 = arith.constant dense<0.000000e+00> : vector<256x64xf32>
    %71 = tpu.matmul %68, %70, %cst_58 {dimension_numbers = #tpu.dot_dimension_numbers<[1], [0], [0], [1], [0, 0, 1, 1], [], []>} : vector<256x35xbf16>, vector<35x64xbf16>, vector<256x64xf32> -> vector<256x64xf32>
    %72 = arith.addf %65, %71 : vector<256x64xf32>
    %c0_59 = arith.constant 0 : index
    %c1_60 = arith.constant 1 : index
    %c0_61 = arith.constant 0 : index
    %73 = vector.load %arg11[%c0_59, %c1_60, %c0_61] : memref<18x18x35xf32, #tpu.memory_space<vmem>>, vector<16x16x35xf32>
    %74 = vector.shape_cast %73 : vector<16x16x35xf32> to vector<256x35xf32>
    %75 = arith.truncf %74 : vector<256x35xf32> to vector<256x35xbf16>
    %c1_62 = arith.constant 1 : index
    %c0_63 = arith.constant 0 : index
    %c0_64 = arith.constant 0 : index
    %76 = vector.load %arg8[%c1_62, %c0_63, %c0_64] : memref<9x35x64xbf16, #tpu.memory_space<vmem>>, vector<1x35x64xbf16>
    %77 = vector.shape_cast %76 : vector<1x35x64xbf16> to vector<35x64xbf16>
    %cst_65 = arith.constant dense<0.000000e+00> : vector<256x64xf32>
    %78 = tpu.matmul %75, %77, %cst_65 {dimension_numbers = #tpu.dot_dimension_numbers<[1], [0], [0], [1], [0, 0, 1, 1], [], []>} : vector<256x35xbf16>, vector<35x64xbf16>, vector<256x64xf32> -> vector<256x64xf32>
    %79 = arith.addf %72, %78 : vector<256x64xf32>
    %c0_66 = arith.constant 0 : index
    %c2 = arith.constant 2 : index
    %c0_67 = arith.constant 0 : index
    %80 = vector.load %arg11[%c0_66, %c2, %c0_67] : memref<18x18x35xf32, #tpu.memory_space<vmem>>, vector<16x16x35xf32>
    %81 = vector.shape_cast %80 : vector<16x16x35xf32> to vector<256x35xf32>
    %82 = arith.truncf %81 : vector<256x35xf32> to vector<256x35xbf16>
    %c2_68 = arith.constant 2 : index
    %c0_69 = arith.constant 0 : index
    %c0_70 = arith.constant 0 : index
    %83 = vector.load %arg8[%c2_68, %c0_69, %c0_70] : memref<9x35x64xbf16, #tpu.memory_space<vmem>>, vector<1x35x64xbf16>
    %84 = vector.shape_cast %83 : vector<1x35x64xbf16> to vector<35x64xbf16>
    %cst_71 = arith.constant dense<0.000000e+00> : vector<256x64xf32>
    %85 = tpu.matmul %82, %84, %cst_71 {dimension_numbers = #tpu.dot_dimension_numbers<[1], [0], [0], [1], [0, 0, 1, 1], [], []>} : vector<256x35xbf16>, vector<35x64xbf16>, vector<256x64xf32> -> vector<256x64xf32>
    %86 = arith.addf %79, %85 : vector<256x64xf32>
    %c1_72 = arith.constant 1 : index
    %c0_73 = arith.constant 0 : index
    %c0_74 = arith.constant 0 : index
    %87 = vector.load %arg11[%c1_72, %c0_73, %c0_74] : memref<18x18x35xf32, #tpu.memory_space<vmem>>, vector<16x16x35xf32>
    %88 = vector.shape_cast %87 : vector<16x16x35xf32> to vector<256x35xf32>
    %89 = arith.truncf %88 : vector<256x35xf32> to vector<256x35xbf16>
    %c3 = arith.constant 3 : index
    %c0_75 = arith.constant 0 : index
    %c0_76 = arith.constant 0 : index
    %90 = vector.load %arg8[%c3, %c0_75, %c0_76] : memref<9x35x64xbf16, #tpu.memory_space<vmem>>, vector<1x35x64xbf16>
    %91 = vector.shape_cast %90 : vector<1x35x64xbf16> to vector<35x64xbf16>
    %cst_77 = arith.constant dense<0.000000e+00> : vector<256x64xf32>
    %92 = tpu.matmul %89, %91, %cst_77 {dimension_numbers = #tpu.dot_dimension_numbers<[1], [0], [0], [1], [0, 0, 1, 1], [], []>} : vector<256x35xbf16>, vector<35x64xbf16>, vector<256x64xf32> -> vector<256x64xf32>
    %93 = arith.addf %86, %92 : vector<256x64xf32>
    %c1_78 = arith.constant 1 : index
    %c1_79 = arith.constant 1 : index
    %c0_80 = arith.constant 0 : index
    %94 = vector.load %arg11[%c1_78, %c1_79, %c0_80] : memref<18x18x35xf32, #tpu.memory_space<vmem>>, vector<16x16x35xf32>
    %95 = vector.shape_cast %94 : vector<16x16x35xf32> to vector<256x35xf32>
    %96 = arith.truncf %95 : vector<256x35xf32> to vector<256x35xbf16>
    %c4 = arith.constant 4 : index
    %c0_81 = arith.constant 0 : index
    %c0_82 = arith.constant 0 : index
    %97 = vector.load %arg8[%c4, %c0_81, %c0_82] : memref<9x35x64xbf16, #tpu.memory_space<vmem>>, vector<1x35x64xbf16>
    %98 = vector.shape_cast %97 : vector<1x35x64xbf16> to vector<35x64xbf16>
    %cst_83 = arith.constant dense<0.000000e+00> : vector<256x64xf32>
    %99 = tpu.matmul %96, %98, %cst_83 {dimension_numbers = #tpu.dot_dimension_numbers<[1], [0], [0], [1], [0, 0, 1, 1], [], []>} : vector<256x35xbf16>, vector<35x64xbf16>, vector<256x64xf32> -> vector<256x64xf32>
    %100 = arith.addf %93, %99 : vector<256x64xf32>
    %c1_84 = arith.constant 1 : index
    %c2_85 = arith.constant 2 : index
    %c0_86 = arith.constant 0 : index
    %101 = vector.load %arg11[%c1_84, %c2_85, %c0_86] : memref<18x18x35xf32, #tpu.memory_space<vmem>>, vector<16x16x35xf32>
    %102 = vector.shape_cast %101 : vector<16x16x35xf32> to vector<256x35xf32>
    %103 = arith.truncf %102 : vector<256x35xf32> to vector<256x35xbf16>
    %c5 = arith.constant 5 : index
    %c0_87 = arith.constant 0 : index
    %c0_88 = arith.constant 0 : index
    %104 = vector.load %arg8[%c5, %c0_87, %c0_88] : memref<9x35x64xbf16, #tpu.memory_space<vmem>>, vector<1x35x64xbf16>
    %105 = vector.shape_cast %104 : vector<1x35x64xbf16> to vector<35x64xbf16>
    %cst_89 = arith.constant dense<0.000000e+00> : vector<256x64xf32>
    %106 = tpu.matmul %103, %105, %cst_89 {dimension_numbers = #tpu.dot_dimension_numbers<[1], [0], [0], [1], [0, 0, 1, 1], [], []>} : vector<256x35xbf16>, vector<35x64xbf16>, vector<256x64xf32> -> vector<256x64xf32>
    %107 = arith.addf %100, %106 : vector<256x64xf32>
    %c2_90 = arith.constant 2 : index
    %c0_91 = arith.constant 0 : index
    %c0_92 = arith.constant 0 : index
    %108 = vector.load %arg11[%c2_90, %c0_91, %c0_92] : memref<18x18x35xf32, #tpu.memory_space<vmem>>, vector<16x16x35xf32>
    %109 = vector.shape_cast %108 : vector<16x16x35xf32> to vector<256x35xf32>
    %110 = arith.truncf %109 : vector<256x35xf32> to vector<256x35xbf16>
    %c6 = arith.constant 6 : index
    %c0_93 = arith.constant 0 : index
    %c0_94 = arith.constant 0 : index
    %111 = vector.load %arg8[%c6, %c0_93, %c0_94] : memref<9x35x64xbf16, #tpu.memory_space<vmem>>, vector<1x35x64xbf16>
    %112 = vector.shape_cast %111 : vector<1x35x64xbf16> to vector<35x64xbf16>
    %cst_95 = arith.constant dense<0.000000e+00> : vector<256x64xf32>
    %113 = tpu.matmul %110, %112, %cst_95 {dimension_numbers = #tpu.dot_dimension_numbers<[1], [0], [0], [1], [0, 0, 1, 1], [], []>} : vector<256x35xbf16>, vector<35x64xbf16>, vector<256x64xf32> -> vector<256x64xf32>
    %114 = arith.addf %107, %113 : vector<256x64xf32>
    %c2_96 = arith.constant 2 : index
    %c1_97 = arith.constant 1 : index
    %c0_98 = arith.constant 0 : index
    %115 = vector.load %arg11[%c2_96, %c1_97, %c0_98] : memref<18x18x35xf32, #tpu.memory_space<vmem>>, vector<16x16x35xf32>
    %116 = vector.shape_cast %115 : vector<16x16x35xf32> to vector<256x35xf32>
    %117 = arith.truncf %116 : vector<256x35xf32> to vector<256x35xbf16>
    %c7 = arith.constant 7 : index
    %c0_99 = arith.constant 0 : index
    %c0_100 = arith.constant 0 : index
    %118 = vector.load %arg8[%c7, %c0_99, %c0_100] : memref<9x35x64xbf16, #tpu.memory_space<vmem>>, vector<1x35x64xbf16>
    %119 = vector.shape_cast %118 : vector<1x35x64xbf16> to vector<35x64xbf16>
    %cst_101 = arith.constant dense<0.000000e+00> : vector<256x64xf32>
    %120 = tpu.matmul %117, %119, %cst_101 {dimension_numbers = #tpu.dot_dimension_numbers<[1], [0], [0], [1], [0, 0, 1, 1], [], []>} : vector<256x35xbf16>, vector<35x64xbf16>, vector<256x64xf32> -> vector<256x64xf32>
    %121 = arith.addf %114, %120 : vector<256x64xf32>
    %c2_102 = arith.constant 2 : index
    %c2_103 = arith.constant 2 : index
    %c0_104 = arith.constant 0 : index
    %122 = vector.load %arg11[%c2_102, %c2_103, %c0_104] : memref<18x18x35xf32, #tpu.memory_space<vmem>>, vector<16x16x35xf32>
    %123 = vector.shape_cast %122 : vector<16x16x35xf32> to vector<256x35xf32>
    %124 = arith.truncf %123 : vector<256x35xf32> to vector<256x35xbf16>
    %c8 = arith.constant 8 : index
    %c0_105 = arith.constant 0 : index
    %c0_106 = arith.constant 0 : index
    %125 = vector.load %arg8[%c8, %c0_105, %c0_106] : memref<9x35x64xbf16, #tpu.memory_space<vmem>>, vector<1x35x64xbf16>
    %126 = vector.shape_cast %125 : vector<1x35x64xbf16> to vector<35x64xbf16>
    %cst_107 = arith.constant dense<0.000000e+00> : vector<256x64xf32>
    %127 = tpu.matmul %124, %126, %cst_107 {dimension_numbers = #tpu.dot_dimension_numbers<[1], [0], [0], [1], [0, 0, 1, 1], [], []>} : vector<256x35xbf16>, vector<35x64xbf16>, vector<256x64xf32> -> vector<256x64xf32>
    %128 = arith.addf %121, %127 : vector<256x64xf32>
    %cst_108 = arith.constant 0.000000e+00 : f32
    %129 = vector.broadcast %cst_108 : f32 to vector<256x64xf32>
    %130 = arith.maximumf %128, %129 : vector<256x64xf32>
    %131 = vector.shape_cast %130 : vector<256x64xf32> to vector<16x16x64xf32>
    %c0_109 = arith.constant 0 : index
    %c0_110 = arith.constant 0 : index
    %c0_111 = arith.constant 0 : index
    %c0_112 = arith.constant 0 : index
    %132 = vector.load %arg10[%c0_109, %c0_110, %c0_111, %c0_112] : memref<1x16x16x64xf32, #tpu.memory_space<vmem>>, vector<1x16x16x64xf32>
    %133 = vector.shape_cast %132 : vector<1x16x16x64xf32> to vector<16x16x64xf32>
    %134 = vector.shape_cast %131 : vector<16x16x64xf32> to vector<1x16x16x64xf32>
    tpu.vector_store %arg10[%c0_109, %c0_110, %c0_111, %c0_112], %134 {strides = array<i32>} : memref<1x16x16x64xf32, #tpu.memory_space<vmem>>, vector<1x16x16x64xf32>,
    return
  }
  func.func @transform_0(%arg0: i32, %arg1: i32) -> (i32, i32, i32, i32, i32) {
    %c0_i32 = arith.constant 0 : i32
    %c0_i32_0 = arith.constant 0 : i32
    %c0_i32_1 = arith.constant 0 : i32
    %c0_i32_2 = arith.constant 0 : i32
    return %arg0, %arg1, %c0_i32, %c0_i32_0, %c0_i32_1 : i32, i32, i32, i32, i32
  }
  func.func @transform_1(%arg0: i32, %arg1: i32) -> (i32, i32, i32, i32, i32) {
    %c0_i32 = arith.constant 0 : i32
    %c0_i32_0 = arith.constant 0 : i32
    %c0_i32_1 = arith.constant 0 : i32
    %c0_i32_2 = arith.constant 0 : i32
    return %arg0, %arg1, %c0_i32, %c0_i32_0, %c0_i32_1 : i32, i32, i32, i32, i32
  }
  func.func @transform_2(%arg0: i32, %arg1: i32) -> (i32, i32, i32, i32, i32) {
    %c0_i32 = arith.constant 0 : i32
    %c0_i32_0 = arith.constant 0 : i32
    %c0_i32_1 = arith.constant 0 : i32
    %c0_i32_2 = arith.constant 0 : i32
    return %arg0, %arg1, %c0_i32, %c0_i32_0, %c0_i32_1 : i32, i32, i32, i32, i32
  }
  func.func @transform_3(%arg0: i32, %arg1: i32) -> (i32, i32, i32, i32, i32) {
    %c0_i32 = arith.constant 0 : i32
    %c0_i32_0 = arith.constant 0 : i32
    %c0_i32_1 = arith.constant 0 : i32
    %c0_i32_2 = arith.constant 0 : i32
    return %arg0, %arg1, %c0_i32, %c0_i32_0, %c0_i32_1 : i32, i32, i32, i32, i32
  }
  func.func @transform_4(%arg0: i32, %arg1: i32) -> (i32, i32, i32, i32, i32) {
    %c0_i32 = arith.constant 0 : i32
    %c0_i32_0 = arith.constant 0 : i32
    %c0_i32_1 = arith.constant 0 : i32
    %c0_i32_2 = arith.constant 0 : i32
    return %arg0, %arg1, %c0_i32, %c0_i32_0, %c0_i32_1 : i32, i32, i32, i32, i32
  }
  func.func @transform_5(%arg0: i32, %arg1: i32) -> (i32, i32, i32, i32, i32) {
    %c0_i32 = arith.constant 0 : i32
    %c0_i32_0 = arith.constant 0 : i32
    %c0_i32_1 = arith.constant 0 : i32
    %c0_i32_2 = arith.constant 0 : i32
    return %arg0, %arg1, %c0_i32, %c0_i32_0, %c0_i32_1 : i32, i32, i32, i32, i32
  }
  func.func @transform_6(%arg0: i32, %arg1: i32) -> (i32, i32, i32) {
    %c0_i32 = arith.constant 0 : i32
    %c0_i32_0 = arith.constant 0 : i32
    %c0_i32_1 = arith.constant 0 : i32
    %c0_i32_2 = arith.constant 0 : i32
    return %c0_i32, %c0_i32_0, %c0_i32_1 : i32, i32, i32
  }
  func.func @transform_7(%arg0: i32, %arg1: i32) -> (i32, i32) {
    %c0_i32 = arith.constant 0 : i32
    %c0_i32_0 = arith.constant 0 : i32
    %c0_i32_1 = arith.constant 0 : i32
    return %c0_i32, %c0_i32_0 : i32, i32
  }
  func.func @transform_8(%arg0: i32, %arg1: i32) -> (i32, i32, i32, i32) {
    %c0_i32 = arith.constant 0 : i32
    %c0_i32_0 = arith.constant 0 : i32
    %c0_i32_1 = arith.constant 0 : i32
    return %arg0, %arg1, %c0_i32, %c0_i32_0 : i32, i32, i32, i32
  }
}

</mosaic_0001>

<bundles_post_ra>
// kernel: tpu_custom_call.1
= control target key start
LH: loop header
LB: loop body
LE: loop exit
PB: predicated region body
PF: predicated region fallthrough
CT: control target
= control target key end

     0   :  { %13 = vsyncpa [#allocation4], 0  ;;  %s7762_s0 = inlined_call_operand.vmem [shape: f32[2,1,16,16,32], index: 0, kind: input, shape index: {}]   ;;  %s7763_s1 = inlined_call_operand.vmem [shape: f32[2,1,16,16,1], index: 1, kind: input, shape index: {}]   ;;  %s7764_s2 = inlined_call_operand.vmem [shape: f32[2,1,16,16,3], index: 2, kind: input, shape index: {}]   ;;  %s7765_s3 = inlined_call_operand.vmem [shape: f32[2,1,2,16,32], index: 3, kind: input, shape index: {}]   ;;  %s7766_s4 = inlined_call_operand.vmem [shape: f32[2,1,2,16,1], index: 4, kind: input, shape index: {}]   ;;  %s7767_s5 = inlined_call_operand.vmem [shape: f32[2,1,2,16,3], index: 5, kind: input, shape index: {}]   ;;  %s7768_s6 = inlined_call_operand.vmem [shape: bf16[9,35,64], index: 6, kind: input, shape index: {}]   ;;  %s7769_s7 = inlined_call_operand.vmem [shape: f32[1,64], index: 7, kind: input, shape index: {}]   ;;  %s7770_s8 = inlined_call_operand.hbm [shape: f32[2,16,16,64], index: 8, kind: output, shape index: {}]  }
   0x1   :  { %15 = vsyncpa [#allocation4 + $0x1], 0  ;;  %s6119_s27 = smov 0   ;;  %s6121_s28 = smov 0  }
   0x2   :  { %s6123_s29 = smov 0   ;;  %s6125_s30 = smov 0  }
   0x3   :  { %s6127_s9 = smov 0   ;;  %s6129_s10 = smov 0  }
   0x4 LB: > { %s4701_s11 = sadd.s32 4294967295, %s6065_s10   ;;  %s4702_s12 = sadd.s32 4294967294, %s6065_s10   ;;  %s6065_s10 = sphi %s6129_s10, %s21_s10   ;;  %s6061_s9 = sphi %s6127_s9, %s7831_s9   ;;  %s6057_s30 = sphi %s6125_s30, %s7830_s30   ;;  %s6053_s29 = sphi %s6123_s29, %s7829_s29   ;;  %s6049_s28 = sphi %s6121_s28, %s7828_s28   ;;  %s6045_s27 = sphi %s6119_s27, %s7827_s27  }
   0x5   : > { %s33_s13 = sadd.s32 1, %s6061_s9  ;;  %s252_s14 = sadd.s32 1, %s6053_s29 }
   0x6   : > { %p35_p0 = scmp.ge.s32.totalorder %s33_s13, 2  ;;  %p262_p1 = scmp.ne.s32.totalorder %s6053_s29, %s6049_s28 }
   0x7   : > { %p263_p2 = scmp.eq.s32.totalorder %s4701_s11, 1  ;;  %p268_p3 = scmp.ne.s32.totalorder %s6049_s28, %s6045_s27 }
   0x8   : > { %s7833_s13 = smov (%p35_p0, %s33_s13), 0  ;;  %p269_p5 = scmp.eq.s32.totalorder %s4702_s12, 1 }
   0x9   : > { %p6159_p4 = por %p263_p2, %p262_p1  ;;  %s247_s16 = ssub.s32 %s6061_s9, %s7833_s13 }
   0xa   : > { %p4705_p6 = scmp.ge.s32.totalorder %s6065_s10, 1  ;;  %p250_p7 = scmp.eq.s32.totalorder %s247_s16, 0 }
   0xb   : > { %p6166_p8 = por %p269_p5, %p268_p3  ;;  %p365_p9 = scmp.lt.s32.totalorder %s6065_s10, 3 }
   0xc   : > { %s6172_s18 = scalar_select %p250_p7, %s6053_s29, %s252_s14  }
   0xd   : > { %p366_p10 = pnand %p4705_p6, %p365_p9 }
   0xf   : > { %369 = sbr.rel (%p366_p10) target bundleno = 1351 (0x547), region = 52 }
  0x16   : > { %p448_p11 = scmp.lt.s32.totalorder %s6057_s30, 1  ;;  %vm637_vm0 = vcmask 261120   ;;  %vm504_vm1 = vcmask 278528   ;;  %vm1409_vm2 = vcmask 23552   ;;  %vm1443_vm3 = vcmask 285696   ;;  %s4942_s22 = sshll.u32 %s6057_s30, 12 }
  0x17   : > { %vm1599_vm4 = vcmask 279552   ;;  %vm1727_vm5 = vcmask 1040384   ;;  %vm1728_vm6 = vcmask 1041408   ;;  %vm4464_vm7 = vcmask 523264  }
  0x18   : > { %s449_s19 = scalar_select %p448_p11, %s6057_s30, 1 }
  0x1a   : > { %s6176_s20 = sshll.u32 %s449_s19, 5  ;;  %s6178_s21 = sshll.u32 %s449_s19, 8 }
  0x1b   : > { %s6184_s24 = scalar_lea.vmem %s7765_s3, %s6176_s20  ;;  %s6190_s11 = scalar_lea.vmem %s7762_s0, %s6178_s21 }
  0x1c   : > { %v6193_v0 = vld [vmem:[%s6184_s24] sm:$0xff]  ;;  %v6199_v2 = vld [vmem:[%s6184_s24 + $0x8] sm:$0xff]  ;;  %v6213_v8 = vld [vmem:[%s6190_s11 + $0x10] sm:$0xff]  ;;  %s6533_s16 = scalar_lea.vmem %s7766_s4, %s6176_s20  ;;  %s6069_s19 = smov 3  }
  0x1d   : > { %v6196_v1 = vld [vmem:[%s6190_s11] sm:$0xff]  ;;  %v1488_v3 = vsel %vm637_vm0, %v6193_v0, -inf  ;;  %v6206_v5 = vld [vmem:[%s6190_s11 + $0x8] sm:$0xff]  ;;  %v1491_v6 = vsel %vm637_vm0, %v6199_v2, -inf  ;;  %v6216_v9 = vld [vmem:[%s6190_s11 + $0x18] sm:$0xff]  ;;  %v644_v11 = vsel %vm637_vm0, %v6213_v8, -inf  ;;  %s6703_s25 = scalar_lea.vmem %s7763_s1, %s6178_s21  ;;  %s6737_s12 = scalar_lea.vmem %s7767_s5, %s6176_s20 }
  0x1e   : > { %v638_v4 = vsel %vm637_vm0, %v6196_v1, -inf  ;;  %1489 = vmax.xlane.f32.xlu0 %v1488_v3  ;;  %v641_v7 = vsel %vm637_vm0, %v6206_v5, -inf  ;;  %v6219_v10 = vld [vmem:[%s6190_s11 + $0x20] sm:$0xff]  ;;  %v647_v12 = vsel %vm637_vm0, %v6216_v9, -inf  ;;  %v6226_v13 = vld [vmem:[%s6190_s11 + $0x28] sm:$0xff]  ;;  %v6229_v14 = vld [vmem:[%s6190_s11 + $0x30] sm:$0xff]  ;;  %s6961_s26 = scalar_lea.vmem %s7764_s2, %s6178_s21  ;;  %s7704_s21 = scalar_lea.hbm %s7770_s8, %s4942_s22 }
  0x1f   : > { %639 = vmax.xlane.f32.xlu1 %v638_v4  ;;  %v6232_v15 = vld [vmem:[%s6190_s11 + $0x38] sm:$0xff]  ;;  %v6235_v16 = vld [vmem:[%s6190_s11 + $0x40] sm:$0xff]  ;;  %v6238_v17 = vld [vmem:[%s6190_s11 + $0x48] sm:$0xff]  ;;  %v650_v18 = vsel %vm637_vm0, %v6219_v10, -inf  ;;  %v653_v19 = vsel %vm637_vm0, %v6226_v13, -inf  ;;  %v656_v20 = vsel %vm637_vm0, %v6229_v14, -inf }
  0x20   : > { %v659_v21 = vsel %vm637_vm0, %v6232_v15, -inf  ;;  %v662_v22 = vsel %vm637_vm0, %v6235_v16, -inf  ;;  %v665_v23 = vsel %vm637_vm0, %v6238_v17, -inf  ;;  %v6253_v24 = vld [vmem:[%s6190_s11 + $0x50] sm:$0xff]  ;;  %v6256_v25 = vld [vmem:[%s6190_s11 + $0x58] sm:$0xff]  ;;  %v6263_v28 = vld [vmem:[%s6190_s11 + $0x60] sm:$0xff] }
  0x21   : > { %v668_v26 = vsel %vm637_vm0, %v6253_v24, -inf  ;;  %v671_v27 = vsel %vm637_vm0, %v6256_v25, -inf  ;;  %v6266_v29 = vld [vmem:[%s6190_s11 + $0x68] sm:$0xff]  ;;  %v674_v30 = vsel %vm637_vm0, %v6263_v28, -inf  ;;  %v6273_v32 = vld [vmem:[%s6190_s11 + $0x70] sm:$0xff]  ;;  %v6276_v33 = vld [vmem:[%s6190_s11 + $0x78] sm:$0xff] }
  0x22   : > { %1492 = vmax.xlane.f32.xlu0 %v1491_v6  ;;  %v677_v31 = vsel %vm637_vm0, %v6266_v29, -inf  ;;  %v680_v34 = vsel %vm637_vm0, %v6273_v32, -inf  ;;  %v683_v35 = vsel %vm637_vm0, %v6276_v33, -inf  ;;  %v6283_v36 = vld [vmem:[%s6190_s11 + $0x80] sm:$0xff]  ;;  %v6286_v37 = vld [vmem:[%s6190_s11 + $0x88] sm:$0xff]  ;;  %v6293_v40 = vld [vmem:[%s6190_s11 + $0x90] sm:$0xff] }
  0x23   : > { %642 = vmax.xlane.f32.xlu1 %v641_v7  ;;  %v686_v38 = vsel %vm637_vm0, %v6283_v36, -inf  ;;  %v689_v39 = vsel %vm637_vm0, %v6286_v37, -inf  ;;  %v6296_v41 = vld [vmem:[%s6190_s11 + $0x98] sm:$0xff]  ;;  %v692_v42 = vsel %vm637_vm0, %v6293_v40, -inf  ;;  %v6303_v44 = vld [vmem:[%s6190_s11 + $0xa0] sm:$0xff]  ;;  %v6306_v45 = vld [vmem:[%s6190_s11 + $0xa8] sm:$0xff] }
  0x24   : > { %v695_v43 = vsel %vm637_vm0, %v6296_v41, -inf  ;;  %v698_v46 = vsel %vm637_vm0, %v6303_v44, -inf  ;;  %v701_v47 = vsel %vm637_vm0, %v6306_v45, -inf  ;;  %v6313_v48 = vld [vmem:[%s6190_s11 + $0xb0] sm:$0xff]  ;;  %v6316_v49 = vld [vmem:[%s6190_s11 + $0xb8] sm:$0xff]  ;;  %v6323_v52 = vld [vmem:[%s6190_s11 + $0xc0] sm:$0xff] }
  0x25   : > { %v704_v50 = vsel %vm637_vm0, %v6313_v48, -inf  ;;  %v707_v51 = vsel %vm637_vm0, %v6316_v49, -inf  ;;  %v6326_v53 = vld [vmem:[%s6190_s11 + $0xc8] sm:$0xff]  ;;  %v710_v54 = vsel %vm637_vm0, %v6323_v52, -inf  ;;  %v6333_v56 = vld [vmem:[%s6190_s11 + $0xd0] sm:$0xff]  ;;  %v6336_v57 = vld [vmem:[%s6190_s11 + $0xd8] sm:$0xff] }
  0x26   : > { %645 = vmax.xlane.f32.xlu0 %v644_v11  ;;  %v713_v55 = vsel %vm637_vm0, %v6326_v53, -inf  ;;  %v716_v58 = vsel %vm637_vm0, %v6333_v56, -inf  ;;  %v719_v59 = vsel %vm637_vm0, %v6336_v57, -inf  ;;  %v6343_v60 = vld [vmem:[%s6190_s11 + $0xe0] sm:$0xff]  ;;  %v6346_v61 = vld [vmem:[%s6190_s11 + $0xe8] sm:$0xff]  ;;  %v6353_v3 = vld [vmem:[%s6190_s11 + $0xf0] sm:$0xff] }
  0x27   : > { %648 = vmax.xlane.f32.xlu1 %v647_v12  ;;  %v722_v62 = vsel %vm637_vm0, %v6343_v60, -inf  ;;  %v725_v63 = vsel %vm637_vm0, %v6346_v61, -inf  ;;  %v6356_v4 = vld [vmem:[%s6190_s11 + $0xf8] sm:$0xff]  ;;  %v728_v6 = vsel %vm637_vm0, %v6353_v3, -inf  ;;  %v6067_v11 = vmov 0  }
  0x28   : > { %v731_v7 = vsel %vm637_vm0, %v6356_v4, -inf  ;;  %5812 = vset.pattern.permute.xlu0 %v6067_v11  ;;  %5811 = vset.pattern.permute.xlu1 %v6067_v11 }
  0x2a   : > { %651 = vmax.xlane.f32.xlu0 %v650_v18 }
  0x2b   : > { %654 = vmax.xlane.f32.xlu1 %v653_v19 }
  0x2e   : > { %657 = vmax.xlane.f32.xlu0 %v656_v20 }
  0x2f   : > { %660 = vmax.xlane.f32.xlu1 %v659_v21 }
  0x32   : > { %663 = vmax.xlane.f32.xlu0 %v662_v22 }
  0x33   : > { %666 = vmax.xlane.f32.xlu1 %v665_v23 }
  0x36   : > { %669 = vmax.xlane.f32.xlu0 %v668_v26 }
  0x37   : > { %672 = vmax.xlane.f32.xlu1 %v671_v27 }
  0x3a   : > { %675 = vmax.xlane.f32.xlu0 %v674_v30 }
  0x3b   : > { %678 = vmax.xlane.f32.xlu1 %v677_v31 }
  0x3e   : > { %681 = vmax.xlane.f32.xlu0 %v680_v34 }
  0x3f   : > { %684 = vmax.xlane.f32.xlu1 %v683_v35 }
  0x42   : > { %687 = vmax.xlane.f32.xlu0 %v686_v38 }
  0x43   : > { %690 = vmax.xlane.f32.xlu1 %v689_v39 }
  0x46   : > { %693 = vmax.xlane.f32.xlu0 %v692_v42 }
  0x47   : > { %696 = vmax.xlane.f32.xlu1 %v695_v43 }
  0x4a   : > { %699 = vmax.xlane.f32.xlu0 %v698_v46 }
  0x4b   : > { %702 = vmax.xlane.f32.xlu1 %v701_v47 }
  0x4e   : > { %705 = vmax.xlane.f32.xlu0 %v704_v50 }
  0x4f   : > { %708 = vmax.xlane.f32.xlu1 %v707_v51 }
  0x52   : > { %711 = vmax.xlane.f32.xlu0 %v710_v54 }
  0x53   : > { %714 = vmax.xlane.f32.xlu1 %v713_v55 }
  0x56   : > { %717 = vmax.xlane.f32.xlu0 %v716_v58 }
  0x57   : > { %720 = vmax.xlane.f32.xlu1 %v719_v59 }
  0x5a   : > { %723 = vmax.xlane.f32.xlu0 %v722_v62 }
  0x5b   : > { %726 = vmax.xlane.f32.xlu1 %v725_v63 }
  0x5e   : > { %729 = vmax.xlane.f32.xlu0 %v728_v6 }
  0x5f   : > { %732 = vmax.xlane.f32.xlu1 %v731_v7 }
  0xab   : > { %v1490_v12 = vpop.xlane.xlu0 %1489 }
  0xac   : > { %v640_v18 = vpop.xlane.xlu1 %639  ;;  %v1500_v19 = vsub.f32 %v6193_v0, %v1490_v12 }
  0xad   : > { %v734_v20 = vsub.f32 %v6196_v1, %v640_v18 }
  0xae   : > { %v1504_v21 = vmul.f32 1.442695, %v1500_v19 }
  0xaf   : > { %v766_v22 = vmul.f32 1.442695, %v734_v20  ;;  %v1493_v23 = vpop.xlane.xlu0 %1492 }
  0xb0   : > { %v643_v26 = vpop.xlane.xlu1 %642  ;;  %5840 = vpow2.f32 %v1504_v21  ;;  %v1501_v27 = vsub.f32 %v6199_v2, %v1493_v23 }
  0xb1   : > { %v735_v30 = vsub.f32 %v6206_v5, %v643_v26  ;;  %5842 = vpow2.f32 %v766_v22 }
  0xb2   : > { %v1506_v31 = vmul.f32 1.442695, %v1501_v27 }
  0xb3   : > { %v768_v34 = vmul.f32 1.442695, %v735_v30  ;;  %v646_v35 = vpop.xlane.xlu0 %645 }
  0xb4   : > { %v649_v38 = vpop.xlane.xlu1 %648  ;;  %5844 = vpow2.f32 %v1506_v31  ;;  %v736_v39 = vsub.f32 %v6213_v8, %v646_v35 }
  0xb5   : > { %v737_v0 = vsub.f32 %v6216_v9, %v649_v38  ;;  %5846 = vpow2.f32 %v768_v34 }
  0xb6   : > { %v770_v1 = vmul.f32 1.442695, %v736_v39 }
  0xb7   : > { %v772_v42 = vmul.f32 1.442695, %v737_v0  ;;  %v652_v43 = vpop.xlane.xlu0 %651 }
  0xb8   : > { %v655_v46 = vpop.xlane.xlu1 %654  ;;  %5848 = vpow2.f32 %v770_v1  ;;  %v738_v2 = vsub.f32 %v6219_v10, %v652_v43 }
  0xb9   : > { %v739_v5 = vsub.f32 %v6226_v13, %v655_v46  ;;  %5850 = vpow2.f32 %v772_v42 }
  0xba   : > { %v6370_v47 = vpop.eup %5840  ;;  %v774_v50 = vmul.f32 1.442695, %v738_v2 }
  0xbb   : > { %v776_v51 = vmul.f32 1.442695, %v739_v5  ;;  %v658_v54 = vpop.xlane.xlu0 %657  ;;  %v1512_v8 = vsel %vm637_vm0, %v6370_v47, 0.0  ;;  %v6374_v9 = vpop.eup %5842 }
  0xbc   : > { %v661_v55 = vpop.xlane.xlu1 %660  ;;  %5852 = vpow2.f32 %v774_v50  ;;  %v740_v58 = vsub.f32 %v6229_v14, %v658_v54  ;;  %1513 = vadd.xlane.f32.xlu0 %v1512_v8  ;;  %v830_v11 = vsel %vm637_vm0, %v6374_v9, 0.0 }
  0xbd   : > { %v741_v59 = vsub.f32 %v6232_v15, %v661_v55  ;;  %5854 = vpow2.f32 %v776_v51 }
  0xbe   : > { %v6378_v10 = vpop.eup %5844  ;;  %v778_v13 = vmul.f32 1.442695, %v740_v58 }
  0xbf   : > { %v780_v62 = vmul.f32 1.442695, %v741_v59  ;;  %v664_v63 = vpop.xlane.xlu0 %663  ;;  %v1515_v7 = vsel %vm637_vm0, %v6378_v10, 0.0  ;;  %v6384_v12 = vpop.eup %5846 }
  0xc0   : > { %v667_v6 = vpop.xlane.xlu1 %666  ;;  %5856 = vpow2.f32 %v778_v13  ;;  %v742_v14 = vsub.f32 %v6235_v16, %v664_v63  ;;  %1516 = vadd.xlane.f32.xlu1 %v1515_v7  ;;  %831 = vadd.xlane.f32.xlu0 %v830_v11  ;;  %v833_v26 = vsel %vm637_vm0, %v6384_v12, 0.0 }
  0xc1   : > { %v743_v15 = vsub.f32 %v6238_v17, %v667_v6  ;;  %5858 = vpow2.f32 %v780_v62 }
  0xc2   : > { %v6388_v18 = vpop.eup %5848  ;;  %v782_v19 = vmul.f32 1.442695, %v742_v14 }
  0xc3   : > { %v784_v20 = vmul.f32 1.442695, %v743_v15  ;;  %v670_v21 = vpop.xlane.xlu0 %669  ;;  %v836_v23 = vsel %vm637_vm0, %v6388_v18, 0.0  ;;  %v6394_v27 = vpop.eup %5850 }
  0xc4   : > { %v673_v22 = vpop.xlane.xlu1 %672  ;;  %5860 = vpow2.f32 %v782_v19  ;;  %v744_v16 = vsub.f32 %v6253_v24, %v670_v21  ;;  %837 = vadd.xlane.f32.xlu0 %v836_v23  ;;  %834 = vadd.xlane.f32.xlu1 %v833_v26  ;;  %v839_v0 = vsel %vm637_vm0, %v6394_v27, 0.0 }
  0xc5   : > { %v745_v17 = vsub.f32 %v6256_v25, %v673_v22  ;;  %5862 = vpow2.f32 %v784_v20 }
  0xc6   : > { %v6398_v30 = vpop.eup %5852  ;;  %v786_v31 = vmul.f32 1.442695, %v744_v16 }
  0xc7   : > { %v788_v34 = vmul.f32 1.442695, %v745_v17  ;;  %v676_v35 = vpop.xlane.xlu0 %675  ;;  %v842_v39 = vsel %vm637_vm0, %v6398_v30, 0.0  ;;  %v6404_v1 = vpop.eup %5854 }
  0xc8   : > { %v679_v38 = vpop.xlane.xlu1 %678  ;;  %5864 = vpow2.f32 %v786_v31  ;;  %v746_v24 = vsub.f32 %v6263_v28, %v676_v35  ;;  %843 = vadd.xlane.f32.xlu0 %v842_v39  ;;  %840 = vadd.xlane.f32.xlu1 %v839_v0  ;;  %v845_v51 = vsel %vm637_vm0, %v6404_v1, 0.0 }
  0xc9   : > { %v747_v25 = vsub.f32 %v6266_v29, %v679_v38  ;;  %5866 = vpow2.f32 %v788_v34 }
  0xca   : > { %v6408_v42 = vpop.eup %5856  ;;  %v790_v43 = vmul.f32 1.442695, %v746_v24 }
  0xcb   : > { %v792_v46 = vmul.f32 1.442695, %v747_v25  ;;  %v682_v2 = vpop.xlane.xlu0 %681  ;;  %v848_v50 = vsel %vm637_vm0, %v6408_v42, 0.0  ;;  %v6414_v54 = vpop.eup %5858 }
  0xcc   : > { %v685_v5 = vpop.xlane.xlu1 %684  ;;  %v748_v28 = vsub.f32 %v6273_v32, %v682_v2  ;;  %849 = vadd.xlane.f32.xlu0 %v848_v50  ;;  %846 = vadd.xlane.f32.xlu1 %v845_v51  ;;  %v851_v62 = vsel %vm637_vm0, %v6414_v54, 0.0 }
  0xcd   : > { %5868 = vpow2.f32 %v792_v46  ;;  %v749_v8 = vsub.f32 %v6276_v33, %v685_v5 }
  0xce   : > { %v6417_v29 = vpop.eup %5860  ;;  %5870 = vpow2.f32 %v790_v43  ;;  %v794_v55 = vmul.f32 1.442695, %v748_v28 }
  0xcf   : > { %v688_v58 = vpop.xlane.xlu0 %687  ;;  %v854_v13 = vsel %vm637_vm0, %v6417_v29, 0.0  ;;  %v6424_v63 = vpop.eup %5862  ;;  %v796_v7 = vmul.f32 1.442695, %v749_v8 }
  0xd0   : > { %v691_v59 = vpop.xlane.xlu1 %690  ;;  %855 = vadd.xlane.f32.xlu0 %v854_v13  ;;  %852 = vadd.xlane.f32.xlu1 %v851_v62  ;;  %5872 = vpow2.f32 %v794_v55  ;;  %v750_v33 = vsub.f32 %v6283_v36, %v688_v58  ;;  %v857_v20 = vsel %vm637_vm0, %v6424_v63, 0.0 }
  0xd1   : > { %v751_v32 = vsub.f32 %v6286_v37, %v691_v59 }
  0xd2   : > { %v6427_v6 = vpop.eup %5864  ;;  %v798_v22 = vmul.f32 1.442695, %v750_v33 }
  0xd3   : > { %v800_v11 = vmul.f32 1.442695, %v751_v32  ;;  %v694_v14 = vpop.xlane.xlu0 %693  ;;  %v860_v19 = vsel %vm637_vm0, %v6427_v6, 0.0  ;;  %v6434_v21 = vpop.eup %5866 }
  0xd4   : > { %v697_v15 = vpop.xlane.xlu1 %696  ;;  %861 = vadd.xlane.f32.xlu0 %v860_v19  ;;  %858 = vadd.xlane.f32.xlu1 %v857_v20  ;;  %v752_v36 = vsub.f32 %v6293_v40, %v694_v14  ;;  %v863_v31 = vsel %vm637_vm0, %v6434_v21, 0.0 }
  0xd5   : > { %v753_v37 = vsub.f32 %v6296_v41, %v697_v15  ;;  %5874 = vpow2.f32 %v800_v11 }
  0xd6   : > { %5876 = vpow2.f32 %v796_v7  ;;  %v802_v40 = vmul.f32 1.442695, %v752_v36 }
  0xd7   : > { %v804_v23 = vmul.f32 1.442695, %v753_v37  ;;  %v6438_v26 = vpop.eup %5868  ;;  %v700_v16 = vpop.xlane.xlu0 %699 }
  0xd8   : > { %v703_v17 = vpop.xlane.xlu1 %702  ;;  %v6442_v34 = vpop.eup %5870  ;;  %v754_v35 = vsub.f32 %v6303_v44, %v700_v16  ;;  %864 = vadd.xlane.f32.xlu1 %v863_v31  ;;  %v869_v41 = vsel %vm637_vm0, %v6438_v26, 0.0 }
  0xd9   : > { %5878 = vpow2.f32 %v804_v23  ;;  %870 = vadd.xlane.f32.xlu0 %v869_v41  ;;  %v755_v39 = vsub.f32 %v6306_v45, %v703_v17  ;;  %v866_v25 = vsel %vm637_vm0, %v6442_v34, 0.0 }
  0xda   : > { %5880 = vpow2.f32 %v798_v22  ;;  %v806_v38 = vmul.f32 1.442695, %v754_v35  ;;  %v6450_v43 = vpop.eup %5872 }
  0xdb   : > { %v706_v0 = vpop.xlane.xlu0 %705  ;;  %v808_v46 = vmul.f32 1.442695, %v755_v39  ;;  %v872_v28 = vsel %vm637_vm0, %v6450_v43, 0.0 }
  0xdc   : > { %v709_v24 = vpop.xlane.xlu1 %708  ;;  %5882 = vpow2.f32 %v806_v38  ;;  %867 = vadd.xlane.f32.xlu1 %v866_v25  ;;  %v756_v2 = vsub.f32 %v6313_v48, %v706_v0 }
  0xdd   : > { %v757_v44 = vsub.f32 %v6316_v49, %v709_v24  ;;  %5884 = vpow2.f32 %v802_v40 }
  0xde   : > { %v810_v48 = vmul.f32 1.442695, %v756_v2 }
  0xdf   : > { %v812_v5 = vmul.f32 1.442695, %v757_v44  ;;  %v6454_v50 = vpop.eup %5874  ;;  %v712_v51 = vpop.xlane.xlu0 %711 }
  0xe0   : > { %v715_v45 = vpop.xlane.xlu1 %714  ;;  %v6458_v55 = vpop.eup %5876  ;;  %v758_v8 = vsub.f32 %v6323_v52, %v712_v51  ;;  %873 = vadd.xlane.f32.xlu1 %v872_v28  ;;  %v881_v49 = vsel %vm637_vm0, %v6454_v50, 0.0 }
  0xe1   : > { %5886 = vpow2.f32 %v812_v5  ;;  %882 = vadd.xlane.f32.xlu0 %v881_v49  ;;  %v759_v59 = vsub.f32 %v6326_v53, %v715_v45  ;;  %v875_v7 = vsel %vm637_vm0, %v6458_v55, 0.0  ;;  %v1479_v45 = vld [vmem:[%s6184_s24 + $0x18] sm:$0xff] }
  0xe2   : > { %5888 = vpow2.f32 %v808_v46  ;;  %v814_v58 = vmul.f32 1.442695, %v758_v8  ;;  %v1497_v49 = vsel %vm637_vm0, %v1479_v45, -inf }
  0xe3   : > { %v6464_v13 = vpop.eup %5878  ;;  %v718_v62 = vpop.xlane.xlu0 %717  ;;  %v816_v53 = vmul.f32 1.442695, %v759_v59  ;;  %v6525_v59 = vld [vmem:[%s6184_s24 + $0x10] sm:$0xff] }
  0xe4   : > { %7788 = vst [vmem:[#allocation6_spill] sm:$0xff] %v6464_v13  ;;  %v721_v32 = vpop.xlane.xlu1 %720  ;;  %v6468_v33 = vpop.eup %5880  ;;  %5890 = vpow2.f32 %v814_v58  ;;  %876 = vadd.xlane.f32.xlu1 %v875_v7  ;;  %v887_v11 = vsel %vm637_vm0, %v6464_v13, 0.0  ;;  %v760_v15 = vsub.f32 %v6333_v56, %v718_v62  ;;  %7800 = vst [vmem:[#allocation18_spill] sm:$0xff] %v6525_v59  ;;  %v1494_v62 = vsel %vm637_vm0, %v6525_v59, -inf  ;;  %v1481_v7 = vld [vmem:[%s6533_s16 + $0x8] sm:$0xff] }
  0xe5   : > { %v761_v52 = vsub.f32 %v6336_v57, %v721_v32  ;;  %888 = vadd.xlane.f32.xlu0 %v887_v11  ;;  %5892 = vpow2.f32 %v810_v48  ;;  %v878_v37 = vsel %vm637_vm0, %v6468_v33, 0.0  ;;  %v1480_v32 = vld [vmem:[%s6533_s16] sm:$0xff] }
  0xe6   : > { %v6473_v14 = vpop.eup %5882  ;;  %v818_v56 = vmul.f32 1.442695, %v760_v15 }
  0xe7   : > { %7789 = vst [vmem:[#allocation7_spill] sm:$0xff] %v6473_v14  ;;  %v820_v19 = vmul.f32 1.442695, %v761_v52  ;;  %v724_v20 = vpop.xlane.xlu0 %723  ;;  %v890_v22 = vsel %vm637_vm0, %v6473_v14, 0.0  ;;  %v6480_v36 = vpop.eup %5884 }
  0xe8   : > { %v727_v57 = vpop.xlane.xlu1 %726  ;;  %7790 = vst [vmem:[#allocation8_spill] sm:$0xff] %v6480_v36  ;;  %v762_v23 = vsub.f32 %v6343_v60, %v724_v20  ;;  %879 = vadd.xlane.f32.xlu1 %v878_v37  ;;  %v884_v35 = vsel %vm637_vm0, %v6480_v36, 0.0 }
  0xe9   : > { %v763_v16 = vsub.f32 %v6346_v61, %v727_v57  ;;  %5894 = vpow2.f32 %v820_v19  ;;  %891 = vadd.xlane.f32.xlu0 %v890_v22 }
  0xea   : > { %5896 = vpow2.f32 %v816_v53  ;;  %v822_v17 = vmul.f32 1.442695, %v762_v23 }
  0xeb   : > { %v6484_v31 = vpop.eup %5886  ;;  %v824_v40 = vmul.f32 1.442695, %v763_v16  ;;  %v6537_v52 = vpop.xlane.xlu0 %729 }
  0xec   : > { %7791 = vst [vmem:[#allocation9_spill] sm:$0xff] %v6484_v31  ;;  %v6488_v41 = vpop.eup %5888  ;;  %5898 = vpow2.f32 %v822_v17  ;;  %885 = vadd.xlane.f32.xlu1 %v884_v35  ;;  %v899_v60 = vsel %vm637_vm0, %v6484_v31, 0.0  ;;  %v6539_v11 = vpop.xlane.xlu1 %732 }
  0xed   : > { %7792 = vst [vmem:[#allocation10_spill] sm:$0xff] %v6488_v41  ;;  %900 = vadd.xlane.f32.xlu0 %v899_v60  ;;  %5900 = vpow2.f32 %v818_v56  ;;  %v893_v38 = vsel %vm637_vm0, %v6488_v41, 0.0 }
  0xee   : > { %v6492_v61 = vpop.eup %5890  ;;  %5902 = vpow2.f32 %v824_v40 }
  0xef   : > { %7793 = vst [vmem:[#allocation11_spill] sm:$0xff] %v6492_v61  ;;  %v902_v39 = vsel %vm637_vm0, %v6492_v61, 0.0  ;;  %v6498_v0 = vpop.eup %5892 }
  0xf0   : > { %7794 = vst [vmem:[#allocation12_spill] sm:$0xff] %v6498_v0  ;;  %894 = vadd.xlane.f32.xlu1 %v893_v38  ;;  %v896_v25 = vsel %vm637_vm0, %v6498_v0, 0.0 }
  0xf1   : > { %903 = vadd.xlane.f32.xlu0 %v902_v39 }
  0xf3   : > { %v6500_v24 = vpop.eup %5894 }
  0xf4   : > { %7795 = vst [vmem:[#allocation13_spill] sm:$0xff] %v6500_v24  ;;  %v6504_v44 = vpop.eup %5896  ;;  %897 = vadd.xlane.f32.xlu1 %v896_v25  ;;  %v911_v46 = vsel %vm637_vm0, %v6500_v24, 0.0 }
  0xf5   : > { %7796 = vst [vmem:[#allocation14_spill] sm:$0xff] %v6504_v44  ;;  %912 = vadd.xlane.f32.xlu0 %v911_v46  ;;  %v905_v5 = vsel %vm637_vm0, %v6504_v44, 0.0  ;;  %v7783_v44 = vmov 0.0  }
  0xf6   : > { %v6508_v2 = vpop.eup %5898  ;;  %505 = vst.msk [vmem:[#allocation2] sm:$0x1] %vm504_vm1, %v7783_v44  ;;  %506 = vst.msk [vmem:[#allocation2 + $0x18] sm:$0x1] %vm504_vm1, %v7783_v44 }
  0xf7   : > { %7797 = vst [vmem:[#allocation15_spill] sm:$0xff] %v6508_v2  ;;  %v914_v51 = vsel %vm637_vm0, %v6508_v2, 0.0  ;;  %v6515_v28 = vpop.eup %5900  ;;  %507 = vst.msk [vmem:[#allocation2 + $0x30] sm:$0x1] %vm504_vm1, %v7783_v44 }
  0xf8   : > { %7798 = vst [vmem:[#allocation16_spill] sm:$0xff] %v6515_v28  ;;  %906 = vadd.xlane.f32.xlu1 %v905_v5  ;;  %v6517_v8 = vpop.eup %5902  ;;  %v908_v48 = vsel %vm637_vm0, %v6515_v28, 0.0  ;;  %508 = vst.msk [vmem:[#allocation2 + $0x48] sm:$0x1] %vm504_vm1, %v7783_v44 }
  0xf9   : > { %915 = vadd.xlane.f32.xlu0 %v914_v51  ;;  %7799 = vst [vmem:[#allocation17_spill] sm:$0xff] %v6517_v8  ;;  %v917_v58 = vsel %vm637_vm0, %v6517_v8, 0.0  ;;  %v990_v8 = vlaneseq  ;;  %509 = vst.msk [vmem:[#allocation2 + $0x60] sm:$0x1] %vm504_vm1, %v7783_v44 }
  0xfa   : > { %510 = vst.msk [vmem:[#allocation2 + $0x78] sm:$0x1] %vm504_vm1, %v7783_v44  ;;  %511 = vst.msk [vmem:[#allocation2 + $0x90] sm:$0x1] %vm504_vm1, %v7783_v44 }
  0xfb   : > { %v991_v61 = vand.u32 127, %v990_v8  ;;  %512 = vst.msk [vmem:[#allocation2 + $0xa8] sm:$0x1] %vm504_vm1, %v7783_v44  ;;  %513 = vst.msk [vmem:[#allocation2 + $0xc0] sm:$0x1] %vm504_vm1, %v7783_v44 }
  0xfc   : > { %909 = vadd.xlane.f32.xlu1 %v908_v48  ;;  %514 = vst.msk [vmem:[#allocation2 + $0xd8] sm:$0x1] %vm504_vm1, %v7783_v44  ;;  %515 = vst.msk [vmem:[#allocation2 + $0xf0] sm:$0x1] %vm504_vm1, %v7783_v44 }
  0xfd   : > { %1498 = vmax.xlane.f32.xlu0 %v1497_v49  ;;  %516 = vst.msk [vmem:[#allocation2 + $0x108] sm:$0x1] %vm504_vm1, %v7783_v44  ;;  %517 = vst.msk [vmem:[#allocation2 + $0x120] sm:$0x1] %vm504_vm1, %v7783_v44  ;;  %v6675_v0 = vcvt.s32.f32 %v991_v61 }
  0xfe   : > { %518 = vst.msk [vmem:[#allocation2 + $0x138] sm:$0x1] %vm504_vm1, %v7783_v44  ;;  %519 = vst.msk [vmem:[#allocation2 + $0x150] sm:$0x1] %vm504_vm1, %v7783_v44 }
  0xff   : > { %520 = vst.msk [vmem:[#allocation2 + $0x168] sm:$0x1] %vm504_vm1, %v7783_v44  ;;  %521 = vst.msk [vmem:[#allocation2 + $0x180] sm:$0x1] %vm504_vm1, %v7783_v44 }
 0x100   : > { %918 = vadd.xlane.f32.xlu1 %v917_v58  ;;  %522 = vst.msk [vmem:[#allocation2 + $0x198] sm:$0x1] %vm504_vm1, %v7783_v44  ;;  %523 = vst.msk [vmem:[#allocation2 + $0x11] sm:$0x1] %vm504_vm1, %v7783_v44 }
 0x101   : > { %524 = vst.msk [vmem:[#allocation2 + $0x29] sm:$0x1] %vm504_vm1, %v7783_v44  ;;  %525 = vst.msk [vmem:[#allocation2 + $0x41] sm:$0x1] %vm504_vm1, %v7783_v44 }
 0x102   : > { %526 = vst.msk [vmem:[#allocation2 + $0x59] sm:$0x1] %vm504_vm1, %v7783_v44  ;;  %527 = vst.msk [vmem:[#allocation2 + $0x71] sm:$0x1] %vm504_vm1, %v7783_v44 }
 0x103   : > { %528 = vst.msk [vmem:[#allocation2 + $0x89] sm:$0x1] %vm504_vm1, %v7783_v44  ;;  %529 = vst.msk [vmem:[#allocation2 + $0xa1] sm:$0x1] %vm504_vm1, %v7783_v44 }
 0x104   : > { %1495 = vmax.xlane.f32.xlu1 %v1494_v62  ;;  %530 = vst.msk [vmem:[#allocation2 + $0xb9] sm:$0x1] %vm504_vm1, %v7783_v44  ;;  %531 = vst.msk [vmem:[#allocation2 + $0xd1] sm:$0x1] %vm504_vm1, %v7783_v44 }
 0x105   : > { %532 = vst.msk [vmem:[#allocation2 + $0xe9] sm:$0x1] %vm504_vm1, %v7783_v44  ;;  %533 = vst.msk [vmem:[#allocation2 + $0x101] sm:$0x1] %vm504_vm1, %v7783_v44 }
 0x106   : > { %534 = vst.msk [vmem:[#allocation2 + $0x119] sm:$0x1] %vm504_vm1, %v7783_v44  ;;  %535 = vst.msk [vmem:[#allocation2 + $0x131] sm:$0x1] %vm504_vm1, %v7783_v44 }
 0x107   : > { %536 = vst.msk [vmem:[#allocation2 + $0x149] sm:$0x1] %vm504_vm1, %v7783_v44  ;;  %537 = vst.msk [vmem:[#allocation2 + $0x161] sm:$0x1] %vm504_vm1, %v7783_v44 }
 0x108   : > { %538 = vst.msk [vmem:[#allocation2 + $0x179] sm:$0x1] %vm504_vm1, %v7783_v44  ;;  %539 = vst.msk [vmem:[#allocation2 + $0x191] sm:$0x1] %vm504_vm1, %v7783_v44 }
 0x109   : > { %540 = vst.msk [vmem:[#allocation2 + $0x1a9] sm:$0x1] %vm504_vm1, %v7783_v44 }
 0x113   : > { %1534 = vperm.xlu0 %5812, %v1480_v32  }
 0x115   : > { %1539 = vperm.xlu1 %5811, %v1481_v7  }
 0x149   : > { %v1514_v53 = vpop.xlane.xlu0 %1513 }
 0x14a   : > { %5904 = vrcp.f32 %v1514_v53 }
 0x14d   : > { %v6541_v15 = vpop.xlane.xlu0 %831  ;;  %v1517_v19 = vpop.xlane.xlu1 %1516 }
 0x14e   : > { %5906 = vrcp.f32 %v1517_v19 }
 0x151   : > { %v6543_v20 = vpop.xlane.xlu0 %837  ;;  %v6545_v37 = vpop.xlane.xlu1 %834 }
 0x154   : > { %v5905_v8 = vpop.eup %5904 }
 0x155   : > { %v6547_v22 = vpop.xlane.xlu0 %843  ;;  %v6549_v57 = vpop.xlane.xlu1 %840 }
 0x158   : > { %v5907_v31 = vpop.eup %5906 }
 0x159   : > { %v6551_v23 = vpop.xlane.xlu0 %849  ;;  %v6553_v16 = vpop.xlane.xlu1 %846 }
 0x15d   : > { %v6555_v56 = vpop.xlane.xlu1 %852  ;;  %v6557_v17 = vpop.xlane.xlu0 %855 }
 0x161   : > { %v6559_v35 = vpop.xlane.xlu1 %858  ;;  %v6561_v60 = vpop.xlane.xlu0 %861 }
 0x165   : > { %v6563_v40 = vpop.xlane.xlu1 %864 }
 0x166   : > { %v6567_v39 = vpop.xlane.xlu0 %870 }
 0x169   : > { %v6565_v38 = vpop.xlane.xlu1 %867 }
 0x16d   : > { %v6569_v25 = vpop.xlane.xlu1 %873 }
 0x16e   : > { %v6571_v46 = vpop.xlane.xlu0 %882 }
 0x171   : > { %v6573_v5 = vpop.xlane.xlu1 %876 }
 0x172   : > { %v6575_v51 = vpop.xlane.xlu0 %888 }
 0x175   : > { %v6577_v45 = vpop.xlane.xlu1 %879 }
 0x176   : > { %v6579_v49 = vpop.xlane.xlu0 %891 }
 0x179   : > { %v6581_v48 = vpop.xlane.xlu1 %885 }
 0x17a   : > { %v6583_v58 = vpop.xlane.xlu0 %900 }
 0x17d   : > { %v6585_v62 = vpop.xlane.xlu1 %894 }
 0x17e   : > { %v6587_v32 = vpop.xlane.xlu0 %903 }
 0x17f   : > { %7801 = vst [vmem:[#allocation19_spill] sm:$0xff] %v6587_v32 }
 0x181   : > { %v6589_v7 = vpop.xlane.xlu1 %897 }
 0x182   : > { %v6591_v59 = vpop.xlane.xlu0 %912 }
 0x183   : > { %7802 = vst [vmem:[#allocation20_spill] sm:$0xff] %v6591_v59 }
 0x185   : > { %v6593_v2 = vpop.xlane.xlu1 %906 }
 0x186   : > { %v6595_v28 = vpop.xlane.xlu0 %915 }
 0x187   : > { %7803 = vst [vmem:[#allocation21_spill] sm:$0xff] %v6595_v28  ;;  %v1528_v28 = vmul.f32 %v5905_v8, %v6370_v47  ;;  %v576_v8 = vld [vmem:[%s6703_s25 + $0x18] sm:$0xff] }
 0x189   : > { %v6597_v24 = vpop.xlane.xlu1 %909  ;;  %v1556_v59 = vmul.f32 %v1528_v28, %v6675_v0 }
 0x18a   : > { %7804 = vst [vmem:[#allocation22_spill] sm:$0xff] %v6597_v24  ;;  %v6673_v19 = vpop.xlane.xlu0 %1498  ;;  %v1529_v24 = vmul.f32 %v5907_v31, %v6378_v10  ;;  %v765_v10 = vsub.f32 %v6356_v4, %v6539_v11  ;;  %v764_v31 = vsub.f32 %v6353_v3, %v6537_v52  ;;  %v573_v3 = vld [vmem:[%s6703_s25] sm:$0xff]  ;;  %v580_v52 = vld [vmem:[%s6703_s25 + $0x38] sm:$0xff]  ;;  %v575_v11 = vld [vmem:[%s6703_s25 + $0x10] sm:$0xff] }
 0x18b   : > { %7806 = vst [vmem:[#allocation24_spill] sm:$0xff] %v6673_v19  ;;  %v577_v4 = vld [vmem:[%s6703_s25 + $0x20] sm:$0xff] }
 0x18c   : > { %v826_v28 = vmul.f32 1.442695, %v764_v31  ;;  %v582_v31 = vld [vmem:[%s6703_s25 + $0x48] sm:$0xff] }
 0x18d   : > { %v6671_v53 = vpop.xlane.xlu1 %918 }
 0x18e   : > { %7805 = vst [vmem:[#allocation23_spill] sm:$0xff] %v6671_v53  ;;  %v1557_v53 = vmul.f32 %v1529_v24, %v6675_v0 }
 0x191   : > { %v6678_v14 = vpop.xlane.xlu1 %1495 }
 0x192   : > { %v1535_v41 = vpop.permute.xlu0 %1534 }
 0x193   : > { %v1552_v13 = vsub.f32 %v6675_v0, %v1535_v41  ;;  %v828_v41 = vmul.f32 1.442695, %v765_v10  ;;  %v588_v10 = vld [vmem:[%s6703_s25 + $0x78] sm:$0xff] }
 0x195   : > { %v1560_v44 = vmul.f32 %v1556_v59, %v1552_v13  ;;  %v1540_v36 = vpop.permute.xlu1 %1539  ;;  %5908 = vpow2.f32 %v828_v41  ;;  %v574_v59 = vld [vmem:[%s6703_s25 + $0x8] sm:$0xff]  ;;  %v589_v41 = vld [vmem:[%s6703_s25 + $0x80] sm:$0xff] }
 0x196   : > { %v1553_v19 = vsub.f32 %v6675_v0, %v1540_v36  ;;  %5910 = vpow2.f32 %v826_v28  ;;  %v583_v28 = vld [vmem:[%s6703_s25 + $0x50] sm:$0xff] }
 0x197   : > { %v1564_v32 = vmul.f32 %v1560_v44, %v1552_v13  ;;  %5912 = vrcp.f32 %v6541_v15 }
 0x198   : > { %v1561_v61 = vmul.f32 %v1557_v53, %v1553_v19  ;;  %v584_v53 = vld [vmem:[%s6703_s25 + $0x58] sm:$0xff]  ;;  %5914 = vrcp.f32 %v6545_v37 }
 0x199   : > { %1572 = vrot.lane.b32.xlu1 %v1564_v32, %s6069_s19  ;;  %v581_v32 = vld [vmem:[%s6703_s25 + $0x40] sm:$0xff]  ;;  %5916 = vrcp.f32 %v6543_v20 }
 0x19a   : > { %v1565_v47 = vmul.f32 %v1561_v61, %v1553_v19  ;;  %v578_v19 = vld [vmem:[%s6703_s25 + $0x28] sm:$0xff]  ;;  %v585_v61 = vld [vmem:[%s6703_s25 + $0x60] sm:$0xff]  ;;  %5918 = vrcp.f32 %v6547_v22 }
 0x19b   : > { %5920 = vrcp.f32 %v6549_v57  ;;  %v5814_v57 = vld [vmem:[%s7768_s6 + $0x8] sm:$0xff]  }
 0x19c   : > { %1574 = vrot.lane.b32.xlu0 %v1565_v47, %s6069_s19  ;;  %v579_v47 = vld [vmem:[%s6703_s25 + $0x30] sm:$0xff]  ;;  %5922 = vrcp.f32 %v6553_v16 }
 0x19d   : > { %5924 = vrcp.f32 %v6555_v56  ;;  %v5815_v16 = vld [vmem:[%s7768_s6 + $0x10] ss:$0 sps:$4 sm:$0x33]  }
 0x19e   : > { %5926 = vrcp.f32 %v6551_v23  ;;  %v5816_v56 = vld [vmem:[%s7768_s6 + $0x50] sm:$0xff]  }
 0x19f   : > { %v6691_v36 = vpop.eup %5908  ;;  %5266 = vmatprep.subr.bf16.mxu0 %v5816_v56  ;;  %5928 = vrcp.f32 %v6557_v17 }
 0x1a0   : > { %v6693_v13 = vpop.eup %5910  ;;  %v923_v24 = vsel %vm637_vm0, %v6691_v36, 0.0  ;;  %5267 = vmatpush3.bf16.msra.mxu0 %v5816_v56  ;;  %5930 = vrcp.f32 %v6559_v35 }
 0x1a1   : > { %v920_v44 = vsel %vm637_vm0, %v6693_v13, 0.0  ;;  %5932 = vrcp.f32 %v6563_v40 }
 0x1a2   : > { %5934 = vrcp.f32 %v6561_v60 }
 0x1a3   : > { %5936 = vrcp.f32 %v6565_v38 }
 0x1a4   : > { %5938 = vrcp.f32 %v6567_v39 }
 0x1a5   : > { %5940 = vrcp.f32 %v6573_v5 }
 0x1a6   : > { %5942 = vrcp.f32 %v6569_v25 }
 0x1bb   : > { %924 = vadd.xlane.f32.xlu0 %v923_v24  ;;  %v591_v24 = vld [vmem:[%s6703_s25 + $0x90] sm:$0xff] }
 0x1bd   : > { %921 = vadd.xlane.f32.xlu1 %v920_v44  ;;  %v586_v44 = vld [vmem:[%s6703_s25 + $0x68] sm:$0xff] }
 0x1ce   : > { %995 = vperm.xlu1 %5811, %v573_v3   ;;  %v594_v3 = vld [vmem:[%s6703_s25 + $0xa8] sm:$0xff] }
 0x1d1   : > { %1015 = vperm.xlu0 %5812, %v577_v4   ;;  %v587_v4 = vld [vmem:[%s6703_s25 + $0x70] sm:$0xff] }
 0x1d2   : > { %1000 = vperm.xlu1 %5811, %v574_v59   ;;  %v595_v59 = vld [vmem:[%s6703_s25 + $0xb0] sm:$0xff] }
 0x1d5   : > { %1030 = vperm.xlu0 %5812, %v580_v52   ;;  %v590_v52 = vld [vmem:[%s6703_s25 + $0x88] sm:$0xff] }
 0x1d6   : > { %1005 = vperm.xlu1 %5811, %v575_v11   ;;  %v598_v11 = vld [vmem:[%s6703_s25 + $0xc8] sm:$0xff] }
 0x1d9   : > { %1035 = vperm.xlu0 %5812, %v581_v32   ;;  %v592_v32 = vld [vmem:[%s6703_s25 + $0x98] sm:$0xff] }
 0x1da   : > { %1010 = vperm.xlu1 %5811, %v576_v8   ;;  %v600_v8 = vld [vmem:[%s6703_s25 + $0xd8] sm:$0xff] }
 0x1dd   : > { %1050 = vperm.xlu0 %5812, %v584_v53   ;;  %v593_v53 = vld [vmem:[%s6703_s25 + $0xa0] sm:$0xff] }
 0x1de   : > { %1020 = vperm.xlu1 %5811, %v578_v19   ;;  %v602_v19 = vld [vmem:[%s6703_s25 + $0xe8] sm:$0xff] }
 0x1e1   : > { %1055 = vperm.xlu0 %5812, %v585_v61   ;;  %v596_v61 = vld [vmem:[%s6703_s25 + $0xb8] sm:$0xff] }
 0x1e2   : > { %1025 = vperm.xlu1 %5811, %v579_v47   ;;  %v597_v47 = vld [vmem:[%s6703_s25 + $0xc0] sm:$0xff] }
 0x1e5   : > { %1070 = vperm.xlu0 %5812, %v588_v10   ;;  %v599_v10 = vld [vmem:[%s6703_s25 + $0xd0] sm:$0xff] }
 0x1e6   : > { %1040 = vperm.xlu1 %5811, %v582_v31   ;;  %v1484_v31 = vld [vmem:[%s6737_s12] sm:$0xff] }
 0x1e9   : > { %1075 = vperm.xlu0 %5812, %v589_v41  }
 0x1ea   : > { %1045 = vperm.xlu1 %5811, %v583_v28   ;;  %v601_v28 = vld [vmem:[%s6703_s25 + $0xe0] sm:$0xff] }
 0x1ed   : > { %1085 = vperm.xlu0 %5812, %v591_v24  }
 0x1ee   : > { %1060 = vperm.xlu1 %5811, %v586_v44   ;;  %v1485_v44 = vld [vmem:[%s6737_s12 + $0x8] sm:$0xff] }
 0x1f1   : > { %1100 = vperm.xlu0 %5812, %v594_v3   ;;  %v7807_v3 = vmov 0.0  }
 0x1f2   : > { %1065 = vperm.xlu1 %5811, %v587_v4  }
 0x1f5   : > { %1105 = vperm.xlu0 %5812, %v595_v59  }
 0x1f6   : > { %1080 = vperm.xlu1 %5811, %v590_v52   ;;  %v5913_v52 = vpop.eup %5912  ;;  %5944 = vrcp.f32 %v6571_v46 }
 0x1f9   : > { %1120 = vperm.xlu0 %5812, %v598_v11   ;;  %v5813_v11 = vld [vmem:[%s7768_s6] sm:$0xff]  }
 0x1fa   : > { %1090 = vperm.xlu1 %5811, %v592_v32   ;;  %5114 = vmatprep.subr.bf16.mxu1 %v5813_v11 }
 0x1fb   : > { %5115 = vmatpush3.bf16.msra.mxu1 %v5813_v11 }
 0x1fc   : > { %5116 = vmatprep.subr.bf16.mxu1 %v5814_v57 }
 0x1fd   : > { %1130 = vperm.xlu0 %5812, %v600_v8   ;;  %v958_v8 = vmul.f32 %v5913_v52, %v6374_v9 }
 0x1fe   : > { %1095 = vperm.xlu1 %5811, %v593_v53   ;;  %v5915_v53 = vpop.eup %5914  ;;  %5946 = vrcp.f32 %v6577_v45 }
 0x1ff   : > { %v1185_v20 = vmul.f32 %v6675_v0, %v958_v8  ;;  %v959_v22 = vmul.f32 %v5915_v53, %v6384_v12  ;;  %5117 = vmatpush3.bf16.msra.mxu1 %v5814_v57 }
 0x201   : > { %1140 = vperm.xlu0 %5812, %v602_v19   ;;  %v5917_v19 = vpop.eup %5916  ;;  %5948 = vrcp.f32 %v6581_v48 }
 0x202   : > { %1110 = vperm.xlu1 %5811, %v596_v61  }
 0x206   : > { %1115 = vperm.xlu1 %5811, %v597_v47   ;;  %v6070_v47 = vmov 65535  }
 0x20a   : > { %1125 = vperm.xlu1 %5811, %v599_v10   ;;  %v1729_v10 = vsel %vm1727_vm5, 4294967295, %v6070_v47 }
 0x20b   : > { %v1573_v41 = vpop.permute.xlu1 %1572 }
 0x20c   : > { %v1584_v24 = vsel %vm1409_vm2, %v1484_v31, %v1573_v41  ;;  %v6778_v31 = vsel %vm1728_vm6, %v1729_v10, 0  ;;  %v5919_v41 = vpop.eup %5918  ;;  %v5818_v10 = vld [vmem:[%s7768_s6 + $0x60] ss:$0 sps:$4 sm:$0x33]   ;;  %5950 = vrcp.f32 %v6575_v51 }
 0x20d   : > { %1588 = vst.msk [vmem:[#allocation2 + $0x1] sm:$0xff] %vm1443_vm3, %v1584_v24  ;;  %v960_v24 = vmul.f32 %v5917_v19, %v6388_v18  ;;  %v5921_v23 = vpop.eup %5920  ;;  %v962_v18 = vmul.f32 %v5919_v41, %v6398_v30  ;;  %v6808_v40 = vand.u32 %v5818_v10, %v6778_v31  ;;  %5952 = vrcp.f32 %v6585_v62 }
 0x20e   : > { %1597 = vst.msk [vmem:[#allocation2] sm:$0xff] %vm1443_vm3, %v7807_v3  ;;  %1135 = vperm.xlu1 %5811, %v601_v28   ;;  %v1575_v4 = vpop.permute.xlu0 %1574  ;;  %v5923_v19 = vpop.eup %5922  ;;  %v961_v30 = vmul.f32 %v5921_v23, %v6394_v27  ;;  %5954 = vrcp.f32 %v6579_v49 }
 0x20f   : > { %v1585_v59 = vsel %vm1409_vm2, %v1485_v44, %v1575_v4  ;;  %v1732_v44 = vand.u32 %v5815_v16, %v6778_v31  ;;  %v963_v41 = vmul.f32 %v5923_v19, %v6404_v1 }
 0x210   : > { %1589 = vst.msk [vmem:[#allocation2 + $0x9] sm:$0xff] %vm1443_vm3, %v1585_v59  ;;  %v1186_v59 = vmul.f32 %v6675_v0, %v959_v22  ;;  %v1187_v22 = vmul.f32 %v6675_v0, %v960_v24 }
 0x211   : > { %1598 = vst.msk [vmem:[#allocation2 + $0x8] sm:$0xff] %vm1443_vm3, %v7807_v3  ;;  %5118 = vmatprep.subr.bf16.mxu1 %v1732_v44 }
 0x212   : > { %1600 = vst.msk [vmem:[#allocation2 + $0x10] sm:$0x3] %vm1599_vm4, %v7807_v3  ;;  %5119 = vmatpush3.bf16.msra.mxu1 %v1732_v44 }
 0x215   : > { %v1611_v8 = vld [vmem:[#allocation2] sm:$0xff] }
 0x218   : > { %v1612_v53 = vld [vmem:[#allocation2 + $0x8] sm:$0xff] }
 0x219   : > { %v1643_v57 = vpack.c.bf16 %v1612_v53, %v1611_v8  ;;  %v1190_v53 = vmul.f32 %v6675_v0, %v963_v41 }
 0x21b   : > { %5120 = vmatprep.mubr.msk.bf16.mxu1 %vm1443_vm3, %v1643_v57 }
 0x248   : > { %v6764_v15 = vpop.xlane.xlu0 %924 }
 0x24a   : > { %v6761_v32 = vpop.xlane.xlu1 %921 }
 0x24e   : > { %v996_v37 = vpop.permute.xlu1 %995 }
 0x24f   : > { %v1153_v9 = vsub.f32 %v6675_v0, %v996_v37  ;;  %v5817_v37 = vld [vmem:[%s7768_s6 + $0x58] sm:$0xff]  }
 0x250   : > { %v1016_v61 = vpop.permute.xlu0 %1015  ;;  %5268 = vmatprep.subr.bf16.mxu0 %v5817_v37 }
 0x251   : > { %v1217_v12 = vmul.f32 %v1185_v20, %v1153_v9  ;;  %5269 = vmatpush3.bf16.msra.mxu0 %v5817_v37 }
 0x252   : > { %v1001_v28 = vpop.permute.xlu1 %1000  ;;  %5270 = vmatprep.subr.bf16.mxu0 %v6808_v40 }
 0x253   : > { %v1249_v4 = vmul.f32 %v1217_v12, %v1153_v9  ;;  %v1154_v52 = vsub.f32 %v6675_v0, %v1001_v28  ;;  %v1157_v9 = vsub.f32 %v6675_v0, %v1016_v61  ;;  %v5925_v12 = vpop.eup %5924  ;;  %v1189_v61 = vmul.f32 %v6675_v0, %v962_v18 }
 0x254   : > { %v1031_v11 = vpop.permute.xlu0 %1030  ;;  %v5927_v28 = vpop.eup %5926  ;;  %v965_v60 = vmul.f32 %v5925_v12, %v6414_v54  ;;  %5956 = vrcp.f32 %v6583_v58 }
 0x255   : > { %v1218_v20 = vmul.f32 %v1186_v59, %v1154_v52  ;;  %1313 = vrot.lane.b32.xlu0 %v1249_v4, %s6069_s19  ;;  %v1221_v24 = vmul.f32 %v1189_v61, %v1157_v9  ;;  %v1188_v4 = vmul.f32 %v6675_v0, %v961_v30  ;;  %5271 = vmatpush3.bf16.msra.mxu0 %v6808_v40  ;;  %v5929_v1 = vpop.eup %5928  ;;  %5958 = vrcp.f32 %v6589_v7 }
 0x256   : > { %v1006_v17 = vpop.permute.xlu1 %1005  ;;  %v1160_v8 = vsub.f32 %v6675_v0, %v1031_v11  ;;  %v5931_v37 = vpop.eup %5930  ;;  %v1192_v57 = vmul.f32 %v6675_v0, %v965_v60  ;;  %5960 = vrcp.f32 %v6593_v2  ;;  %v7810_v2 = vld [vmem:[#allocation6_spill] sm:$0xff] }
 0x257   : > { %v1250_v16 = vmul.f32 %v1218_v20, %v1154_v52  ;;  %v1155_v35 = vsub.f32 %v6675_v0, %v1006_v17  ;;  %v964_v20 = vmul.f32 %v5927_v28, %v6408_v42  ;;  %v1253_v54 = vmul.f32 %v1221_v24, %v1157_v9  ;;  %v5933_v42 = vpop.eup %5932 }
 0x258   : > { %v1036_v47 = vpop.permute.xlu0 %1035  ;;  %v967_v30 = vmul.f32 %v5931_v37, %v6424_v63  ;;  %v5935_v10 = vpop.eup %5934 }
 0x259   : > { %v1219_v56 = vmul.f32 %v1187_v22, %v1155_v35  ;;  %1315 = vrot.lane.b32.xlu1 %v1250_v16, %s6069_s19  ;;  %v966_v16 = vmul.f32 %v5929_v1, %v6417_v29  ;;  %v1191_v38 = vmul.f32 %v6675_v0, %v964_v20  ;;  %v1161_v39 = vsub.f32 %v6675_v0, %v1036_v47 }
 0x25a   : > { %v1011_v27 = vpop.permute.xlu1 %1010  ;;  %v1194_v5 = vmul.f32 %v6675_v0, %v967_v30  ;;  %v968_v47 = vmul.f32 %v5935_v10, %v6427_v6  ;;  %v604_v10 = vld [vmem:[%s6703_s25 + $0xf8] sm:$0xff] }
 0x25b   : > { %v1251_v44 = vmul.f32 %v1219_v56, %v1155_v35  ;;  %v1156_v59 = vsub.f32 %v6675_v0, %v1011_v27  ;;  %v1224_v35 = vmul.f32 %v1192_v57, %v1160_v8  ;;  %v1193_v56 = vmul.f32 %v6675_v0, %v966_v16 }
 0x25c   : > { %v1051_v52 = vpop.permute.xlu0 %1050  ;;  %v969_v27 = vmul.f32 %v5933_v42, %v6434_v21  ;;  %v1195_v6 = vmul.f32 %v6675_v0, %v968_v47 }
 0x25d   : > { %v1220_v23 = vmul.f32 %v1188_v4, %v1156_v59  ;;  %1317 = vrot.lane.b32.xlu1 %v1251_v44, %s6069_s19  ;;  %v1256_v63 = vmul.f32 %v1224_v35, %v1160_v8  ;;  %v1225_v24 = vmul.f32 %v1193_v56, %v1161_v39  ;;  %v1164_v44 = vsub.f32 %v6675_v0, %v1051_v52 }
 0x25e   : > { %v1021_v18 = vpop.permute.xlu1 %1020  ;;  %v1196_v60 = vmul.f32 %v6675_v0, %v969_v27 }
 0x25f   : > { %v1252_v22 = vmul.f32 %v1220_v23, %v1156_v59  ;;  %v1158_v17 = vsub.f32 %v6675_v0, %v1021_v18  ;;  %v5937_v59 = vpop.eup %5936  ;;  %v1257_v1 = vmul.f32 %v1225_v24, %v1161_v39  ;;  %v603_v39 = vld [vmem:[%s6703_s25 + $0xf0] sm:$0xff]  ;;  %s445_s25 = sand.u32 1, %s6049_s28  }
 0x260   : > { %v1056_v19 = vpop.permute.xlu0 %1055  ;;  %v5939_v46 = vpop.eup %5938  ;;  %v1228_v8 = vmul.f32 %v1196_v60, %v1164_v44  ;;  %v970_v18 = vmul.f32 %v5937_v59, %v6442_v34  ;;  %s4706_s20 = sshll.u32 %s445_s25, 8  ;;  %s7716_s30 = scalar_lea.sflag [#allocation4], %s445_s25 }
 0x261   : > { %v1222_v11 = vmul.f32 %v1190_v53, %v1158_v17  ;;  %1321 = vrot.lane.b32.xlu1 %v1253_v54, %s6069_s19  ;;  %1319 = vrot.lane.b32.xlu0 %v1252_v22, %s6069_s19  ;;  %v5941_v20 = vpop.eup %5940  ;;  %v971_v48 = vmul.f32 %v5939_v46, %v6438_v26  ;;  %v1165_v22 = vsub.f32 %v6675_v0, %v1056_v19  ;;  %s7587_s14 = scalar_lea.vmem [#allocation3], %s4706_s20 }
 0x262   : > { %v1026_v9 = vpop.permute.xlu1 %1025  ;;  %v5943_v54 = vpop.eup %5942  ;;  %v1260_v16 = vmul.f32 %v1228_v8, %v1164_v44  ;;  %v1197_v42 = vmul.f32 %v6675_v0, %v970_v18  ;;  %v973_v26 = vmul.f32 %v5941_v20, %v6458_v55  ;;  %v7808_v44 = vld [vmem:[#allocation19_spill] sm:$0xff]  ;;  %v7812_v20 = vld [vmem:[#allocation22_spill] sm:$0xff] }
 0x263   : > { %v1254_v12 = vmul.f32 %v1222_v11, %v1158_v17  ;;  %v1159_v29 = vsub.f32 %v6675_v0, %v1026_v9  ;;  %v5945_v11 = vpop.eup %5944  ;;  %v1198_v35 = vmul.f32 %v6675_v0, %v971_v48  ;;  %v972_v62 = vmul.f32 %v5943_v54, %v6450_v43  ;;  %v7813_v48 = vld [vmem:[#allocation10_spill] sm:$0xff] }
 0x264   : > { %v1071_v61 = vpop.permute.xlu0 %1070  ;;  %v5947_v19 = vpop.eup %5946  ;;  %5962 = vrcp.f32 %v7808_v44 }
 0x265   : > { %v1223_v41 = vmul.f32 %v1191_v38, %v1159_v29  ;;  %1323 = vrot.lane.b32.xlu0 %v1254_v12, %s6069_s19  ;;  %v1229_v38 = vmul.f32 %v1197_v42, %v1165_v22  ;;  %v1168_v9 = vsub.f32 %v6675_v0, %v1071_v61  ;;  %v5949_v12 = vpop.eup %5948  ;;  %v974_v43 = vmul.f32 %v5947_v19, %v6468_v33  ;;  %v7809_v33 = vld [vmem:[#allocation8_spill] sm:$0xff] }
 0x266   : > { %v1041_v28 = vpop.permute.xlu1 %1040  ;;  %v1199_v27 = vmul.f32 %v6675_v0, %v972_v62  ;;  %v975_v61 = vmul.f32 %v5945_v11, %v6454_v50 }
 0x267   : > { %v1255_v25 = vmul.f32 %v1223_v41, %v1159_v29  ;;  %v1162_v4 = vsub.f32 %v6675_v0, %v1041_v28  ;;  %v1200_v29 = vmul.f32 %v6675_v0, %v973_v26  ;;  %v5951_v41 = vpop.eup %5950  ;;  %v1261_v58 = vmul.f32 %v1229_v38, %v1165_v22 }
 0x268   : > { %v1076_v21 = vpop.permute.xlu0 %1075  ;;  %v1201_v59 = vmul.f32 %v6675_v0, %v974_v43  ;;  %v1202_v50 = vmul.f32 %v6675_v0, %v975_v61  ;;  %v977_v60 = vmul.f32 %v5951_v41, %v7810_v2 }
 0x269   : > { %v1226_v23 = vmul.f32 %v1194_v5, %v1162_v4  ;;  %1327 = vrot.lane.b32.xlu0 %v1256_v63, %s6069_s19  ;;  %1325 = vrot.lane.b32.xlu1 %v1255_v25, %s6069_s19  ;;  %v1232_v63 = vmul.f32 %v1200_v29, %v1168_v9  ;;  %v1169_v28 = vsub.f32 %v6675_v0, %v1076_v21  ;;  %v7818_v29 = vld [vmem:[#allocation9_spill] sm:$0xff] }
 0x26a   : > { %v1046_v52 = vpop.permute.xlu1 %1045  ;;  %v976_v25 = vmul.f32 %v5949_v12, %v7809_v33 }
 0x26b   : > { %v1258_v53 = vmul.f32 %v1226_v23, %v1162_v4  ;;  %v1163_v45 = vsub.f32 %v6675_v0, %v1046_v52  ;;  %v5953_v4 = vpop.eup %5952  ;;  %v7811_v23 = vld [vmem:[#allocation20_spill] sm:$0xff]  ;;  %v1264_v46 = vmul.f32 %v1232_v63, %v1168_v9  ;;  %v1233_v8 = vmul.f32 %v1201_v59, %v1169_v28 }
 0x26c   : > { %v1086_v17 = vpop.permute.xlu0 %1085  ;;  %v5955_v21 = vpop.eup %5954  ;;  %5964 = vrcp.f32 %v7811_v23  ;;  %v979_v54 = vmul.f32 %v5953_v4, %v7813_v48  ;;  %v7820_v4 = vld [vmem:[#allocation11_spill] sm:$0xff] }
 0x26d   : > { %v1227_v37 = vmul.f32 %v1195_v6, %v1163_v45  ;;  %1329 = vrot.lane.b32.xlu1 %v1257_v1, %s6069_s19  ;;  %1331 = vrot.lane.b32.xlu0 %v1258_v53, %s6069_s19  ;;  %v1171_v6 = vsub.f32 %v6675_v0, %v1086_v17  ;;  %5966 = vrcp.f32 %v7812_v20  ;;  %v5957_v22 = vpop.eup %5956  ;;  %v7814_v17 = vld [vmem:[#allocation7_spill] sm:$0xff] }
 0x26e   : > { %v1061_v57 = vpop.permute.xlu1 %1060 }
 0x26f   : > { %v1259_v51 = vmul.f32 %v1227_v37, %v1163_v45  ;;  %v1166_v34 = vsub.f32 %v6675_v0, %v1061_v57  ;;  %v1203_v37 = vmul.f32 %v6675_v0, %v976_v25  ;;  %v1204_v57 = vmul.f32 %v6675_v0, %v977_v60 }
 0x270   : > { %v1101_v56 = vpop.permute.xlu0 %1100 }
 0x271   : > { %1335 = vrot.lane.b32.xlu0 %v1260_v16, %s6069_s19  ;;  %1333 = vrot.lane.b32.xlu1 %v1259_v51, %s6069_s19  ;;  %v1230_v49 = vmul.f32 %v1198_v35, %v1166_v34  ;;  %v978_v16 = vmul.f32 %v5955_v21, %v7814_v17  ;;  %v5959_v51 = vpop.eup %5958  ;;  %v1235_v11 = vmul.f32 %v1203_v37, %v1171_v6  ;;  %v7822_v37 = vld [vmem:[#allocation16_spill] sm:$0xff] }
 0x272   : > { %v1066_v30 = vpop.permute.xlu1 %1065  ;;  %v1174_v42 = vsub.f32 %v6675_v0, %v1101_v56  ;;  %v1265_v35 = vmul.f32 %v1233_v8, %v1169_v28  ;;  %v5961_v9 = vpop.eup %5960  ;;  %v981_v56 = vmul.f32 %v5957_v22, %v7818_v29 }
 0x273   : > { %v1167_v55 = vsub.f32 %v6675_v0, %v1066_v30  ;;  %v1262_v7 = vmul.f32 %v1230_v49, %v1166_v34  ;;  %v7815_v34 = vld [vmem:[#allocation21_spill] sm:$0xff]  ;;  %v7816_v30 = vld [vmem:[#allocation23_spill] sm:$0xff]  ;;  %v7817_v49 = vld [vmem:[#allocation12_spill] sm:$0xff]  ;;  %v1205_v12 = vmul.f32 %v6675_v0, %v978_v16  ;;  %v5963_v43 = vpop.eup %5962 }
 0x274   : > { %v1106_v52 = vpop.permute.xlu0 %1105  ;;  %5968 = vrcp.f32 %v7815_v34  ;;  %v1208_v25 = vmul.f32 %v6675_v0, %v981_v56  ;;  %v982_v59 = vmul.f32 %v5963_v43, %v7820_v4 }
 0x275   : > { %1150 = vperm.xlu0 %5812, %v604_v10   ;;  %1145 = vperm.xlu1 %5811, %v603_v39   ;;  %v1231_v47 = vmul.f32 %v1199_v27, %v1167_v55  ;;  %5970 = vrcp.f32 %v7816_v30  ;;  %v1206_v10 = vmul.f32 %v6675_v0, %v979_v54  ;;  %v1267_v27 = vmul.f32 %v1235_v11, %v1171_v6 }
 0x276   : > { %v1081_v5 = vpop.permute.xlu1 %1080  ;;  %v1175_v63 = vsub.f32 %v6675_v0, %v1106_v52  ;;  %v1209_v20 = vmul.f32 %v6675_v0, %v982_v59 }
 0x277   : > { %v1170_v24 = vsub.f32 %v6675_v0, %v1081_v5  ;;  %v1263_v53 = vmul.f32 %v1231_v47, %v1167_v55  ;;  %v980_v55 = vmul.f32 %v5959_v51, %v7817_v49  ;;  %v1238_v61 = vmul.f32 %v1206_v10, %v1174_v42  ;;  %v5965_v47 = vpop.eup %5964 }
 0x278   : > { %v1121_v39 = vpop.permute.xlu0 %1120 }
 0x279   : > { %1337 = vrot.lane.b32.xlu1 %v1261_v58, %s6069_s19  ;;  %1339 = vrot.lane.b32.xlu0 %v1262_v7, %s6069_s19  ;;  %v1234_v45 = vmul.f32 %v1202_v50, %v1170_v24  ;;  %v6905_v58 = vld [vmem:[%s7768_s6 + $0x64] sm:$0xff]   ;;  %v1207_v33 = vmul.f32 %v6675_v0, %v980_v55  ;;  %v5967_v50 = vpop.eup %5966  ;;  %v1270_v2 = vmul.f32 %v1238_v61, %v1174_v42 }
 0x27a   : > { %v1091_v1 = vpop.permute.xlu1 %1090  ;;  %5304 = vmatprep.subr.bf16.mxu0 %v6905_v58  ;;  %v1178_v60 = vsub.f32 %v6675_v0, %v1121_v39  ;;  %v984_v48 = vmul.f32 %v5967_v50, %v7822_v37  ;;  %v608_v37 = vld [vmem:[%s6961_s26 + $0x18] sm:$0xff] }
 0x27b   : > { %v1172_v18 = vsub.f32 %v6675_v0, %v1091_v1  ;;  %v1266_v62 = vmul.f32 %v1234_v45, %v1170_v24  ;;  %v7819_v24 = vld [vmem:[#allocation14_spill] sm:$0xff]  ;;  %v7821_v45 = vld [vmem:[#allocation13_spill] sm:$0xff] }
 0x27c   : > { %v983_v44 = vmul.f32 %v5961_v9, %v7819_v24  ;;  %v1131_v21 = vpop.permute.xlu0 %1130  ;;  %v7825_v24 = vld [vmem:[#allocation24_spill] sm:$0xff] }
 0x27d   : > { %1343 = vrot.lane.b32.xlu0 %v1264_v46, %s6069_s19  ;;  %1341 = vrot.lane.b32.xlu1 %v1263_v53, %s6069_s19  ;;  %v1236_v19 = vmul.f32 %v1204_v57, %v1172_v18  ;;  %v1239_v46 = vmul.f32 %v1207_v33, %v1175_v63  ;;  %v1180_v57 = vsub.f32 %v6675_v0, %v1131_v21 }
 0x27e   : > { %v1096_v26 = vpop.permute.xlu1 %1095  ;;  %v5969_v8 = vpop.eup %5968  ;;  %v1210_v53 = vmul.f32 %v6675_v0, %v983_v44 }
 0x27f   : > { %v1173_v38 = vsub.f32 %v6675_v0, %v1096_v26  ;;  %v1268_v5 = vmul.f32 %v1236_v19, %v1172_v18  ;;  %v985_v18 = vmul.f32 %v5965_v47, %v7821_v45  ;;  %v5971_v54 = vpop.eup %5970  ;;  %v1271_v16 = vmul.f32 %v1239_v46, %v1175_v63  ;;  %v5984_v47 = vld [vmem:[%s6184_s24 + $0x18] sm:$0xff]  ;;  %v607_v45 = vld [vmem:[%s6961_s26 + $0x10] sm:$0xff]  ;;  %s4514_s24 = sshll.u32 %s7587_s14, 4  ;;  %s7706_s24 = int_to_ptr.vmem [resolvable:$true] %s4514_s24 }
 0x280   : > { %v1242_v22 = vmul.f32 %v1210_v53, %v1178_v60  ;;  %v1141_v26 = vpop.permute.xlu0 %1140  ;;  %v1211_v19 = vmul.f32 %v6675_v0, %v984_v48  ;;  %v1503_v44 = vsub.f32 %v5984_v47, %v7825_v24  ;;  %v609_v48 = vld [vmem:[%s6961_s26 + $0x20] sm:$0xff]  ;;  %v5821_v47 = vld [vmem:[%s7768_s6 + $0x74] ss:$0 sps:$4 sm:$0x33]   ;;  %v7016_v24 = vld [vmem:[%s7768_s6 + $0x28] sm:$0xff]  }
 0x281   : > { %1345 = vrot.lane.b32.xlu1 %v1265_v35, %s6069_s19  ;;  %1347 = vrot.lane.b32.xlu0 %v1266_v62, %s6069_s19  ;;  %v1237_v28 = vmul.f32 %v1205_v12, %v1173_v38  ;;  %v1212_v42 = vmul.f32 %v6675_v0, %v985_v18  ;;  %v7823_v35 = vld [vmem:[#allocation17_spill] sm:$0xff]  ;;  %v1182_v49 = vsub.f32 %v6675_v0, %v1141_v26 }
 0x282   : > { %v1111_v41 = vpop.permute.xlu1 %1110  ;;  %v987_v62 = vmul.f32 %v5971_v54, %v7823_v35  ;;  %v1274_v30 = vmul.f32 %v1242_v22, %v1178_v60  ;;  %v1510_v33 = vmul.f32 1.442695, %v1503_v44 }
 0x283   : > { %v1176_v7 = vsub.f32 %v6675_v0, %v1111_v41  ;;  %v1269_v6 = vmul.f32 %v1237_v28, %v1173_v38  ;;  %v7824_v38 = vld [vmem:[#allocation15_spill] sm:$0xff]  ;;  %v1244_v10 = vmul.f32 %v1212_v42, %v1180_v57  ;;  %v610_v42 = vld [vmem:[%s6961_s26 + $0x28] sm:$0xff] }
 0x284   : > { %v986_v9 = vmul.f32 %v5969_v8, %v7824_v38  ;;  %v1214_v56 = vmul.f32 %v6675_v0, %v987_v62  ;;  %5972 = vpow2.f32 %v1510_v33  ;;  %v1483_v8 = vld [vmem:[%s6533_s16 + $0x18] sm:$0xff] }
 0x285   : > { %1349 = vrot.lane.b32.xlu1 %v1267_v27, %s6069_s19  ;;  %1351 = vrot.lane.b32.xlu0 %v1268_v5, %s6069_s19  ;;  %v1240_v52 = vmul.f32 %v1208_v25, %v1176_v7  ;;  %v1276_v27 = vmul.f32 %v1244_v10, %v1180_v57  ;;  %v7826_v25 = vld [vmem:[#allocation18_spill] sm:$0xff]  ;;  %v5823_v62 = vld [vmem:[%s7768_s6 + $0x1c] sm:$0xff]  }
 0x286   : > { %v1116_v23 = vpop.permute.xlu1 %1115  ;;  %v1213_v43 = vmul.f32 %v6675_v0, %v986_v9  ;;  %v1246_v61 = vmul.f32 %v1214_v56, %v1182_v49  ;;  %v1502_v4 = vsub.f32 %v7826_v25, %v6678_v14  ;;  %v605_v14 = vld [vmem:[%s6961_s26] sm:$0xff]  ;;  %v611_v10 = vld [vmem:[%s6961_s26 + $0x30] sm:$0xff] }
 0x287   : > { %v1177_v1 = vsub.f32 %v6675_v0, %v1116_v23  ;;  %v1272_v51 = vmul.f32 %v1240_v52, %v1176_v7  ;;  %v5822_v7 = vld [vmem:[%s7768_s6 + $0x14] sm:$0xff]  }
 0x288   : > { %v1278_v5 = vmul.f32 %v1246_v61, %v1182_v49  ;;  %5152 = vmatprep.subr.bf16.mxu1 %v5822_v7  ;;  %v1508_v59 = vmul.f32 1.442695, %v1502_v4 }
 0x289   : > { %1355 = vrot.lane.b32.xlu0 %v1270_v2, %s6069_s19  ;;  %1353 = vrot.lane.b32.xlu1 %v1269_v6, %s6069_s19  ;;  %v1241_v34 = vmul.f32 %v1209_v20, %v1177_v1  ;;  %v606_v6 = vld [vmem:[%s6961_s26 + $0x8] sm:$0xff] }
 0x28a   : > { %v1126_v17 = vpop.permute.xlu1 %1125  ;;  %5974 = vpow2.f32 %v1508_v59 }
 0x28b   : > { %v1179_v11 = vsub.f32 %v6675_v0, %v1126_v17  ;;  %v1273_v55 = vmul.f32 %v1241_v34, %v1177_v1  ;;  %v1482_v1 = vld [vmem:[%s6533_s16 + $0x10] sm:$0xff]  ;;  %5976 = vrcp.f32 %v6764_v15 }
 0x28c   : > { %5978 = vrcp.f32 %v6761_v32  ;;  %v7052_v32 = vld [vmem:[%s7768_s6 + $0x78] sm:$0xff]  }
 0x28d   : > { %1357 = vrot.lane.b32.xlu1 %v1271_v16, %s6069_s19  ;;  %1359 = vrot.lane.b32.xlu0 %v1272_v51, %s6069_s19  ;;  %v1243_v12 = vmul.f32 %v1211_v19, %v1179_v11  ;;  %v5824_v19 = vld [vmem:[%s7768_s6 + $0x24] ss:$0 sps:$4 sm:$0x33]  }
 0x28e   : > { %v1136_v39 = vpop.permute.xlu1 %1135  ;;  %v6949_v50 = vpop.eup %5972 }
 0x28f   : > { %v1181_v29 = vsub.f32 %v6675_v0, %v1136_v39  ;;  %v1275_v41 = vmul.f32 %v1243_v12, %v1179_v11  ;;  %v1521_v2 = vsel %vm637_vm0, %v6949_v50, 0.0  ;;  %v2045_v39 = vand.u32 %v5824_v19, %v6778_v31  ;;  %v614_v12 = vld [vmem:[%s6961_s26 + $0x48] sm:$0xff] }
 0x291   : > { %1363 = vrot.lane.b32.xlu0 %v1274_v30, %s6069_s19  ;;  %1361 = vrot.lane.b32.xlu1 %v1273_v55, %s6069_s19  ;;  %v1245_v63 = vmul.f32 %v1213_v43, %v1181_v29  ;;  %v612_v30 = vld [vmem:[%s6961_s26 + $0x38] sm:$0xff] }
 0x293   : > { %v1277_v28 = vmul.f32 %v1245_v63, %v1181_v29 }
 0x294   : > { %v6953_v60 = vpop.eup %5974 }
 0x295   : > { %1367 = vrot.lane.b32.xlu0 %v1276_v27, %s6069_s19  ;;  %1365 = vrot.lane.b32.xlu1 %v1275_v41, %s6069_s19  ;;  %v1518_v21 = vsel %vm637_vm0, %v6953_v60, 0.0 }
 0x299   : > { %1371 = vrot.lane.b32.xlu0 %v1278_v5, %s6069_s19  ;;  %1369 = vrot.lane.b32.xlu1 %v1277_v28, %s6069_s19  ;;  %v613_v28 = vld [vmem:[%s6961_s26 + $0x40] sm:$0xff] }
 0x2b8   : > { %1522 = vadd.xlane.f32.xlu0 %v1521_v2 }
 0x2bd   : > { %1519 = vadd.xlane.f32.xlu1 %v1518_v21 }
 0x2c7   : > { %v1314_v23 = vpop.permute.xlu0 %1313 }
 0x2c8   : > { %v1410_v46 = vsel %vm1409_vm2, %v605_v14, %v1314_v23  ;;  %v616_v23 = vld [vmem:[%s6961_s26 + $0x58] sm:$0xff] }
 0x2c9   : > { %1444 = vst.msk [vmem:[#allocation2 + $0x19] sm:$0xff] %vm1443_vm3, %v1410_v46 }
 0x2cb   : > { %v1316_v52 = vpop.permute.xlu1 %1315 }
 0x2cc   : > { %v1411_v53 = vsel %vm1409_vm2, %v606_v6, %v1316_v52  ;;  %v615_v52 = vld [vmem:[%s6961_s26 + $0x50] sm:$0xff] }
 0x2cd   : > { %1445 = vst.msk [vmem:[#allocation2 + $0x21] sm:$0xff] %vm1443_vm3, %v1411_v53 }
 0x2ce   : > { %1544 = vperm.xlu0 %5812, %v1482_v1   ;;  %1549 = vperm.xlu1 %5811, %v1483_v8   ;;  %v3297_v1 = vand.u32 %v5821_v47, %v6778_v31 }
 0x2cf   : > { %v1318_v18 = vpop.permute.xlu1 %1317 }
 0x2d0   : > { %v1412_v20 = vsel %vm1409_vm2, %v607_v45, %v1318_v18  ;;  %v1613_v57 = vld [vmem:[#allocation2 + $0x18] sm:$0xff] }
 0x2d1   : > { %1446 = vst.msk [vmem:[#allocation2 + $0x31] sm:$0xff] %vm1443_vm3, %v1412_v20  ;;  %v2866_v34 = vld [vmem:[#allocation2 + $0x19] sm:$0xff] }
 0x2d3   : > { %v1320_v54 = vpop.permute.xlu0 %1319  ;;  %v1322_v22 = vpop.permute.xlu1 %1321 }
 0x2d4   : > { %v1413_v17 = vsel %vm1409_vm2, %v608_v37, %v1320_v54  ;;  %v1414_v16 = vsel %vm1409_vm2, %v609_v48, %v1322_v22  ;;  %v1614_v51 = vld [vmem:[#allocation2 + $0x20] sm:$0xff] }
 0x2d5   : > { %v2867_v11 = vld [vmem:[#allocation2 + $0x21] sm:$0xff]  ;;  %1447 = vst.msk [vmem:[#allocation2 + $0x39] sm:$0xff] %vm1443_vm3, %v1413_v17  ;;  %1448 = vst.msk [vmem:[#allocation2 + $0x49] sm:$0xff] %vm1443_vm3, %v1414_v16  ;;  %v1644_v26 = vpack.c.bf16 %v1614_v51, %v1613_v57 }
 0x2d6   : > { %v6981_v35 = vpack.c.bf16 %v2867_v11, %v2866_v34 }
 0x2d7   : > { %v1324_v38 = vpop.permute.xlu0 %1323  ;;  %5121 = vmatmul.mubr.msk.bf16.vlgmr.msra.gmra.mrb[0].mxu1 %vm1443_vm3, %v1644_v26 }
 0x2d8   : > { %5272 = vmatprep.mubr.msk.bf16.mxu0 %vm1443_vm3, %v6981_v35  ;;  %v1415_v9 = vsel %vm1409_vm2, %v610_v42, %v1324_v38  ;;  %5153 = vmatpush3.bf16.msra.mxu1 %v5822_v7  ;;  %v1615_v29 = vld [vmem:[#allocation2 + $0x30] sm:$0xff] }
 0x2d9   : > { %1449 = vst.msk [vmem:[#allocation2 + $0x51] sm:$0xff] %vm1443_vm3, %v1415_v9  ;;  %5154 = vmatprep.subr.bf16.mxu1 %v5823_v62  ;;  %v2868_v61 = vld [vmem:[#allocation2 + $0x31] sm:$0xff] }
 0x2da   : > { %v5820_v7 = vld [vmem:[%s7768_s6 + $0x6c] sm:$0xff]  }
 0x2db   : > { %v1328_v49 = vpop.permute.xlu0 %1327  ;;  %v1326_v55 = vpop.permute.xlu1 %1325 }
 0x2dc   : > { %v1417_v56 = vsel %vm1409_vm2, %v612_v30, %v1328_v49  ;;  %v1416_v43 = vsel %vm1409_vm2, %v611_v10, %v1326_v55  ;;  %v1616_v27 = vld [vmem:[#allocation2 + $0x38] sm:$0xff]  ;;  %5155 = vmatpush3.bf16.msra.mxu1 %v5823_v62  ;;  %v1617_v25 = vld [vmem:[#allocation2 + $0x48] sm:$0xff]  ;;  %v5977_v62 = vpop.eup %5976 }
 0x2dd   : > { %v2869_v41 = vld [vmem:[#allocation2 + $0x39] sm:$0xff]  ;;  %1451 = vst.msk [vmem:[#allocation2 + $0x69] sm:$0xff] %vm1443_vm3, %v1417_v56  ;;  %1450 = vst.msk [vmem:[#allocation2 + $0x61] sm:$0xff] %vm1443_vm3, %v1416_v43  ;;  %v7002_v63 = vpack.c.bf16 %v1616_v27, %v1615_v29  ;;  %5156 = vmatprep.subr.bf16.mxu1 %v2045_v39  ;;  %v2870_v21 = vld [vmem:[#allocation2 + $0x49] sm:$0xff]  ;;  %v5979_v9 = vpop.eup %5978  ;;  %v989_v10 = vmul.f32 %v5977_v62, %v6691_v36 }
 0x2de   : > { %v7004_v5 = vpack.c.bf16 %v2869_v41, %v2868_v61  ;;  %v618_v27 = vld [vmem:[%s6961_s26 + $0x68] sm:$0xff]  ;;  %v617_v61 = vld [vmem:[%s6961_s26 + $0x60] sm:$0xff] }
 0x2df   : > { %v1332_v44 = vpop.permute.xlu0 %1331  ;;  %5124 = vmatprep.mubr.msk.bf16.mxu1 %vm1443_vm3, %v7002_v63  ;;  %v1330_v33 = vpop.permute.xlu1 %1329 }
 0x2e0   : > { %5273 = vmatmul.mubr.msk.bf16.vlgmr.msra.gmra.mrb[0].mxu0 %vm1443_vm3, %v7004_v5  ;;  %v1419_v4 = vsel %vm1409_vm2, %v614_v12, %v1332_v44  ;;  %v1418_v59 = vsel %vm1409_vm2, %v613_v28, %v1330_v33  ;;  %v1618_v2 = vld [vmem:[#allocation2 + $0x50] sm:$0xff]  ;;  %5157 = vmatpush3.bf16.msra.mxu1 %v2045_v39  ;;  %v988_v39 = vmul.f32 %v5979_v9, %v6693_v13 }
 0x2e1   : > { %v2871_v14 = vld [vmem:[#allocation2 + $0x51] sm:$0xff]  ;;  %5305 = vmatpush3.bf16.msra.mxu0 %v6905_v58  ;;  %1453 = vst.msk [vmem:[#allocation2 + $0x81] sm:$0xff] %vm1443_vm3, %v1419_v4  ;;  %1452 = vst.msk [vmem:[#allocation2 + $0x79] sm:$0xff] %vm1443_vm3, %v1418_v59  ;;  %v7028_v46 = vpack.c.bf16 %v1618_v2, %v1617_v25  ;;  %5190 = vmatprep.subr.bf16.mxu1 %v7016_v24  ;;  %v1216_v12 = vmul.f32 %v6675_v0, %v989_v10 }
 0x2e2   : > { %v7030_v6 = vpack.c.bf16 %v2871_v14, %v2870_v21  ;;  %5306 = vmatprep.subr.bf16.mxu0 %v5820_v7  ;;  %v1215_v56 = vmul.f32 %v6675_v0, %v988_v39  ;;  %v620_v25 = vld [vmem:[%s6961_s26 + $0x78] sm:$0xff]  ;;  %v619_v4 = vld [vmem:[%s6961_s26 + $0x70] sm:$0xff] }
 0x2e3   : > { %v1336_v8 = vpop.permute.xlu0 %1335  ;;  %5125 = vmatmul.mubr.msk.bf16.gmra.mrb[4].mxu1 %vm1443_vm3, %v7028_v46  ;;  %v1334_v58 = vpop.permute.xlu1 %1333 }
 0x2e4   : > { %5276 = vmatprep.mubr.msk.bf16.mxu0 %vm1443_vm3, %v7030_v6  ;;  %v1421_v53 = vsel %vm1409_vm2, %v616_v23, %v1336_v8  ;;  %v1420_v45 = vsel %vm1409_vm2, %v615_v52, %v1334_v58  ;;  %v1619_v18 = vld [vmem:[#allocation2 + $0x60] sm:$0xff]  ;;  %v1620_v20 = vld [vmem:[#allocation2 + $0x68] sm:$0xff] }
 0x2e5   : > { %v2872_v37 = vld [vmem:[#allocation2 + $0x61] sm:$0xff]  ;;  %5307 = vmatpush3.bf16.msra.mxu0 %v5820_v7  ;;  %1455 = vst.msk [vmem:[#allocation2 + $0x99] sm:$0xff] %vm1443_vm3, %v1421_v53  ;;  %1454 = vst.msk [vmem:[#allocation2 + $0x91] sm:$0xff] %vm1443_vm3, %v1420_v45  ;;  %v7045_v15 = vpack.c.bf16 %v1620_v20, %v1619_v18  ;;  %v2873_v48 = vld [vmem:[#allocation2 + $0x69] sm:$0xff] }
 0x2e6   : > { %5308 = vmatprep.subr.bf16.mxu0 %v3297_v1  ;;  %v7047_v54 = vpack.c.bf16 %v2873_v48, %v2872_v37  ;;  %v622_v23 = vld [vmem:[%s6961_s26 + $0x88] sm:$0xff]  ;;  %v621_v52 = vld [vmem:[%s6961_s26 + $0x80] sm:$0xff]  ;;  %v624_v37 = vld [vmem:[%s6961_s26 + $0x98] sm:$0xff] }
 0x2e7   : > { %5128 = vmatprep.mubr.msk.bf16.mxu1 %vm1443_vm3, %v7045_v15 }
 0x2e8   : > { %5277 = vmatmul.mubr.msk.bf16.gmra.mrb[4].mxu0 %vm1443_vm3, %v7047_v54  ;;  %v1621_v22 = vld [vmem:[#allocation2 + $0x78] sm:$0xff]  ;;  %v1622_v57 = vld [vmem:[#allocation2 + $0x80] sm:$0xff] }
 0x2e9   : > { %v2874_v17 = vld [vmem:[#allocation2 + $0x79] sm:$0xff]  ;;  %v7058_v16 = vpack.c.bf16 %v1622_v57, %v1621_v22  ;;  %v2875_v51 = vld [vmem:[#allocation2 + $0x81] sm:$0xff]  ;;  %5309 = vmatpush3.bf16.msra.mxu0 %v3297_v1  ;;  %v623_v57 = vld [vmem:[%s6961_s26 + $0x90] sm:$0xff] }
 0x2ea   : > { %v7060_v34 = vpack.c.bf16 %v2875_v51, %v2874_v17  ;;  %5342 = vmatprep.subr.bf16.mxu0 %v7052_v32 }
 0x2eb   : > { %5129 = vmatmul.mubr.msk.bf16.gmra.mrb[8].mxu1 %vm1443_vm3, %v7058_v16 }
 0x2ec   : > { %5280 = vmatprep.mubr.msk.bf16.mxu0 %vm1443_vm3, %v7060_v34  ;;  %v1623_v11 = vld [vmem:[#allocation2 + $0x90] sm:$0xff]  ;;  %v1624_v42 = vld [vmem:[#allocation2 + $0x98] sm:$0xff] }
 0x2ed   : > { %v2876_v26 = vld [vmem:[#allocation2 + $0x91] sm:$0xff]  ;;  %v7067_v19 = vpack.c.bf16 %v1624_v42, %v1623_v11  ;;  %v2877_v38 = vld [vmem:[#allocation2 + $0x99] sm:$0xff] }
 0x2ee   : > { %v7069_v30 = vpack.c.bf16 %v2877_v38, %v2876_v26  ;;  %v3179_v42 = vld [vmem:[#allocation2 + $0x1a] sm:$0xff]  ;;  %v3180_v26 = vld [vmem:[#allocation2 + $0x22] sm:$0xff] }
 0x2ef   : > { %5132 = vmatprep.mubr.msk.bf16.mxu1 %vm1443_vm3, %v7067_v19 }
 0x2f0   : > { %5281 = vmatmul.mubr.msk.bf16.gmra.mrb[8].mxu0 %vm1443_vm3, %v7069_v30 }
 0x2f4   : > { %v1151_v49 = vpop.permute.xlu0 %1150  ;;  %v1146_v55 = vpop.permute.xlu1 %1145 }
 0x2f5   : > { %v1184_v29 = vsub.f32 %v6675_v0, %v1151_v49  ;;  %v1183_v43 = vsub.f32 %v6675_v0, %v1146_v55  ;;  %v626_v49 = vld [vmem:[%s6961_s26 + $0xa8] sm:$0xff] }
 0x2f7   : > { %v1248_v41 = vmul.f32 %v1216_v12, %v1184_v29  ;;  %v1247_v28 = vmul.f32 %v1215_v56, %v1183_v43 }
 0x2f8   : > { %v1340_v7 = vpop.permute.xlu0 %1339  ;;  %v1338_v36 = vpop.permute.xlu1 %1337 }
 0x2f9   : > { %v1280_v47 = vmul.f32 %v1248_v41, %v1184_v29  ;;  %v1279_v13 = vmul.f32 %v1247_v28, %v1183_v43  ;;  %v1423_v44 = vsel %vm1409_vm2, %v618_v27, %v1340_v7  ;;  %v1422_v33 = vsel %vm1409_vm2, %v617_v61, %v1338_v36  ;;  %v625_v29 = vld [vmem:[%s6961_s26 + $0xa0] sm:$0xff] }
 0x2fa   : > { %1457 = vst.msk [vmem:[#allocation2 + $0xb1] sm:$0xff] %vm1443_vm3, %v1423_v44  ;;  %1456 = vst.msk [vmem:[#allocation2 + $0xa9] sm:$0xff] %vm1443_vm3, %v1422_v33  ;;  %v7123_v61 = vpack.c.bf16 %v3180_v26, %v3179_v42  ;;  %v627_v44 = vld [vmem:[%s6961_s26 + $0xb0] sm:$0xff] }
 0x2fb   : > { %1375 = vrot.lane.b32.xlu0 %v1280_v47, %s6069_s19  ;;  %1373 = vrot.lane.b32.xlu1 %v1279_v13, %s6069_s19  ;;  %v628_v47 = vld [vmem:[%s6961_s26 + $0xb8] sm:$0xff] }
 0x2fc   : > { %v1344_v59 = vpop.permute.xlu0 %1343  ;;  %v1342_v2 = vpop.permute.xlu1 %1341 }
 0x2fd   : > { %v1425_v21 = vsel %vm1409_vm2, %v620_v25, %v1344_v59  ;;  %v1424_v14 = vsel %vm1409_vm2, %v619_v4, %v1342_v2  ;;  %v3181_v4 = vld [vmem:[#allocation2 + $0x32] sm:$0xff]  ;;  %v3182_v59 = vld [vmem:[#allocation2 + $0x3a] sm:$0xff]  ;;  %v3183_v2 = vld [vmem:[#allocation2 + $0x4a] sm:$0xff] }
 0x2fe   : > { %1459 = vst.msk [vmem:[#allocation2 + $0xc9] sm:$0xff] %vm1443_vm3, %v1425_v21  ;;  %1458 = vst.msk [vmem:[#allocation2 + $0xc1] sm:$0xff] %vm1443_vm3, %v1424_v14 }
 0x300   : > { %v1348_v1 = vpop.permute.xlu0 %1347  ;;  %v1346_v8 = vpop.permute.xlu1 %1345 }
 0x301   : > { %v1427_v58 = vsel %vm1409_vm2, %v622_v23, %v1348_v1  ;;  %v1426_v53 = vsel %vm1409_vm2, %v621_v52, %v1346_v8  ;;  %v1625_v45 = vld [vmem:[#allocation2 + $0xa8] sm:$0xff]  ;;  %v1626_v18 = vld [vmem:[#allocation2 + $0xb0] sm:$0xff] }
 0x302   : > { %v2878_v20 = vld [vmem:[#allocation2 + $0xa9] sm:$0xff]  ;;  %1461 = vst.msk [vmem:[#allocation2 + $0xe1] sm:$0xff] %vm1443_vm3, %v1427_v58  ;;  %1460 = vst.msk [vmem:[#allocation2 + $0xd9] sm:$0xff] %vm1443_vm3, %v1426_v53  ;;  %v7102_v48 = vpack.c.bf16 %v1626_v18, %v1625_v45  ;;  %v2879_v22 = vld [vmem:[#allocation2 + $0xb1] sm:$0xff]  ;;  %v7147_v45 = vpack.c.bf16 %v3182_v59, %v3181_v4 }
 0x303   : > { %v7105_v17 = vpack.c.bf16 %v2879_v22, %v2878_v20  ;;  %v3184_v1 = vld [vmem:[#allocation2 + $0x52] sm:$0xff]  ;;  %v630_v8 = vld [vmem:[%s6961_s26 + $0xc8] sm:$0xff]  ;;  %v629_v53 = vld [vmem:[%s6961_s26 + $0xc0] sm:$0xff] }
 0x304   : > { %v1352_v51 = vpop.permute.xlu0 %1351  ;;  %5133 = vmatmul.mubr.msk.bf16.gmra.mrb[12].mxu1 %vm1443_vm3, %v7102_v48  ;;  %v1350_v11 = vpop.permute.xlu1 %1349  ;;  %v5829_v18 = vld [vmem:[%s7768_s6 + $0x80] sm:$0xff]   ;;  %v5830_v20 = vld [vmem:[%s7768_s6 + $0x88] ss:$0 sps:$4 sm:$0x33]  }
 0x305   : > { %v1429_v62 = vsel %vm1409_vm2, %v624_v37, %v1352_v51  ;;  %5284 = vmatprep.mubr.msk.bf16.mxu0 %vm1443_vm3, %v7105_v17  ;;  %v1428_v38 = vsel %vm1409_vm2, %v623_v57, %v1350_v11  ;;  %v1627_v9 = vld [vmem:[#allocation2 + $0xc0] sm:$0xff]  ;;  %v1628_v10 = vld [vmem:[#allocation2 + $0xc8] sm:$0xff]  ;;  %v7157_v57 = vpack.c.bf16 %v3184_v1, %v3183_v2  ;;  %v3189_v1 = vld [vmem:[#allocation2 + $0x92] sm:$0xff] }
 0x306   : > { %v2880_v39 = vld [vmem:[#allocation2 + $0xc1] sm:$0xff]  ;;  %1463 = vst.msk [vmem:[#allocation2 + $0xf9] sm:$0xff] %vm1443_vm3, %v1429_v62  ;;  %1462 = vst.msk [vmem:[#allocation2 + $0xf1] sm:$0xff] %vm1443_vm3, %v1428_v38  ;;  %v7116_v55 = vpack.c.bf16 %v1628_v10, %v1627_v9  ;;  %v2881_v12 = vld [vmem:[#allocation2 + $0xc9] sm:$0xff]  ;;  %v3611_v10 = vand.u32 %v5830_v20, %v6778_v31 }
 0x307   : > { %v7119_v56 = vpack.c.bf16 %v2881_v12, %v2880_v39  ;;  %v632_v62 = vld [vmem:[%s6961_s26 + $0xd8] sm:$0xff]  ;;  %v631_v9 = vld [vmem:[%s6961_s26 + $0xd0] sm:$0xff]  ;;  %v3185_v12 = vld [vmem:[#allocation2 + $0x62] sm:$0xff] }
 0x308   : > { %v1356_v43 = vpop.permute.xlu0 %1355  ;;  %5136 = vmatprep.mubr.msk.bf16.mxu1 %vm1443_vm3, %v7116_v55  ;;  %v1354_v27 = vpop.permute.xlu1 %1353 }
 0x309   : > { %v1431_v41 = vsel %vm1409_vm2, %v626_v49, %v1356_v43  ;;  %5285 = vmatmul.mubr.msk.bf16.gmra.mrb[12].mxu0 %vm1443_vm3, %v7119_v56  ;;  %v1430_v28 = vsel %vm1409_vm2, %v625_v29, %v1354_v27  ;;  %v1629_v7 = vld [vmem:[#allocation2 + $0xd8] sm:$0xff]  ;;  %v1630_v36 = vld [vmem:[#allocation2 + $0xe0] sm:$0xff]  ;;  %v3186_v29 = vld [vmem:[#allocation2 + $0x6a] sm:$0xff] }
 0x30a   : > { %1465 = vst.msk [vmem:[#allocation2 + $0x111] sm:$0xff] %vm1443_vm3, %v1431_v41  ;;  %1464 = vst.msk [vmem:[#allocation2 + $0x109] sm:$0xff] %vm1443_vm3, %v1430_v28  ;;  %5310 = vmatprep.mubr.msk.bf16.mxu0 %vm1443_vm3, %v7123_v61  ;;  %v7134_v13 = vpack.c.bf16 %v1630_v36, %v1629_v7  ;;  %v3187_v43 = vld [vmem:[#allocation2 + $0x7a] sm:$0xff]  ;;  %v634_v36 = vld [vmem:[%s6961_s26 + $0xe8] sm:$0xff] }
 0x30c   : > { %v1360_v33 = vpop.permute.xlu0 %1359  ;;  %5137 = vmatmul.mubr.msk.bf16.gmra.mrb[16].mxu1 %vm1443_vm3, %v7134_v13  ;;  %v1358_v25 = vpop.permute.xlu1 %1357 }
 0x30d   : > { %v1433_v21 = vsel %vm1409_vm2, %v628_v47, %v1360_v33  ;;  %v1432_v14 = vsel %vm1409_vm2, %v627_v44, %v1358_v25  ;;  %v1631_v23 = vld [vmem:[#allocation2 + $0xf0] sm:$0xff]  ;;  %v1632_v52 = vld [vmem:[#allocation2 + $0xf8] sm:$0xff]  ;;  %v633_v44 = vld [vmem:[%s6961_s26 + $0xe0] sm:$0xff]  ;;  %v7183_v33 = vpack.c.bf16 %v3186_v29, %v3185_v12 }
 0x30e   : > { %1467 = vst.msk [vmem:[#allocation2 + $0x129] sm:$0xff] %vm1443_vm3, %v1433_v21  ;;  %1466 = vst.msk [vmem:[#allocation2 + $0x121] sm:$0xff] %vm1443_vm3, %v1432_v14  ;;  %v7144_v58 = vpack.c.bf16 %v1632_v52, %v1631_v23  ;;  %v3194_v12 = vld [vmem:[#allocation2 + $0xca] sm:$0xff] }
 0x30f   : > { %v7220_v29 = vld [vmem:[%s7768_s6 + $0x8c] sm:$0xff]  }
 0x310   : > { %v1364_v37 = vpop.permute.xlu0 %1363  ;;  %5140 = vmatprep.mubr.msk.bf16.mxu1 %vm1443_vm3, %v7144_v58  ;;  %v1362_v22 = vpop.permute.xlu1 %1361 }
 0x311   : > { %v1435_v51 = vsel %vm1409_vm2, %v630_v8, %v1364_v37  ;;  %5311 = vmatmul.mubr.msk.bf16.vlgmr.msra.gmra.mrb[0].mxu0 %vm1443_vm3, %v7147_v45  ;;  %v1434_v11 = vsel %vm1409_vm2, %v629_v53, %v1362_v22  ;;  %v1633_v42 = vld [vmem:[#allocation2 + $0x108] sm:$0xff]  ;;  %v1634_v26 = vld [vmem:[#allocation2 + $0x110] sm:$0xff]  ;;  %v3190_v8 = vld [vmem:[#allocation2 + $0x9a] sm:$0xff] }
 0x312   : > { %1469 = vst.msk [vmem:[#allocation2 + $0x141] sm:$0xff] %vm1443_vm3, %v1435_v51  ;;  %1468 = vst.msk [vmem:[#allocation2 + $0x139] sm:$0xff] %vm1443_vm3, %v1434_v11  ;;  %5314 = vmatprep.mubr.msk.bf16.mxu0 %vm1443_vm3, %v7157_v57  ;;  %v7168_v38 = vpack.c.bf16 %v1634_v26, %v1633_v42  ;;  %5343 = vmatpush3.bf16.msra.mxu0 %v7052_v32  ;;  %v3188_v32 = vld [vmem:[#allocation2 + $0x82] sm:$0xff]  ;;  %v3191_v53 = vld [vmem:[#allocation2 + $0xaa] sm:$0xff]  ;;  %v7203_v42 = vpack.c.bf16 %v3190_v8, %v3189_v1 }
 0x313   : > { %5344 = vmatprep.subr.bf16.mxu0 %v5829_v18  ;;  %v7187_v59 = vpack.c.bf16 %v3188_v32, %v3187_v43  ;;  %v3192_v37 = vld [vmem:[#allocation2 + $0xb2] sm:$0xff]  ;;  %v1927_v51 = vld [vmem:[#allocation2 + $0x1] sm:$0xff]  ;;  %v1928_v11 = vld [vmem:[#allocation2 + $0x9] sm:$0xff] }
 0x314   : > { %v1368_v39 = vpop.permute.xlu0 %1367  ;;  %5141 = vmatmul.mubr.msk.bf16.gmra.mrb[20].mxu1 %vm1443_vm3, %v7168_v38  ;;  %v1366_v49 = vpop.permute.xlu1 %1365  ;;  %v7207_v26 = vpack.c.bf16 %v3192_v37, %v3191_v53  ;;  %v3195_v43 = vld [vmem:[#allocation2 + $0xda] sm:$0xff]  ;;  %v5828_v32 = vld [vmem:[%s7768_s6 + $0x38] ss:$0 sps:$4 sm:$0x33]  }
 0x315   : > { %v1437_v27 = vsel %vm1409_vm2, %v632_v62, %v1368_v39  ;;  %v1436_v41 = vsel %vm1409_vm2, %v631_v9, %v1366_v49  ;;  %v1635_v28 = vld [vmem:[#allocation2 + $0x120] sm:$0xff]  ;;  %v1636_v7 = vld [vmem:[#allocation2 + $0x128] sm:$0xff] }
 0x316   : > { %1471 = vst.msk [vmem:[#allocation2 + $0x159] sm:$0xff] %vm1443_vm3, %v1437_v27  ;;  %1470 = vst.msk [vmem:[#allocation2 + $0x151] sm:$0xff] %vm1443_vm3, %v1436_v41  ;;  %v7180_v47 = vpack.c.bf16 %v1636_v7, %v1635_v28  ;;  %5345 = vmatpush3.bf16.msra.mxu0 %v5829_v18  ;;  %v3193_v49 = vld [vmem:[#allocation2 + $0xc2] sm:$0xff]  ;;  %v5826_v7 = vld [vmem:[%s7768_s6 + $0x30] sm:$0xff]  }
 0x317   : > { %5346 = vmatprep.subr.bf16.mxu0 %v3611_v10  ;;  %v3196_v27 = vld [vmem:[#allocation2 + $0xe2] sm:$0xff]  ;;  %v7224_v41 = vpack.c.bf16 %v3194_v12, %v3193_v49 }
 0x318   : > { %v1372_v25 = vpop.permute.xlu0 %1371  ;;  %5144 = vmatprep.mubr.msk.bf16.mxu1 %vm1443_vm3, %v7180_v47  ;;  %v1370_v4 = vpop.permute.xlu1 %1369  ;;  %v7226_v28 = vpack.c.bf16 %v3196_v27, %v3195_v43  ;;  %v1950_v43 = vld [vmem:[#allocation2 + $0x111] sm:$0xff] }
 0x319   : > { %v1439_v2 = vsel %vm1409_vm2, %v634_v36, %v1372_v25  ;;  %5315 = vmatmul.mubr.msk.bf16.gmra.mrb[4].mxu0 %vm1443_vm3, %v7183_v33  ;;  %v1438_v21 = vsel %vm1409_vm2, %v633_v44, %v1370_v4  ;;  %v1637_v14 = vld [vmem:[#allocation2 + $0x138] sm:$0xff]  ;;  %v1638_v23 = vld [vmem:[#allocation2 + $0x140] sm:$0xff]  ;;  %v3199_v25 = vld [vmem:[#allocation2 + $0x10a] sm:$0xff] }
 0x31a   : > { %1473 = vst.msk [vmem:[#allocation2 + $0x171] sm:$0xff] %vm1443_vm3, %v1439_v2  ;;  %1472 = vst.msk [vmem:[#allocation2 + $0x169] sm:$0xff] %vm1443_vm3, %v1438_v21  ;;  %5318 = vmatprep.mubr.msk.bf16.mxu0 %vm1443_vm3, %v7187_v59  ;;  %v7197_v52 = vpack.c.bf16 %v1638_v23, %v1637_v14  ;;  %5347 = vmatpush3.bf16.msra.mxu0 %v3611_v10  ;;  %v1959_v10 = vpack.c.bf16 %v1928_v11, %v1927_v51  ;;  %v3197_v36 = vld [vmem:[#allocation2 + $0xf2] sm:$0xff]  ;;  %v3198_v44 = vld [vmem:[#allocation2 + $0xfa] sm:$0xff] }
 0x31b   : > { %5380 = vmatprep.subr.bf16.mxu0 %v7220_v29  ;;  %v3200_v4 = vld [vmem:[#allocation2 + $0x112] sm:$0xff]  ;;  %v2358_v2 = vand.u32 %v5828_v32, %v6778_v31  ;;  %v7244_v21 = vpack.c.bf16 %v3198_v44, %v3197_v36  ;;  %v3203_v23 = vld [vmem:[#allocation2 + $0x13a] sm:$0xff]  ;;  %v3204_v1 = vld [vmem:[#allocation2 + $0x142] sm:$0xff] }
 0x31c   : > { %5145 = vmatmul.mubr.msk.bf16.gmra.mrb[24].mxu1 %vm1443_vm3, %v7197_v52  ;;  %v7246_v14 = vpack.c.bf16 %v3200_v4, %v3199_v25  ;;  %v7264_v53 = vpack.c.bf16 %v3204_v1, %v3203_v23  ;;  %v1946_v11 = vld [vmem:[#allocation2 + $0xe1] sm:$0xff]  ;;  %v1952_v32 = vld [vmem:[#allocation2 + $0x129] sm:$0xff] }
 0x31d   : > { %v1639_v18 = vld [vmem:[#allocation2 + $0x150] sm:$0xff]  ;;  %v1640_v20 = vld [vmem:[#allocation2 + $0x158] sm:$0xff] }
 0x31e   : > { %v7201_v22 = vpack.c.bf16 %v1640_v20, %v1639_v18 }
 0x320   : > { %5148 = vmatprep.mubr.msk.bf16.mxu1 %vm1443_vm3, %v7201_v22 }
 0x321   : > { %5319 = vmatmul.mubr.msk.bf16.gmra.mrb[8].mxu0 %vm1443_vm3, %v7203_v42  ;;  %v1641_v62 = vld [vmem:[#allocation2 + $0x168] sm:$0xff]  ;;  %v1642_v9 = vld [vmem:[#allocation2 + $0x170] sm:$0xff] }
 0x322   : > { %5322 = vmatprep.mubr.msk.bf16.mxu0 %vm1443_vm3, %v7207_v26  ;;  %v7213_v39 = vpack.c.bf16 %v1642_v9, %v1641_v62  ;;  %v3207_v18 = vld [vmem:[#allocation2 + $0x16a] sm:$0xff]  ;;  %v3208_v20 = vld [vmem:[#allocation2 + $0x172] sm:$0xff] }
 0x323   : > { %v7276_v51 = vpack.c.bf16 %v3208_v20, %v3207_v18  ;;  %v1947_v62 = vld [vmem:[#allocation2 + $0xf1] sm:$0xff]  ;;  %v1948_v9 = vld [vmem:[#allocation2 + $0xf9] sm:$0xff] }
 0x324   : > { %5149 = vmatmul.mubr.msk.bf16.gmra.mrb[28].mxu1 %vm1443_vm3, %v7213_v39  ;;  %v7288_v12 = vpack.c.bf16 %v1948_v9, %v1947_v62 }
 0x325   : > { %5158 = vmatprep.mubr.msk.bf16.mxu1 %vm1443_vm3, %v1959_v10 }
 0x329   : > { %5323 = vmatmul.mubr.msk.bf16.gmra.mrb[12].mxu0 %vm1443_vm3, %v7224_v41 }
 0x32a   : > { %5326 = vmatprep.mubr.msk.bf16.mxu0 %vm1443_vm3, %v7226_v28 }
 0x32c   : > { %5159 = vmatmul.mubr.msk.bf16.vlgmr.msra.gmra.mrb[0].mxu1 %vm1443_vm3, %v6981_v35  ;;  %v7255_v35 = vld [vmem:[%s7768_s6 + $0x3c] sm:$0xff]  }
 0x32d   : > { %5162 = vmatprep.mubr.msk.bf16.mxu1 %vm1443_vm3, %v7004_v5  ;;  %5191 = vmatpush3.bf16.msra.mxu1 %v7016_v24  ;;  %v3201_v5 = vld [vmem:[#allocation2 + $0x122] sm:$0xff]  ;;  %v3202_v24 = vld [vmem:[#allocation2 + $0x12a] sm:$0xff] }
 0x32e   : > { %5192 = vmatprep.subr.bf16.mxu1 %v5826_v7  ;;  %v7262_v8 = vpack.c.bf16 %v3202_v24, %v3201_v5 }
 0x331   : > { %5327 = vmatmul.mubr.msk.bf16.gmra.mrb[16].mxu0 %vm1443_vm3, %v7244_v21  ;;  %5193 = vmatpush3.bf16.msra.mxu1 %v5826_v7  ;;  %v1951_v7 = vld [vmem:[#allocation2 + $0x121] sm:$0xff] }
 0x332   : > { %5330 = vmatprep.mubr.msk.bf16.mxu0 %vm1443_vm3, %v7246_v14  ;;  %5194 = vmatprep.subr.bf16.mxu1 %v2358_v2 }
 0x334   : > { %5163 = vmatmul.mubr.msk.bf16.gmra.mrb[4].mxu1 %vm1443_vm3, %v7030_v6  ;;  %v3205_v6 = vld [vmem:[#allocation2 + $0x152] sm:$0xff] }
 0x335   : > { %5166 = vmatprep.mubr.msk.bf16.mxu1 %vm1443_vm3, %v7047_v54  ;;  %5195 = vmatpush3.bf16.msra.mxu1 %v2358_v2  ;;  %v3206_v54 = vld [vmem:[#allocation2 + $0x15a] sm:$0xff]  ;;  %v7299_v2 = vpack.c.bf16 %v1952_v32, %v1951_v7  ;;  %v5832_v7 = vld [vmem:[%s7768_s6 + $0x44] sm:$0xff]   ;;  %v5834_v32 = vld [vmem:[%s7768_s6 + $0x4c] ss:$0 sps:$4 sm:$0x33]  }
 0x336   : > { %5228 = vmatprep.subr.bf16.mxu1 %v7255_v35  ;;  %v7274_v37 = vpack.c.bf16 %v3206_v54, %v3205_v6  ;;  %v1953_v6 = vld [vmem:[#allocation2 + $0x139] sm:$0xff]  ;;  %v1954_v54 = vld [vmem:[#allocation2 + $0x141] sm:$0xff] }
 0x337   : > { %v7309_v62 = vpack.c.bf16 %v1954_v54, %v1953_v6  ;;  %v5986_v6 = vld [vmem:[%s7768_s6 + $0x58] sm:$0xff]   ;;  %v2559_v54 = vld [vmem:[#allocation2 + $0x60] sm:$0xff] }
 0x339   : > { %5331 = vmatmul.mubr.msk.bf16.gmra.mrb[20].mxu0 %vm1443_vm3, %v7262_v8 }
 0x33a   : > { %5334 = vmatprep.mubr.msk.bf16.mxu0 %vm1443_vm3, %v7264_v53 }
 0x33c   : > { %5167 = vmatmul.mubr.msk.bf16.gmra.mrb[8].mxu1 %vm1443_vm3, %v7060_v34 }
 0x33d   : > { %5170 = vmatprep.mubr.msk.bf16.mxu1 %vm1443_vm3, %v7069_v30  ;;  %v1945_v30 = vld [vmem:[#allocation2 + $0xd9] sm:$0xff] }
 0x33e   : > { %v7286_v49 = vpack.c.bf16 %v1946_v11, %v1945_v30  ;;  %v1956_v30 = vld [vmem:[#allocation2 + $0x159] sm:$0xff] }
 0x341   : > { %5335 = vmatmul.mubr.msk.bf16.gmra.mrb[24].mxu0 %vm1443_vm3, %v7274_v37 }
 0x342   : > { %5338 = vmatprep.mubr.msk.bf16.mxu0 %vm1443_vm3, %v7276_v51 }
 0x344   : > { %5171 = vmatmul.mubr.msk.bf16.gmra.mrb[12].mxu1 %vm1443_vm3, %v7105_v17  ;;  %v1949_v17 = vld [vmem:[#allocation2 + $0x109] sm:$0xff] }
 0x345   : > { %v1523_v34 = vpop.xlane.xlu0 %1522  ;;  %5174 = vmatprep.mubr.msk.bf16.mxu1 %vm1443_vm3, %v7119_v56  ;;  %v7295_v44 = vpack.c.bf16 %v1950_v43, %v1949_v17  ;;  %v1957_v17 = vld [vmem:[#allocation2 + $0x169] sm:$0xff]  ;;  %v1958_v43 = vld [vmem:[#allocation2 + $0x171] sm:$0xff] }
 0x346   : > { %5980 = vrcp.f32 %v1523_v34  ;;  %v1955_v34 = vld [vmem:[#allocation2 + $0x151] sm:$0xff] }
 0x347   : > { %v7311_v9 = vpack.c.bf16 %v1956_v30, %v1955_v34  ;;  %v2561_v34 = vld [vmem:[#allocation2 + $0x78] sm:$0xff]  ;;  %v2562_v30 = vld [vmem:[#allocation2 + $0x80] sm:$0xff] }
 0x34a   : > { %v1520_v10 = vpop.xlane.xlu1 %1519 }
 0x34b   : > { %5982 = vrcp.f32 %v1520_v10 }
 0x34c   : > { %5175 = vmatmul.mubr.msk.bf16.gmra.mrb[16].mxu1 %vm1443_vm3, %v7286_v49 }
 0x34d   : > { %5178 = vmatprep.mubr.msk.bf16.mxu1 %vm1443_vm3, %v7288_v12  ;;  %v1545_v24 = vpop.permute.xlu0 %1544 }
 0x34e   : > { %v1550_v27 = vpop.permute.xlu1 %1549  ;;  %v1554_v18 = vsub.f32 %v6675_v0, %v1545_v24 }
 0x34f   : > { %v1555_v4 = vsub.f32 %v6675_v0, %v1550_v27  ;;  %v7318_v27 = vpack.c.bf16 %v1958_v43, %v1957_v17  ;;  %v1487_v43 = vld [vmem:[%s6737_s12 + $0x18] sm:$0xff] }
 0x350   : > { %v5981_v56 = vpop.eup %5980 }
 0x351   : > { %v1531_v36 = vmul.f32 %v5981_v56, %v6949_v50 }
 0x353   : > { %v1559_v25 = vmul.f32 %v1531_v36, %v6675_v0  ;;  %v636_v36 = vld [vmem:[%s6961_s26 + $0xf8] sm:$0xff] }
 0x354   : > { %5179 = vmatmul.mubr.msk.bf16.gmra.mrb[20].mxu1 %vm1443_vm3, %v7295_v44 }
 0x355   : > { %v5983_v5 = vpop.eup %5982  ;;  %v1563_v23 = vmul.f32 %v1559_v25, %v1555_v4  ;;  %5182 = vmatprep.mubr.msk.bf16.mxu1 %vm1443_vm3, %v7299_v2  ;;  %v635_v25 = vld [vmem:[%s6961_s26 + $0xf0] sm:$0xff]  ;;  %s6071_s26 = smov [#allocation3]  }
 0x356   : > { %v1530_v1 = vmul.f32 %v5983_v5, %v6953_v60  ;;  %v2241_v60 = vld [vmem:[#allocation2 + $0xa] sm:$0xff]  ;;  %s5991_s16 = sshll.u32 %s6071_s26, 4  ;;  %s5992_s16 = int_to_ptr.vmem [resolvable:$false] %s5991_s16 }
 0x357   : > { %v1567_v50 = vmul.f32 %v1563_v23, %v1555_v4  ;;  %s5993_s11 = scalar_lea.vmem %s5992_s16, 8192  ;;  %p5994_p1 = scmp.lt.s32.totalorder %s7706_s24, %s5992_s16 }
 0x358   : > { %v1558_v20 = vmul.f32 %v1530_v1, %v6675_v0  ;;  %v2240_v0 = vld [vmem:[#allocation2 + $0x2] sm:$0xff]  ;;  %v2671_v1 = vand.u32 %v5834_v32, %v6778_v31 }
 0x359   : > { %1578 = vrot.lane.b32.xlu0 %v1567_v50, %s6069_s19  ;;  %v2272_v56 = vpack.c.bf16 %v2241_v60, %v2240_v0  ;;  %v2563_v0 = vld [vmem:[#allocation2 + $0x90] sm:$0xff]  ;;  %v2564_v60 = vld [vmem:[#allocation2 + $0x98] sm:$0xff] }
 0x35a   : > { %v1562_v11 = vmul.f32 %v1558_v20, %v1554_v18  ;;  %v2590_v17 = vpack.c.bf16 %v2564_v60, %v2563_v0  ;;  %v4131_v0 = vld [vmem:[#allocation2 + $0xc2] sm:$0xff]  ;;  %v4132_v60 = vld [vmem:[#allocation2 + $0xca] sm:$0xff] }
 0x35c   : > { %v1566_v10 = vmul.f32 %v1562_v11, %v1554_v18  ;;  %5183 = vmatmul.mubr.msk.bf16.gmra.mrb[24].mxu1 %vm1443_vm3, %v7309_v62  ;;  %v2560_v18 = vld [vmem:[#allocation2 + $0x68] sm:$0xff] }
 0x35d   : > { %5186 = vmatprep.mubr.msk.bf16.mxu1 %vm1443_vm3, %v7311_v9  ;;  %v2588_v11 = vpack.c.bf16 %v2560_v18, %v2559_v54  ;;  %v4126_v54 = vld [vmem:[#allocation2 + $0x82] sm:$0xff]  ;;  %v4127_v18 = vld [vmem:[#allocation2 + $0x92] sm:$0xff] }
 0x35e   : > { %1576 = vrot.lane.b32.xlu1 %v1566_v10, %s6069_s19  ;;  %v2589_v10 = vpack.c.bf16 %v2562_v30, %v2561_v34  ;;  %s5987_s19 = scalar_lea.vmem %s7706_s24, 4096 }
 0x35f   : > { %p5988_p12 = scmp.ne.s32.totalorder %s7706_s24, %s5987_s19  ;;  %p5995_p2 = scmp.lt.s32.totalorder %s5993_s11, %s5987_s19 }
 0x361   : > { %p5989_p13 = pnand %p5988_p12, %p6159_p4  ;;  %p5996_p3 = por %p5995_p2, %p5994_p1 }
 0x363   : > { %p5990_p0 = pneg %p5989_p13 }
 0x364   : > { %5187 = vmatmul.mubr.msk.bf16.gmra.mrb[28].mxu1 %vm1443_vm3, %v7318_v27 }
 0x365   : > { %5196 = vmatprep.mubr.msk.bf16.mxu1 %vm1443_vm3, %v2272_v56  ;;  %p5997_p5 = pnand %p5996_p3, %p5990_p0 }
 0x36c   : > { %5197 = vmatmul.mubr.msk.bf16.vlgmr.msra.gmra.mrb[0].mxu1 %vm1443_vm3, %v7123_v61 }
 0x36d   : > { %v1376_v4 = vpop.permute.xlu0 %1375  ;;  %5200 = vmatprep.mubr.msk.bf16.mxu1 %vm1443_vm3, %v7147_v45  ;;  %v1374_v5 = vpop.permute.xlu1 %1373  ;;  %5229 = vmatpush3.bf16.msra.mxu1 %v7255_v35  ;;  %v5985_v35 = vld [vmem:[%s7768_s6 + $0x50] sm:$0xff]  }
 0x36e   : > { %v1441_v24 = vsel %vm1409_vm2, %v636_v36, %v1376_v4  ;;  %v1440_v23 = vsel %vm1409_vm2, %v635_v25, %v1374_v5  ;;  %5230 = vmatprep.subr.bf16.mxu1 %v5832_v7  ;;  %v3806_v36 = vld [vmem:[#allocation2 + $0x31] sm:$0xff]  ;;  %v3811_v4 = vld [vmem:[#allocation2 + $0x69] sm:$0xff] }
 0x36f   : > { %1475 = vst.msk [vmem:[#allocation2 + $0x189] sm:$0xff] %vm1443_vm3, %v1441_v24  ;;  %1474 = vst.msk [vmem:[#allocation2 + $0x181] sm:$0xff] %vm1443_vm3, %v1440_v23  ;;  %v5838_v24 = vld [vmem:[%s7768_s6 + $0xa8] sm:$0xff]  }
 0x371   : > { %5231 = vmatpush3.bf16.msra.mxu1 %v5832_v7 }
 0x372   : > { %5232 = vmatprep.subr.bf16.mxu1 %v2671_v1 }
 0x374   : > { %5201 = vmatmul.mubr.msk.bf16.gmra.mrb[4].mxu1 %vm1443_vm3, %v7157_v57  ;;  %v5835_v57 = vld [vmem:[%s7768_s6 + $0x94] sm:$0xff]  }
 0x375   : > { %5204 = vmatprep.mubr.msk.bf16.mxu1 %vm1443_vm3, %v7183_v33  ;;  %5233 = vmatpush3.bf16.msra.mxu1 %v2671_v1  ;;  %v5836_v33 = vld [vmem:[%s7768_s6 + $0x9c] ss:$0 sps:$4 sm:$0x33]  }
 0x376   : > { %v3209_v61 = vld [vmem:[#allocation2 + $0x182] sm:$0xff]  ;;  %v3210_v45 = vld [vmem:[#allocation2 + $0x18a] sm:$0xff]  ;;  %5456 = vmatprep.subr.bf16.mxu1 %v5985_v35  ;;  %v3812_v1 = vld [vmem:[#allocation2 + $0x79] sm:$0xff] }
 0x377   : > { %v7348_v50 = vpack.c.bf16 %v3210_v45, %v3209_v61  ;;  %v3813_v61 = vld [vmem:[#allocation2 + $0x81] sm:$0xff]  ;;  %v3814_v45 = vld [vmem:[#allocation2 + $0x91] sm:$0xff] }
 0x379   : > { %5339 = vmatmul.mubr.msk.bf16.gmra.mrb[28].mxu0 %vm1443_vm3, %v7348_v50 }
 0x37a   : > { %5348 = vmatprep.mubr.msk.bf16.mxu0 %vm1443_vm3, %v7002_v63  ;;  %v3924_v63 = vand.u32 %v5836_v33, %v6778_v31 }
 0x37c   : > { %5205 = vmatmul.mubr.msk.bf16.gmra.mrb[8].mxu1 %vm1443_vm3, %v7187_v59  ;;  %v2556_v59 = vld [vmem:[#allocation2 + $0x38] sm:$0xff] }
 0x37d   : > { %5208 = vmatprep.mubr.msk.bf16.mxu1 %vm1443_vm3, %v7203_v42  ;;  %v2558_v42 = vld [vmem:[#allocation2 + $0x50] sm:$0xff] }
 0x381   : > { %5349 = vmatmul.mubr.msk.bf16.vlgmr.msra.gmra.mrb[0].mxu0 %vm1443_vm3, %v7028_v46  ;;  %v7377_v46 = vld [vmem:[%s7768_s6 + $0xa0] sm:$0xff]  }
 0x382   : > { %5352 = vmatprep.mubr.msk.bf16.mxu0 %vm1443_vm3, %v7045_v15  ;;  %5381 = vmatpush3.bf16.msra.mxu0 %v7220_v29  ;;  %v2554_v15 = vld [vmem:[#allocation2 + $0x20] sm:$0xff] }
 0x383   : > { %5382 = vmatprep.subr.bf16.mxu0 %v5835_v57 }
 0x384   : > { %5209 = vmatmul.mubr.msk.bf16.gmra.mrb[12].mxu1 %vm1443_vm3, %v7207_v26  ;;  %v2555_v26 = vld [vmem:[#allocation2 + $0x30] sm:$0xff] }
 0x385   : > { %5212 = vmatprep.mubr.msk.bf16.mxu1 %vm1443_vm3, %v7224_v41  ;;  %v2586_v29 = vpack.c.bf16 %v2556_v59, %v2555_v26  ;;  %v2557_v41 = vld [vmem:[#allocation2 + $0x48] sm:$0xff] }
 0x386   : > { %5383 = vmatpush3.bf16.msra.mxu0 %v5835_v57  ;;  %v3841_v57 = vpack.c.bf16 %v3813_v61, %v3812_v1  ;;  %v2896_v59 = vld [vmem:[#allocation2 + $0x181] sm:$0xff] }
 0x387   : > { %5384 = vmatprep.subr.bf16.mxu0 %v3924_v63 }
 0x389   : > { %5353 = vmatmul.mubr.msk.bf16.gmra.mrb[4].mxu0 %vm1443_vm3, %v7058_v16  ;;  %v2553_v16 = vld [vmem:[#allocation2 + $0x18] sm:$0xff] }
 0x38a   : > { %5356 = vmatprep.mubr.msk.bf16.mxu0 %vm1443_vm3, %v7067_v19  ;;  %5385 = vmatpush3.bf16.msra.mxu0 %v3924_v63  ;;  %v2585_v19 = vpack.c.bf16 %v2554_v15, %v2553_v16  ;;  %v3817_v63 = vld [vmem:[#allocation2 + $0xb1] sm:$0xff]  ;;  %v3819_v15 = vld [vmem:[#allocation2 + $0xc9] sm:$0xff] }
 0x38b   : > { %5418 = vmatprep.subr.bf16.mxu0 %v7377_v46 }
 0x38c   : > { %5213 = vmatmul.mubr.msk.bf16.gmra.mrb[16].mxu1 %vm1443_vm3, %v7226_v28  ;;  %v2587_v28 = vpack.c.bf16 %v2558_v42, %v2557_v41  ;;  %v2897_v42 = vld [vmem:[#allocation2 + $0x189] sm:$0xff]  ;;  %v4119_v41 = vld [vmem:[#allocation2 + $0x32] sm:$0xff] }
 0x38d   : > { %5216 = vmatprep.mubr.msk.bf16.mxu1 %vm1443_vm3, %v7244_v21  ;;  %v3521_v21 = vld [vmem:[#allocation2 + $0x180] sm:$0xff]  ;;  %v2913_v26 = vpack.c.bf16 %v2897_v42, %v2896_v59 }
 0x391   : > { %5357 = vmatmul.mubr.msk.bf16.gmra.mrb[8].mxu0 %vm1443_vm3, %v7102_v48 }
 0x392   : > { %5360 = vmatprep.mubr.msk.bf16.mxu0 %vm1443_vm3, %v7116_v55 }
 0x394   : > { %5217 = vmatmul.mubr.msk.bf16.gmra.mrb[20].mxu1 %vm1443_vm3, %v7246_v14  ;;  %v3522_v14 = vld [vmem:[#allocation2 + $0x188] sm:$0xff] }
 0x395   : > { %5220 = vmatprep.mubr.msk.bf16.mxu1 %vm1443_vm3, %v7262_v8  ;;  %v3539_v20 = vpack.c.bf16 %v3522_v14, %v3521_v21  ;;  %v4123_v21 = vld [vmem:[#allocation2 + $0x62] sm:$0xff]  ;;  %v4124_v14 = vld [vmem:[#allocation2 + $0x6a] sm:$0xff] }
 0x399   : > { %5361 = vmatmul.mubr.msk.bf16.gmra.mrb[12].mxu0 %vm1443_vm3, %v7134_v13 }
 0x39a   : > { %5364 = vmatprep.mubr.msk.bf16.mxu0 %vm1443_vm3, %v7144_v58 }
 0x39c   : > { %5221 = vmatmul.mubr.msk.bf16.gmra.mrb[24].mxu1 %vm1443_vm3, %v7264_v53 }
 0x39d   : > { %5224 = vmatprep.mubr.msk.bf16.mxu1 %vm1443_vm3, %v7274_v37 }
 0x3a1   : > { %5365 = vmatmul.mubr.msk.bf16.gmra.mrb[16].mxu0 %vm1443_vm3, %v7168_v38 }
 0x3a2   : > { %5368 = vmatprep.mubr.msk.bf16.mxu0 %vm1443_vm3, %v7180_v47 }
 0x3a4   : > { %5225 = vmatmul.mubr.msk.bf16.gmra.mrb[28].mxu1 %vm1443_vm3, %v7276_v51 }
 0x3a5   : > { %5234 = vmatprep.mubr.msk.bf16.mxu1 %vm1443_vm3, %v2585_v19 }
 0x3a9   : > { %5369 = vmatmul.mubr.msk.bf16.gmra.mrb[20].mxu0 %vm1443_vm3, %v7197_v52 }
 0x3aa   : > { %5372 = vmatprep.mubr.msk.bf16.mxu0 %vm1443_vm3, %v7201_v22 }
 0x3ac   : > { %5235 = vmatmul.mubr.msk.bf16.vlgmr.msra.gmra.mrb[0].mxu1 %vm1443_vm3, %v2586_v29 }
 0x3ad   : > { %5238 = vmatprep.mubr.msk.bf16.mxu1 %vm1443_vm3, %v2587_v28  ;;  %5459 = vmatpush3.bf16.msra.mxu1 %v5985_v35  ;;  %v3815_v35 = vld [vmem:[#allocation2 + $0x99] sm:$0xff] }
 0x3ae   : > { %5457 = vmatprep.subr.bf16.mxu1 %v5986_v6  ;;  %v3842_v33 = vpack.c.bf16 %v3815_v35, %v3814_v45  ;;  %v4120_v28 = vld [vmem:[#allocation2 + $0x3a] sm:$0xff] }
 0x3b1   : > { %5373 = vmatmul.mubr.msk.bf16.gmra.mrb[24].mxu0 %vm1443_vm3, %v7213_v39  ;;  %5460 = vmatpush3.bf16.msra.mxu1 %v5986_v6  ;;  %v4153_v6 = vpack.c.bf16 %v4124_v14, %v4123_v21 }
 0x3b2   : > { %5376 = vmatprep.mubr.msk.bf16.mxu0 %vm1443_vm3, %v3539_v20  ;;  %5458 = vmatprep.subr.bf16.mxu1 %v6808_v40 }
 0x3b4   : > { %5239 = vmatmul.mubr.msk.bf16.gmra.mrb[4].mxu1 %vm1443_vm3, %v2588_v11  ;;  %v4129_v11 = vld [vmem:[#allocation2 + $0xaa] sm:$0xff] }
 0x3b5   : > { %5242 = vmatprep.mubr.msk.bf16.mxu1 %vm1443_vm3, %v2589_v10  ;;  %5461 = vmatpush3.bf16.msra.mxu1 %v6808_v40  ;;  %v1486_v40 = vld [vmem:[%s6737_s12 + $0x10] sm:$0xff] }
 0x3b6   : > { %v4130_v10 = vld [vmem:[#allocation2 + $0xb2] sm:$0xff] }
 0x3bc   : > { %5243 = vmatmul.mubr.msk.bf16.gmra.mrb[8].mxu1 %vm1443_vm3, %v2590_v17  ;;  %v4156_v17 = vpack.c.bf16 %v4130_v10, %v4129_v11 }
 0x3bd   : > { %5246 = vmatprep.mubr.msk.bf16.mxu1 %vm1443_vm3, %v7102_v48 }
 0x3c4   : > { %5247 = vmatmul.mubr.msk.bf16.gmra.mrb[12].mxu1 %vm1443_vm3, %v7116_v55 }
 0x3c5   : > { %5250 = vmatprep.mubr.msk.bf16.mxu1 %vm1443_vm3, %v7134_v13  ;;  %v3807_v13 = vld [vmem:[#allocation2 + $0x39] sm:$0xff] }
 0x3c6   : > { %v3838_v25 = vpack.c.bf16 %v3807_v13, %v3806_v36 }
 0x3cb   : > { %v1579_v56 = vpop.permute.xlu0 %1578 }
 0x3cc   : > { %v1587_v7 = vsel %vm1409_vm2, %v1487_v43, %v1579_v56  ;;  %5251 = vmatmul.mubr.msk.bf16.gmra.mrb[16].mxu1 %vm1443_vm3, %v7144_v58  ;;  %v4157_v43 = vpack.c.bf16 %v4132_v60, %v4131_v0  ;;  %v4133_v56 = vld [vmem:[#allocation2 + $0xda] sm:$0xff] }
 0x3cd   : > { %1592 = vst.msk [vmem:[#allocation2 + $0x1a1] sm:$0xff] %vm1443_vm3, %v1587_v7  ;;  %5254 = vmatprep.mubr.msk.bf16.mxu1 %vm1443_vm3, %v7168_v38  ;;  %v4134_v7 = vld [vmem:[#allocation2 + $0xe2] sm:$0xff] }
 0x3ce   : > { %1603 = vst.msk [vmem:[#allocation2 + $0x1a8] sm:$0x3] %vm1599_vm4, %v7807_v3 }
 0x3d0   : > { %v1577_v48 = vpop.permute.xlu1 %1576 }
 0x3d1   : > { %v1586_v55 = vsel %vm1409_vm2, %v1486_v40, %v1577_v48  ;;  %v4135_v40 = vld [vmem:[#allocation2 + $0xf2] sm:$0xff]  ;;  %v4136_v48 = vld [vmem:[#allocation2 + $0xfa] sm:$0xff] }
 0x3d2   : > { %1591 = vst.msk [vmem:[#allocation2 + $0x199] sm:$0xff] %vm1443_vm3, %v1586_v55  ;;  %v4158_v55 = vpack.c.bf16 %v4134_v7, %v4133_v56  ;;  %v4159_v13 = vpack.c.bf16 %v4136_v48, %v4135_v40 }
 0x3d3   : > { %1601 = vst.msk [vmem:[#allocation2 + $0x198] sm:$0xff] %vm1443_vm3, %v7807_v3  ;;  %1602 = vst.msk [vmem:[#allocation2 + $0x1a0] sm:$0xff] %vm1443_vm3, %v7807_v3  ;;  %v3809_v3 = vld [vmem:[#allocation2 + $0x51] sm:$0xff] }
 0x3d4   : > { %5255 = vmatmul.mubr.msk.bf16.gmra.mrb[20].mxu1 %vm1443_vm3, %v7180_v47  ;;  %v3810_v47 = vld [vmem:[#allocation2 + $0x61] sm:$0xff] }
 0x3d5   : > { %5258 = vmatprep.mubr.msk.bf16.mxu1 %vm1443_vm3, %v7197_v52  ;;  %v3808_v52 = vld [vmem:[#allocation2 + $0x49] sm:$0xff] }
 0x3d6   : > { %v3839_v5 = vpack.c.bf16 %v3809_v3, %v3808_v52 }
 0x3da   : > { %v3523_v58 = vld [vmem:[#allocation2 + $0x198] sm:$0xff]  ;;  %v3524_v38 = vld [vmem:[#allocation2 + $0x1a0] sm:$0xff] }
 0x3db   : > { %v3540_v32 = vpack.c.bf16 %v3524_v38, %v3523_v58  ;;  %v4137_v58 = vld [vmem:[#allocation2 + $0x10a] sm:$0xff]  ;;  %v4138_v38 = vld [vmem:[#allocation2 + $0x112] sm:$0xff]  ;;  %v4149_v36 = vld [vmem:[#allocation2 + $0x19a] sm:$0xff] }
 0x3dc   : > { %5259 = vmatmul.mubr.msk.bf16.gmra.mrb[24].mxu1 %vm1443_vm3, %v7201_v22  ;;  %v5839_v22 = vld [vmem:[%s7768_s6 + $0xb0] ss:$0 sps:$4 sm:$0x33]  }
 0x3dd   : > { %5262 = vmatprep.mubr.msk.bf16.mxu1 %vm1443_vm3, %v7213_v39  ;;  %5377 = vmatmul.mubr.msk.bf16.gmra.mrb[28].mxu0 %vm1443_vm3, %v3540_v32  ;;  %v3840_v39 = vpack.c.bf16 %v3811_v4, %v3810_v47  ;;  %v4237_v23 = vand.u32 %v5839_v22, %v6778_v31  ;;  %v3816_v31 = vld [vmem:[#allocation2 + $0xa9] sm:$0xff]  ;;  %v4160_v32 = vpack.c.bf16 %v4138_v38, %v4137_v58 }
 0x3de   : > { %5386 = vmatprep.mubr.msk.bf16.mxu0 %vm1443_vm3, %v3838_v25  ;;  %v3843_v16 = vpack.c.bf16 %v3817_v63, %v3816_v31  ;;  %v4150_v25 = vld [vmem:[#allocation2 + $0x1a2] sm:$0xff] }
 0x3df   : > { %v4166_v3 = vpack.c.bf16 %v4150_v25, %v4149_v36 }
 0x3e4   : > { %5263 = vmatmul.mubr.msk.bf16.gmra.mrb[28].mxu1 %vm1443_vm3, %v3539_v20  ;;  %v4128_v20 = vld [vmem:[#allocation2 + $0x9a] sm:$0xff] }
 0x3e5   : > { %5288 = vmatprep.mubr.msk.bf16.mxu1 %vm1443_vm3, %v7286_v49  ;;  %5387 = vmatmul.mubr.msk.bf16.vlgmr.msra.gmra.mrb[0].mxu0 %vm1443_vm3, %v3839_v5  ;;  %v4155_v30 = vpack.c.bf16 %v4128_v20, %v4127_v18 }
 0x3e6   : > { %5419 = vmatpush3.bf16.msra.mxu0 %v7377_v46  ;;  %5390 = vmatprep.mubr.msk.bf16.mxu0 %vm1443_vm3, %v3840_v39  ;;  %v3818_v46 = vld [vmem:[#allocation2 + $0xc1] sm:$0xff] }
 0x3e7   : > { %5420 = vmatprep.subr.bf16.mxu0 %v5838_v24  ;;  %v3844_v19 = vpack.c.bf16 %v3819_v15, %v3818_v46 }
 0x3ea   : > { %5421 = vmatpush3.bf16.msra.mxu0 %v5838_v24 }
 0x3eb   : > { %5422 = vmatprep.subr.bf16.mxu0 %v4237_v23 }
 0x3ec   : > { %5289 = vmatmul.mubr.msk.bf16.vlgmr.msra.gmra.mrb[16].mxu1 %vm1443_vm3, %v7288_v12 }
 0x3ed   : > { %5292 = vmatprep.mubr.msk.bf16.mxu1 %vm1443_vm3, %v7295_v44  ;;  %5391 = vmatmul.mubr.msk.bf16.gmra.mrb[4].mxu0 %vm1443_vm3, %v3841_v57 }
 0x3ee   : > { %5394 = vmatprep.mubr.msk.bf16.mxu0 %vm1443_vm3, %v3842_v33  ;;  %5423 = vmatpush3.bf16.msra.mxu0 %v4237_v23 }
 0x3f4   : > { %5293 = vmatmul.mubr.msk.bf16.gmra.mrb[20].mxu1 %vm1443_vm3, %v7299_v2 }
 0x3f5   : > { %5296 = vmatprep.mubr.msk.bf16.mxu1 %vm1443_vm3, %v7309_v62  ;;  %5395 = vmatmul.mubr.msk.bf16.gmra.mrb[8].mxu0 %vm1443_vm3, %v3843_v16 }
 0x3f6   : > { %5398 = vmatprep.mubr.msk.bf16.mxu0 %vm1443_vm3, %v3844_v19 }
 0x3fc   : > { %5297 = vmatmul.mubr.msk.bf16.gmra.mrb[24].mxu1 %vm1443_vm3, %v7311_v9 }
 0x3fd   : > { %5300 = vmatprep.mubr.msk.bf16.mxu1 %vm1443_vm3, %v7318_v27  ;;  %5399 = vmatmul.mubr.msk.bf16.gmra.mrb[12].mxu0 %vm1443_vm3, %v7286_v49  ;;  %v3836_v49 = vld [vmem:[#allocation2 + $0x199] sm:$0xff] }
 0x3fe   : > { %5402 = vmatprep.mubr.msk.bf16.mxu0 %vm1443_vm3, %v7288_v12  ;;  %v3837_v12 = vld [vmem:[#allocation2 + $0x1a1] sm:$0xff] }
 0x3ff   : > { %v3853_v29 = vpack.c.bf16 %v3837_v12, %v3836_v49 }
 0x404   : > { %5301 = vmatmul.mubr.msk.bf16.gmra.mrb[28].mxu1 %vm1443_vm3, %v2913_v26 }
 0x405   : > { %5403 = vmatmul.mubr.msk.bf16.gmra.mrb[16].mxu0 %vm1443_vm3, %v7295_v44  ;;  %v4151_v44 = vpack.c.bf16 %v4120_v28, %v4119_v41  ;;  %v7578_v28 = vld [vmem:[%s7769_s7] ss:$0 sm:$0xff] }
 0x406   : > { %5406 = vmatprep.mubr.msk.bf16.mxu0 %vm1443_vm3, %v7299_v2  ;;  %v4121_v2 = vld [vmem:[#allocation2 + $0x4a] sm:$0xff] }
 0x40d   : > { %5407 = vmatmul.mubr.msk.bf16.gmra.mrb[20].mxu0 %vm1443_vm3, %v7309_v62  ;;  %v4122_v62 = vld [vmem:[#allocation2 + $0x52] sm:$0xff] }
 0x40e   : > { %5410 = vmatprep.mubr.msk.bf16.mxu0 %vm1443_vm3, %v7311_v9  ;;  %v4152_v9 = vpack.c.bf16 %v4122_v62, %v4121_v2 }
 0x415   : > { %5411 = vmatmul.mubr.msk.bf16.gmra.mrb[24].mxu0 %vm1443_vm3, %v7318_v27  ;;  %v4125_v27 = vld [vmem:[#allocation2 + $0x7a] sm:$0xff] }
 0x416   : > { %5414 = vmatprep.mubr.msk.bf16.mxu0 %vm1443_vm3, %v2913_v26  ;;  %v4154_v34 = vpack.c.bf16 %v4126_v54, %v4125_v27 }
 0x41d   : > { %5415 = vmatmul.mubr.msk.bf16.gmra.mrb[28].mxu0 %vm1443_vm3, %v3853_v29 }
 0x41e   : > { %5424 = vmatprep.mubr.msk.bf16.mxu0 %vm1443_vm3, %v4151_v44 }
 0x425   : > { %5425 = vmatmul.mubr.msk.bf16.vlgmr.msra.gmra.mrb[0].mxu0 %vm1443_vm3, %v4152_v9 }
 0x426   : > { %5428 = vmatprep.mubr.msk.bf16.mxu0 %vm1443_vm3, %v4153_v6 }
 0x42d   : > { %5429 = vmatmul.mubr.msk.bf16.gmra.mrb[4].mxu0 %vm1443_vm3, %v4154_v34 }
 0x42e   : > { %5432 = vmatprep.mubr.msk.bf16.mxu0 %vm1443_vm3, %v4155_v30 }
 0x435   : > { %5433 = vmatmul.mubr.msk.bf16.gmra.mrb[8].mxu0 %vm1443_vm3, %v4156_v17 }
 0x436   : > { %5436 = vmatprep.mubr.msk.bf16.mxu0 %vm1443_vm3, %v4157_v43 }
 0x43d   : > { %5437 = vmatmul.mubr.msk.bf16.gmra.mrb[12].mxu0 %vm1443_vm3, %v4158_v55 }
 0x43e   : > { %5440 = vmatprep.mubr.msk.bf16.mxu0 %vm1443_vm3, %v4159_v13 }
 0x445   : > { %5441 = vmatmul.mubr.msk.bf16.gmra.mrb[16].mxu0 %vm1443_vm3, %v4160_v32 }
 0x446   : > { %5444 = vmatprep.mubr.msk.bf16.mxu0 %vm1443_vm3, %v7262_v8 }
 0x44d   : > { %5445 = vmatmul.mubr.msk.bf16.gmra.mrb[20].mxu0 %vm1443_vm3, %v7264_v53 }
 0x44e   : > { %5448 = vmatprep.mubr.msk.bf16.mxu0 %vm1443_vm3, %v7274_v37 }
 0x455   : > { %5449 = vmatmul.mubr.msk.bf16.gmra.mrb[24].mxu0 %vm1443_vm3, %v7276_v51 }
 0x456   : > { %5452 = vmatprep.mubr.msk.bf16.mxu0 %vm1443_vm3, %v7348_v50 }
 0x45d   : > { %5453 = vmatmul.mubr.msk.bf16.gmra.mrb[28].mxu0 %vm1443_vm3, %v4166_v3 }
 0x47f   : > { %v5236_v47 = vpop.f32.mrb[0].mxu1 }
 0x480   : > { %v2707_v4 = vpop.f32.mrb[1].mxu1  ;;  %v5462_v44 = vadd.f32 %v5236_v47, %v7578_v28 }
 0x481   : > { %v5237_v8 = vpop.f32.mrb[2].mxu1  ;;  %v5464_v2 = vadd.f32 %v7578_v28, %v2707_v4 }
 0x482   : > { %v2710_v52 = vpop.f32.mrb[3].mxu1  ;;  %v5466_v21 = vadd.f32 %v5237_v8, %v7578_v28 }
 0x483   : > { %v5468_v6 = vadd.f32 %v7578_v28, %v2710_v52 }
 0x487   : > { %v5240_v5 = vpop.f32.mrb[4].mxu1 }
 0x488   : > { %v2723_v53 = vpop.f32.mrb[5].mxu1  ;;  %v5470_v60 = vadd.f32 %v5240_v5, %v7578_v28 }
 0x489   : > { %v5241_v24 = vpop.f32.mrb[6].mxu1  ;;  %v5472_v17 = vadd.f32 %v7578_v28, %v2723_v53 }
 0x48a   : > { %v2726_v22 = vpop.f32.mrb[7].mxu1  ;;  %v5474_v56 = vadd.f32 %v5241_v24, %v7578_v28 }
 0x48b   : > { %v5476_v48 = vadd.f32 %v7578_v28, %v2726_v22 }
 0x48f   : > { %v7527_v37 = vpop.f32.mrb[8].mxu1 }
 0x490   : > { %v7529_v39 = vpop.f32.mrb[9].mxu1  ;;  %v5478_v4 = vadd.f32 %v7527_v37, %v7578_v28 }
 0x491   : > { %v7531_v51 = vpop.f32.mrb[10].mxu1  ;;  %v5480_v8 = vadd.f32 %v7578_v28, %v7529_v39 }
 0x492   : > { %v7533_v50 = vpop.f32.mrb[11].mxu1  ;;  %v5482_v5 = vadd.f32 %v7531_v51, %v7578_v28 }
 0x493   : > { %v5484_v22 = vadd.f32 %v7578_v28, %v7533_v50 }
 0x497   : > { %v7535_v23 = vpop.f32.mrb[12].mxu1 }
 0x498   : > { %v7537_v1 = vpop.f32.mrb[13].mxu1 }
 0x499   : > { %v7539_v61 = vpop.f32.mrb[14].mxu1  ;;  %v5488_v50 = vadd.f32 %v7578_v28, %v7537_v1 }
 0x49a   : > { %v7541_v45 = vpop.f32.mrb[15].mxu1 }
 0x4bf   : > { %v7543_v35 = vpop.f32.mrb[16].mxu1 }
 0x4c0   : > { %v7545_v57 = vpop.f32.mrb[17].mxu1 }
 0x4c1   : > { %v7547_v33 = vpop.f32.mrb[18].mxu1 }
 0x4c2   : > { %v7549_v31 = vpop.f32.mrb[19].mxu1 }
 0x4c7   : > { %v7551_v63 = vpop.f32.mrb[20].mxu1 }
 0x4c8   : > { %v7553_v46 = vpop.f32.mrb[21].mxu1 }
 0x4c9   : > { %v7555_v15 = vpop.f32.mrb[22].mxu1 }
 0x4ca   : > { %v7557_v16 = vpop.f32.mrb[23].mxu1 }
 0x4cf   : > { %v7559_v19 = vpop.f32.mrb[24].mxu1 }
 0x4d0   : > { %v7561_v59 = vpop.f32.mrb[25].mxu1 }
 0x4d1   : > { %v7563_v42 = vpop.f32.mrb[26].mxu1 }
 0x4d2   : > { %v7565_v26 = vpop.f32.mrb[27].mxu1 }
 0x4d7   : > { %v7567_v49 = vpop.f32.mrb[28].mxu1 }
 0x4d8   : > { %v7569_v12 = vpop.f32.mrb[29].mxu1 }
 0x4d9   : > { %v7571_v29 = vpop.f32.mrb[30].mxu1 }
 0x4da   : > { %v7573_v41 = vpop.f32.mrb[31].mxu1 }
 0x4f8   : > { %v5426_v62 = vpop.f32.mrb[0].mxu0 }
 0x4f9   : > { %v5463_v14 = vadd.f32 %v5462_v44, %v5426_v62  ;;  %v4273_v9 = vpop.f32.mrb[1].mxu0 }
 0x4fa   : > { %v5465_v27 = vadd.f32 %v5464_v2, %v4273_v9  ;;  %v5427_v54 = vpop.f32.mrb[2].mxu0 }
 0x4fb   : > { %v4434_v18 = vmax.f32 %v5463_v14, 0.0  ;;  %v5467_v20 = vadd.f32 %v5466_v21, %v5427_v54  ;;  %v4276_v34 = vpop.f32.mrb[3].mxu0  ;;  %v5490_v54 = vadd.f32 %v7539_v61, %v7578_v28 }
 0x4fc   : > { %v4432_v30 = vmax.f32 %v5465_v27, 0.0  ;;  %v5469_v11 = vadd.f32 %v5468_v6, %v4276_v34  ;;  %v5486_v6 = vadd.f32 %v7535_v23, %v7578_v28  ;;  %v5492_v23 = vadd.f32 %v7578_v28, %v7541_v45 }
 0x4fd   : > { %4467 = vst.msk [vmem:[%s7587_s14 + $0x10] sm:$0xff] %vm4464_vm7, %v4434_v18  ;;  %v4435_v10 = vmax.f32 %v5467_v20, 0.0  ;;  %v5496_v45 = vadd.f32 %v7578_v28, %v7545_v57 }
 0x4fe   : > { %4465 = vst.msk [vmem:[%s7587_s14] sm:$0xff] %vm4464_vm7, %v4432_v30  ;;  %v4433_v0 = vmax.f32 %v5469_v11, 0.0 }
 0x4ff   : > { %4468 = vst.msk [vmem:[%s7587_s14 + $0x18] sm:$0xff] %vm4464_vm7, %v4435_v10 }
 0x500   : > { %4466 = vst.msk [vmem:[%s7587_s14 + $0x8] sm:$0xff] %vm4464_vm7, %v4433_v0  ;;  %v5430_v43 = vpop.f32.mrb[4].mxu0 }
 0x501   : > { %v5471_v7 = vadd.f32 %v5470_v60, %v5430_v43  ;;  %v4289_v40 = vpop.f32.mrb[5].mxu0  ;;  %v5494_v43 = vadd.f32 %v7543_v35, %v7578_v28  ;;  %v5500_v35 = vadd.f32 %v7578_v28, %v7549_v31  ;;  %v5504_v31 = vadd.f32 %v7578_v28, %v7553_v46 }
 0x502   : > { %v5473_v55 = vadd.f32 %v5472_v17, %v4289_v40  ;;  %v5431_v13 = vpop.f32.mrb[6].mxu0 }
 0x503   : > { %v4438_v58 = vmax.f32 %v5471_v7, 0.0  ;;  %v5475_v38 = vadd.f32 %v5474_v56, %v5431_v13  ;;  %v4292_v32 = vpop.f32.mrb[7].mxu0  ;;  %v5498_v7 = vadd.f32 %v7547_v33, %v7578_v28 }
 0x504   : > { %v4436_v36 = vmax.f32 %v5473_v55, 0.0  ;;  %v5477_v25 = vadd.f32 %v5476_v48, %v4292_v32 }
 0x505   : > { %4471 = vst.msk [vmem:[%s7587_s14 + $0x30] sm:$0xff] %vm4464_vm7, %v4438_v58  ;;  %v4439_v3 = vmax.f32 %v5475_v38, 0.0 }
 0x506   : > { %4469 = vst.msk [vmem:[%s7587_s14 + $0x20] sm:$0xff] %vm4464_vm7, %v4436_v36  ;;  %v4437_v47 = vmax.f32 %v5477_v25, 0.0 }
 0x507   : > { %4472 = vst.msk [vmem:[%s7587_s14 + $0x38] sm:$0xff] %vm4464_vm7, %v4439_v3  ;;  %v5502_v3 = vadd.f32 %v7551_v63, %v7578_v28  ;;  %v5508_v63 = vadd.f32 %v7578_v28, %v7557_v16  ;;  %v5512_v16 = vadd.f32 %v7578_v28, %v7561_v59 }
 0x508   : > { %4470 = vst.msk [vmem:[%s7587_s14 + $0x28] sm:$0xff] %vm4464_vm7, %v4437_v47  ;;  %v5434_v52 = vpop.f32.mrb[8].mxu0 }
 0x509   : > { %v5479_v53 = vadd.f32 %v5478_v4, %v5434_v52  ;;  %v4305_v24 = vpop.f32.mrb[9].mxu0  ;;  %v5506_v4 = vadd.f32 %v7555_v15, %v7578_v28 }
 0x50a   : > { %v5481_v37 = vadd.f32 %v5480_v8, %v4305_v24  ;;  %v5435_v44 = vpop.f32.mrb[10].mxu0 }
 0x50b   : > { %v4442_v2 = vmax.f32 %v5479_v53, 0.0  ;;  %v5483_v62 = vadd.f32 %v5482_v5, %v5435_v44  ;;  %v4308_v21 = vpop.f32.mrb[11].mxu0 }
 0x50c   : > { %v4440_v39 = vmax.f32 %v5481_v37, 0.0  ;;  %v5485_v14 = vadd.f32 %v5484_v22, %v4308_v21 }
 0x50d   : > { %4475 = vst.msk [vmem:[%s7587_s14 + $0x50] sm:$0xff] %vm4464_vm7, %v4442_v2  ;;  %v4443_v9 = vmax.f32 %v5483_v62, 0.0  ;;  %v5510_v62 = vadd.f32 %v7559_v19, %v7578_v28  ;;  %v5516_v19 = vadd.f32 %v7578_v28, %v7565_v26  ;;  %v5520_v26 = vadd.f32 %v7578_v28, %v7569_v12 }
 0x50e   : > { %4473 = vst.msk [vmem:[%s7587_s14 + $0x40] sm:$0xff] %vm4464_vm7, %v4440_v39  ;;  %v4441_v51 = vmax.f32 %v5485_v14, 0.0  ;;  %v5514_v39 = vadd.f32 %v7563_v42, %v7578_v28 }
 0x50f   : > { %4476 = vst.msk [vmem:[%s7587_s14 + $0x58] sm:$0xff] %vm4464_vm7, %v4443_v9 }
 0x510   : > { %4474 = vst.msk [vmem:[%s7587_s14 + $0x48] sm:$0xff] %vm4464_vm7, %v4441_v51  ;;  %v5438_v27 = vpop.f32.mrb[12].mxu0 }
 0x511   : > { %v5487_v18 = vadd.f32 %v5486_v6, %v5438_v27  ;;  %v4321_v20 = vpop.f32.mrb[13].mxu0 }
 0x512   : > { %v5489_v34 = vadd.f32 %v5488_v50, %v4321_v20  ;;  %v5439_v30 = vpop.f32.mrb[14].mxu0 }
 0x513   : > { %v4446_v11 = vmax.f32 %v5487_v18, 0.0  ;;  %v5491_v10 = vadd.f32 %v5490_v54, %v5439_v30  ;;  %v4324_v0 = vpop.f32.mrb[15].mxu0  ;;  %v5522_v30 = vadd.f32 %v7571_v29, %v7578_v28 }
 0x514   : > { %v4444_v1 = vmax.f32 %v5489_v34, 0.0  ;;  %v5493_v60 = vadd.f32 %v5492_v23, %v4324_v0  ;;  %v5518_v23 = vadd.f32 %v7567_v49, %v7578_v28  ;;  %v5524_v0 = vadd.f32 %v7578_v28, %v7573_v41 }
 0x515   : > { %4479 = vst.msk [vmem:[%s7587_s14 + $0x70] sm:$0xff] %vm4464_vm7, %v4446_v11  ;;  %v4447_v17 = vmax.f32 %v5491_v10, 0.0 }
 0x516   : > { %4477 = vst.msk [vmem:[%s7587_s14 + $0x60] sm:$0xff] %vm4464_vm7, %v4444_v1  ;;  %v4445_v61 = vmax.f32 %v5493_v60, 0.0 }
 0x517   : > { %4480 = vst.msk [vmem:[%s7587_s14 + $0x78] sm:$0xff] %vm4464_vm7, %v4447_v17 }
 0x518   : > { %4478 = vst.msk [vmem:[%s7587_s14 + $0x68] sm:$0xff] %vm4464_vm7, %v4445_v61  ;;  %v5442_v56 = vpop.f32.mrb[16].mxu0 }
 0x519   : > { %v5495_v40 = vadd.f32 %v5494_v43, %v5442_v56  ;;  %v4337_v48 = vpop.f32.mrb[17].mxu0 }
 0x51a   : > { %v5497_v55 = vadd.f32 %v5496_v45, %v4337_v48  ;;  %v5443_v13 = vpop.f32.mrb[18].mxu0 }
 0x51b   : > { %v4450_v58 = vmax.f32 %v5495_v40, 0.0  ;;  %v5499_v38 = vadd.f32 %v5498_v7, %v5443_v13  ;;  %v4340_v32 = vpop.f32.mrb[19].mxu0 }
 0x51c   : > { %v4448_v57 = vmax.f32 %v5497_v55, 0.0  ;;  %v5501_v36 = vadd.f32 %v5500_v35, %v4340_v32 }
 0x51d   : > { %4483 = vst.msk [vmem:[%s7587_s14 + $0x90] sm:$0xff] %vm4464_vm7, %v4450_v58  ;;  %v4451_v25 = vmax.f32 %v5499_v38, 0.0 }
 0x51e   : > { %4481 = vst.msk [vmem:[%s7587_s14 + $0x80] sm:$0xff] %vm4464_vm7, %v4448_v57  ;;  %v4449_v33 = vmax.f32 %v5501_v36, 0.0 }
 0x51f   : > { %4484 = vst.msk [vmem:[%s7587_s14 + $0x98] sm:$0xff] %vm4464_vm7, %v4451_v25 }
 0x520   : > { %4482 = vst.msk [vmem:[%s7587_s14 + $0x88] sm:$0xff] %vm4464_vm7, %v4449_v33  ;;  %v5446_v47 = vpop.f32.mrb[20].mxu0 }
 0x521   : > { %v5503_v8 = vadd.f32 %v5502_v3, %v5446_v47  ;;  %v4353_v52 = vpop.f32.mrb[21].mxu0 }
 0x522   : > { %v5505_v5 = vadd.f32 %v5504_v31, %v4353_v52  ;;  %v5447_v53 = vpop.f32.mrb[22].mxu0 }
 0x523   : > { %v4454_v24 = vmax.f32 %v5503_v8, 0.0  ;;  %v5507_v22 = vadd.f32 %v5506_v4, %v5447_v53  ;;  %v4356_v37 = vpop.f32.mrb[23].mxu0 }
 0x524   : > { %v4452_v46 = vmax.f32 %v5505_v5, 0.0  ;;  %v5509_v44 = vadd.f32 %v5508_v63, %v4356_v37 }
 0x525   : > { %4487 = vst.msk [vmem:[%s7587_s14 + $0xb0] sm:$0xff] %vm4464_vm7, %v4454_v24  ;;  %v4455_v2 = vmax.f32 %v5507_v22, 0.0 }
 0x526   : > { %4485 = vst.msk [vmem:[%s7587_s14 + $0xa0] sm:$0xff] %vm4464_vm7, %v4452_v46  ;;  %v4453_v15 = vmax.f32 %v5509_v44, 0.0 }
 0x527   : > { %4488 = vst.msk [vmem:[%s7587_s14 + $0xb8] sm:$0xff] %vm4464_vm7, %v4455_v2 }
 0x528   : > { %4486 = vst.msk [vmem:[%s7587_s14 + $0xa8] sm:$0xff] %vm4464_vm7, %v4453_v15  ;;  %v5450_v21 = vpop.f32.mrb[24].mxu0 }
 0x529   : > { %v5511_v14 = vadd.f32 %v5510_v62, %v5450_v21  ;;  %v4369_v9 = vpop.f32.mrb[25].mxu0 }
 0x52a   : > { %v5513_v51 = vadd.f32 %v5512_v16, %v4369_v9  ;;  %v5451_v6 = vpop.f32.mrb[26].mxu0 }
 0x52b   : > { %v4458_v50 = vmax.f32 %v5511_v14, 0.0  ;;  %v5515_v27 = vadd.f32 %v5514_v39, %v5451_v6  ;;  %v4372_v54 = vpop.f32.mrb[27].mxu0 }
 0x52c   : > { %v4456_v59 = vmax.f32 %v5513_v51, 0.0  ;;  %v5517_v18 = vadd.f32 %v5516_v19, %v4372_v54 }
 0x52d   : > { %4491 = vst.msk [vmem:[%s7587_s14 + $0xd0] sm:$0xff] %vm4464_vm7, %v4458_v50  ;;  %v4459_v20 = vmax.f32 %v5515_v27, 0.0 }
 0x52e   : > { %4489 = vst.msk [vmem:[%s7587_s14 + $0xc0] sm:$0xff] %vm4464_vm7, %v4456_v59  ;;  %v4457_v42 = vmax.f32 %v5517_v18, 0.0 }
 0x52f   : > { %4492 = vst.msk [vmem:[%s7587_s14 + $0xd8] sm:$0xff] %vm4464_vm7, %v4459_v20 }
 0x530   : > { %4490 = vst.msk [vmem:[%s7587_s14 + $0xc8] sm:$0xff] %vm4464_vm7, %v4457_v42  ;;  %v5454_v34 = vpop.f32.mrb[28].mxu0 }
 0x531   : > { %v5519_v11 = vadd.f32 %v5518_v23, %v5454_v34  ;;  %v4385_v10 = vpop.f32.mrb[29].mxu0 }
 0x532   : > { %v5521_v49 = vadd.f32 %v5520_v26, %v4385_v10  ;;  %v5455_v1 = vpop.f32.mrb[30].mxu0 }
 0x533   : > { %v4462_v12 = vmax.f32 %v5519_v11, 0.0  ;;  %v5523_v60 = vadd.f32 %v5522_v30, %v5455_v1  ;;  %v4388_v17 = vpop.f32.mrb[31].mxu0 }
 0x534   : > { %v4460_v61 = vmax.f32 %v5521_v49, 0.0  ;;  %v5525_v43 = vadd.f32 %v5524_v0, %v4388_v17 }
 0x535   : > { %4495 = vst.msk [vmem:[%s7587_s14 + $0xf0] sm:$0xff] %vm4464_vm7, %v4462_v12  ;;  %v4463_v29 = vmax.f32 %v5523_v60, 0.0 }
 0x536   : > { %4493 = vst.msk [vmem:[%s7587_s14 + $0xe0] sm:$0xff] %vm4464_vm7, %v4460_v61  ;;  %v4461_v41 = vmax.f32 %v5525_v43, 0.0 }
 0x537   : > { %4496 = vst.msk [vmem:[%s7587_s14 + $0xf8] sm:$0xff] %vm4464_vm7, %v4463_v29 }
 0x538   : > { %4494 = vst.msk [vmem:[%s7587_s14 + $0xe8] sm:$0xff] %vm4464_vm7, %v4461_v41 }
 0x539   : > { %6000 = shalt.err (!%p5997_p5)
}
 0x53a   : > { %s6001_s25 = scalar_lea.hbm %s7704_s21, 4096  ;;  %s6005_s22 = scalar_lea.hbm %s7770_s8, 8192 }
 0x53b   : > { %p6002_p6 = scmp.ne.s32.totalorder %s7704_s21, %s6001_s25  ;;  %p6006_p10 = scmp.lt.u32.totalorder %s7704_s21, %s7770_s8 }
 0x53c   : > { %p6007_p11 = scmp.lt.u32.totalorder %s6005_s22, %s6001_s25  ;;  %p6009_p13 = scmp.lt.u32.totalorder %s6001_s25, %s7704_s21 }
 0x53d   : > { %p6003_p7 = pnand %p6002_p6, %p6159_p4 }
 0x53e   : > { %p6008_p12 = por %p6007_p11, %p6006_p10 }
 0x53f   : > { %p6004_p9 = pneg %p6003_p7 }
 0x540   : > { %p6010_p0 = por %p6009_p13, %p6008_p12 }
 0x542   : > { %p6011_p1 = pnand %p6010_p0, %p6004_p9 }
 0x544   : > { %6014 = shalt.err (!%p6011_p1)
}
 0x545   : > { %s6072_s19 = smov 128   ;;  %s6073_s26 = smov 8  }
 0x546   : > { %5750 = dma.vmem_to_hbm [thread:$0]  (%p6159_p4), %s7706_s24, 4096, %s7704_s21, %s7716_s30, %s6072_s19, %s6072_s19, %s6073_s26  }
 0x547 PF: > { %p5756_p2 = scmp.ge.s32.totalorder %s6065_s10, 2  ;;  %s4529_s16 = sand.u32 1, %s6045_s27  }
 0x548   : > { %s4530_s11 = scalar_lea.sflag [#allocation4], %s4529_s16 }
 0x549   : > { %p5753_p3 = pnand %p5756_p2, %p6166_p8 }
 0x54b   : > { %6040 = dma.done.wait (!%p5753_p3), %s4530_s11, 4096  }
 0x54c   : > { %6042 = vsyncadd (!%p5753_p3), %s4530_s11, 4294963200  ;;  %s21_s10 = sadd.s32 1, %s6065_s10   ;;  %s7827_s27 = smov %s6049_s28 }
 0x54d   : > { %p18_p5 = scmp.ge.s32.totalorder %s21_s10, 4   ;;  %s7828_s28 = smov %s6053_s29 }
 0x54e   : > { %s7829_s29 = smov %s6172_s18  ;;  %s7830_s30 = smov %s6061_s9 }
 0x54f   : > { %s7831_s9 = smov %s7833_s13  ;;  %20 = sbr.rel (!%p18_p5) target bundleno = 4 (0x4), region = 117 }
 0x556   :  { %4535 = vsyncpa [#allocation4], 1 }
 0x557   :  { %4537 = vsyncpa [#allocation4 + $0x1], 1 }

</bundles_post_ra>
